<compile_context>
chip_gen: v6e
topology: v6e:2x2x1
jax: 0.10.0
libtpu: 0.0.40
codegen_flags: <defaults>
</compile_context>

<pallas_src>
import functools

import jax
import jax.numpy as jnp
from jax import lax
from jax.experimental import pallas as pl
from jax.experimental.pallas import tpu as pltpu

KSIZE = 7
PAD = 3


def _cbam_kernel(x_ref, w1t_ref, w2_ref, wsp_ref, b_ref, o_ref, pad_ref, *, H, W):
    # x_ref  : (1, C, H*W) VMEM block (one batch element), original dtype
    # w1t_ref: (C, Cr) VMEM   -- transpose of first 1x1-conv weight (Cr, C)
    # w2_ref : (C, Cr) VMEM   -- second 1x1-conv weight (C, Cr)
    # wsp_ref: (2*7*7,) SMEM  -- flattened spatial conv weight [ch][ki][kj]
    # b_ref  : (1,) SMEM      -- spatial conv bias
    # o_ref  : (1, C, H*W) VMEM output block
    # pad_ref: (2, H+6, W+6) f32 VMEM scratch (zero-padded avg/max maps)
    C = x_ref.shape[1]
    HW = H * W

    xf = x_ref[0].astype(jnp.float32)                                     # (C, HW)

    # ---------------- channel attention ----------------
    pooled = jnp.sum(xf, axis=1, keepdims=True) * jnp.float32(1.0 / HW)   # (C, 1)
    # shared MLP as VPU broadcast-multiply + reduce (tiny; avoids transposes)
    hidden = jnp.sum(w1t_ref[...] * pooled, axis=0, keepdims=True)        # (1, Cr)
    hidden = jnp.maximum(hidden, 0.0)                                     # ReLU
    logits = jnp.sum(w2_ref[...] * hidden, axis=1, keepdims=True)         # (C, 1)
    # max_pool(avg_pool(x)) == avg_pool(x) for a 1x1 map -> both MLP branches
    # are identical -> sigmoid(2 * MLP(avgpool(x))).
    ca = jax.nn.sigmoid(2.0 * logits)                                     # (C, 1)

    x_ca = xf * ca                                                        # (C, HW)

    # ---------------- spatial attention ----------------
    avg_f = jnp.sum(x_ca, axis=0, keepdims=True) * jnp.float32(1.0 / C)   # (1, HW)
    max_f = jnp.max(x_ca, axis=0, keepdims=True)                          # (1, HW)

    # (1, HW) -> (H, W): per-row lane slices concatenated along sublanes
    # (explicit, layout-predictable; avoids a lane->sublane reshape).
    avg2d = jnp.concatenate(
        [avg_f[:, i * W:(i + 1) * W] for i in range(H)], axis=0)          # (H, W)
    max2d = jnp.concatenate(
        [max_f[:, i * W:(i + 1) * W] for i in range(H)], axis=0)          # (H, W)

    # Zero-padded halo via VMEM scratch; interior overwritten each grid step.
    pad_ref[...] = jnp.zeros_like(pad_ref)
    pad_ref[0, PAD:PAD + H, PAD:PAD + W] = avg2d
    pad_ref[1, PAD:PAD + H, PAD:PAD + W] = max2d

    # 7x7 conv, 2 in-channels -> 1 out-channel.  Hoist the lane (dj) shift out
    # of the inner loop (14 column loads total); di shifts are sublane slices;
    # two partial accumulators break the serial add chain.
    acc0 = jnp.zeros((H, W), jnp.float32)
    acc1 = jnp.zeros((H, W), jnp.float32)
    t = 0
    for m in range(2):                                   # 0 = avg map, 1 = max map
        for dj in range(KSIZE):
            col = pad_ref[m, :, dj:dj + W]               # (H+6, W) lane-shifted load
            for di in range(KSIZE):
                w = wsp_ref[m * KSIZE * KSIZE + di * KSIZE + dj]
                term = w * col[di:di + H, :]
                if t & 1:
                    acc1 = acc1 + term
                else:
                    acc0 = acc0 + term
                t += 1
    sa2d = jax.nn.sigmoid(acc0 + acc1 + b_ref[0])        # (H, W)

    # (H, W) -> (1, HW) lane concat, then one lane-dense output store.
    sa_flat = jnp.concatenate([sa2d[i:i + 1, :] for i in range(H)], axis=1)  # (1, HW)
    o_ref[0] = (x_ca * sa_flat).astype(o_ref.dtype)


def cbam_forward(x, w1, w2, w_spatial, b_spatial):
    """CBAM forward.

    x         : (N, C, H, W)    any float dtype (kept as-is for the HBM DMA)
    w1        : (C//ratio, C)   first 1x1 conv weight (no bias)
    w2        : (C, C//ratio)   second 1x1 conv weight (no bias)
    w_spatial : (1, 2, 7, 7)    spatial 7x7 conv weight
    b_spatial : (1,)            spatial conv bias
    returns   : (N, C, H, W) in x.dtype
    """
    N, C, H, W = x.shape
    HW = H * W
    Cr = w1.shape[0]

    x2 = x.reshape(N, C, HW)                           # contiguous view; lane-dense
    w1t = jnp.transpose(w1).astype(jnp.float32)        # (C, Cr)
    w2f = w2.astype(jnp.float32)                       # (C, Cr)
    wsp = w_spatial.reshape(-1).astype(jnp.float32)    # (98,)
    bsp = b_spatial.reshape(1).astype(jnp.float32)     # (1,)

    kernel = functools.partial(_cbam_kernel, H=H, W=W)

    grid_spec = pltpu.PrefetchScalarGridSpec(
        num_scalar_prefetch=0,
        grid=(N,),
        in_specs=[
            pl.BlockSpec((1, C, HW), lambda n: (n, 0, 0)),
            pl.BlockSpec((C, Cr), lambda n: (0, 0)),
            pl.BlockSpec((C, Cr), lambda n: (0, 0)),
            pl.BlockSpec(memory_space=pltpu.MemorySpace.SMEM),
            pl.BlockSpec(memory_space=pltpu.MemorySpace.SMEM),
        ],
        out_specs=pl.BlockSpec((1, C, HW), lambda n: (n, 0, 0)),
        scratch_shapes=[pltpu.VMEM((2, H + 2 * PAD, W + 2 * PAD), jnp.float32)],
    )

    out2 = pl.pallas_call(
        kernel,
        out_shape=jax.ShapeDtypeStruct((N, C, HW), x.dtype),
        grid_spec=grid_spec,
        compiler_params=pltpu.CompilerParams(
            dimension_semantics=("parallel",),
            vmem_limit_bytes=32 * 1024 * 1024,
        ),
    )(x2, w1t, w2f, wsp, bsp)

    return out2.reshape(N, C, H, W)


def cbam_reference(x, w1, w2, w_spatial, b_spatial):
    """Plain-JAX literal translation of the PyTorch CBAM forward."""
    # ChannelAttentionModule (max_pool acts on the already avg-pooled 1x1 map,
    # exactly as written in the PyTorch module).
    xp = jnp.mean(x, axis=(2, 3), keepdims=True)               # AdaptiveAvgPool2d(1)

    def shared_mlp(t):                                         # 1x1 convs, no bias
        h = jnp.einsum('rc,nchw->nrhw', w1, t)
        h = jnp.maximum(h, 0.0)
        return jnp.einsum('cr,nrhw->nchw', w2, h)

    avgout = shared_mlp(xp)
    maxout = shared_mlp(jnp.max(xp, axis=(2, 3), keepdims=True))  # MaxPool on 1x1
    ca = jax.nn.sigmoid(avgout + maxout)
    out1 = ca * x

    # SpatialAttentionModule
    avg = jnp.mean(out1, axis=1, keepdims=True)
    mx = jnp.max(out1, axis=1, keepdims=True)
    cat = jnp.concatenate([avg, mx], axis=1)                   # (N,2,H,W)
    conv = lax.conv_general_dilated(
        cat, w_spatial, window_strides=(1, 1),
        padding=((PAD, PAD), (PAD, PAD)),
        dimension_numbers=("NCHW", "OIHW", "NCHW"))
    sa = jax.nn.sigmoid(conv + b_spatial.reshape(1, 1, 1, 1))
    return sa * out1


if __name__ == "__main__":
    key = jax.random.PRNGKey(0)
    kx, k1, k2, kw, kb = jax.random.split(key, 5)

    N, C, H, W = 2, 16, 16, 16
    RATIO = 4
    Cr = C // RATIO

    x = jax.random.normal(kx, (N, C, H, W), dtype=jnp.float32)

    # Channel-attention 1x1-conv weights (no bias).
    bnd1 = 1.0 / (C ** 0.5)
    w1 = jax.random.uniform(k1, (Cr, C), jnp.float32, minval=-bnd1, maxval=bnd1)
    bnd2 = 1.0 / (Cr ** 0.5)
    w2 = jax.random.uniform(k2, (C, Cr), jnp.float32, minval=-bnd2, maxval=bnd2)

    # Spatial-attention 7x7 conv (2 -> 1 channels) weight + bias.
    fan_in = 2 * KSIZE * KSIZE
    bndw = 1.0 / (fan_in ** 0.5)
    w_spatial = jax.random.uniform(kw, (1, 2, KSIZE, KSIZE), jnp.float32,
                                   minval=-bndw, maxval=bndw)
    b_spatial = jax.random.uniform(kb, (1,), jnp.float32, minval=-bndw, maxval=bndw)

    out = cbam_forward(x, w1, w2, w_spatial, b_spatial)
    out = jax.block_until_ready(out)

    ref = cbam_reference(x, w1, w2, w_spatial, b_spatial)
    assert out.shape == (N, C, H, W)
    max_err = float(jnp.max(jnp.abs(out - ref)))
    assert jnp.allclose(out, ref, rtol=1e-4, atol=1e-4), max_err

    print("KERNEL_OK")
</pallas_src>

<mosaic_0001>
module attributes {stable_mosaic.version = 11 : i64} {
  func.func @_cbam_kernel(%arg0: i32, %arg1: memref<1x16x256xf32, #tpu.memory_space<vmem>>, %arg2: memref<16x4xf32, #tpu.memory_space<vmem>>, %arg3: memref<16x4xf32, #tpu.memory_space<vmem>>, %arg4: memref<98xf32, #tpu.memory_space<smem>>, %arg5: memref<1xf32, #tpu.memory_space<smem>>, %arg6: memref<1x16x256xf32, #tpu.memory_space<vmem>>, %arg7: memref<2x22x22xf32, #tpu.memory_space<vmem>>) attributes {dimension_semantics = [#tpu.dimension_semantics<parallel>], iteration_bounds = array<i64: 2>, scalar_prefetch = 0 : i64, scratch_operands = 1 : i64, tpu.core_type = #tpu.core_type<tc>, window_params = [{transform_indices = @transform_0, window_bounds = array<i64: 1, 16, 256>}, {pipeline_mode = #tpu.pipeline_mode<synchronous>, transform_indices = @transform_1, window_bounds = array<i64: 16, 4>}, {pipeline_mode = #tpu.pipeline_mode<synchronous>, transform_indices = @transform_2, window_bounds = array<i64: 16, 4>}, {transform_indices = @transform_3, window_bounds = array<i64: 98>}, {transform_indices = @transform_4, window_bounds = array<i64: 1>}, {transform_indices = @transform_5, window_bounds = array<i64: 1, 16, 256>}]} {
    %c0 = arith.constant 0 : index
    %c0_0 = arith.constant 0 : index
    %c0_1 = arith.constant 0 : index
    %0 = vector.load %arg1[%c0, %c0_0, %c0_1] : memref<1x16x256xf32, #tpu.memory_space<vmem>>, vector<1x16x256xf32>
    %1 = vector.shape_cast %0 : vector<1x16x256xf32> to vector<16x256xf32>
    %cst = arith.constant dense<0.000000e+00> : vector<16xf32>
    %2 = vector.multi_reduction <add>, %1, %cst [1] : vector<16x256xf32> to vector<16xf32>
    %3 = vector.shape_cast %2 : vector<16xf32> to vector<16x1xf32>
    %cst_2 = arith.constant 3.906250e-03 : f32
    %4 = vector.broadcast %cst_2 : f32 to vector<16x1xf32>
    %5 = arith.mulf %3, %4 : vector<16x1xf32>
    %c0_3 = arith.constant 0 : index
    %c0_4 = arith.constant 0 : index
    %6 = vector.load %arg2[%c0_3, %c0_4] : memref<16x4xf32, #tpu.memory_space<vmem>>, vector<16x4xf32>
    %7 = vector.broadcast %5 : vector<16x1xf32> to vector<16x4xf32>
    %8 = arith.mulf %6, %7 : vector<16x4xf32>
    %cst_5 = arith.constant dense<0.000000e+00> : vector<4xf32>
    %9 = vector.multi_reduction <add>, %8, %cst_5 [0] : vector<16x4xf32> to vector<4xf32>
    %10 = vector.shape_cast %9 : vector<4xf32> to vector<1x4xf32>
    %cst_6 = arith.constant 0.000000e+00 : f32
    %11 = vector.broadcast %cst_6 : f32 to vector<1x4xf32>
    %12 = arith.maximumf %10, %11 : vector<1x4xf32>
    %c0_7 = arith.constant 0 : index
    %c0_8 = arith.constant 0 : index
    %13 = vector.load %arg3[%c0_7, %c0_8] : memref<16x4xf32, #tpu.memory_space<vmem>>, vector<16x4xf32>
    %14 = vector.broadcast %12 : vector<1x4xf32> to vector<16x4xf32>
    %15 = arith.mulf %13, %14 : vector<16x4xf32>
    %cst_9 = arith.constant dense<0.000000e+00> : vector<16xf32>
    %16 = vector.multi_reduction <add>, %15, %cst_9 [1] : vector<16x4xf32> to vector<16xf32>
    %17 = vector.shape_cast %16 : vector<16xf32> to vector<16x1xf32>
    %cst_10 = arith.constant 2.000000e+00 : f32
    %18 = vector.broadcast %cst_10 : f32 to vector<16x1xf32>
    %19 = arith.mulf %18, %17 : vector<16x1xf32>
    %20 = arith.negf %19 : vector<16x1xf32>
    %21 = math.exp %20 : vector<16x1xf32>
    %cst_11 = arith.constant 1.000000e+00 : f32
    %22 = vector.broadcast %cst_11 : f32 to vector<16x1xf32>
    %23 = arith.addf %22, %21 : vector<16x1xf32>
    %24 = arith.divf %22, %23 : vector<16x1xf32>
    %25 = vector.broadcast %24 : vector<16x1xf32> to vector<16x256xf32>
    %26 = arith.mulf %1, %25 : vector<16x256xf32>
    %cst_12 = arith.constant dense<0.000000e+00> : vector<256xf32>
    %27 = vector.multi_reduction <add>, %26, %cst_12 [0] : vector<16x256xf32> to vector<256xf32>
    %28 = vector.shape_cast %27 : vector<256xf32> to vector<1x256xf32>
    %cst_13 = arith.constant 6.250000e-02 : f32
    %29 = vector.broadcast %cst_13 : f32 to vector<1x256xf32>
    %30 = arith.mulf %28, %29 : vector<1x256xf32>
    %cst_14 = arith.constant dense<0xFF800000> : vector<256xf32>
    %31 = vector.multi_reduction <maximumf>, %26, %cst_14 [0] : vector<16x256xf32> to vector<256xf32>
    %32 = vector.shape_cast %31 : vector<256xf32> to vector<1x256xf32>
    %33 = vector.extract_strided_slice %30 {offsets = [0, 0], sizes = [1, 16], strides = [1, 1]} : vector<1x256xf32> to vector<1x16xf32>
    %34 = vector.extract_strided_slice %30 {offsets = [0, 16], sizes = [1, 16], strides = [1, 1]} : vector<1x256xf32> to vector<1x16xf32>
    %35 = vector.extract_strided_slice %30 {offsets = [0, 32], sizes = [1, 16], strides = [1, 1]} : vector<1x256xf32> to vector<1x16xf32>
    %36 = vector.extract_strided_slice %30 {offsets = [0, 48], sizes = [1, 16], strides = [1, 1]} : vector<1x256xf32> to vector<1x16xf32>
    %37 = vector.extract_strided_slice %30 {offsets = [0, 64], sizes = [1, 16], strides = [1, 1]} : vector<1x256xf32> to vector<1x16xf32>
    %38 = vector.extract_strided_slice %30 {offsets = [0, 80], sizes = [1, 16], strides = [1, 1]} : vector<1x256xf32> to vector<1x16xf32>
    %39 = vector.extract_strided_slice %30 {offsets = [0, 96], sizes = [1, 16], strides = [1, 1]} : vector<1x256xf32> to vector<1x16xf32>
    %40 = vector.extract_strided_slice %30 {offsets = [0, 112], sizes = [1, 16], strides = [1, 1]} : vector<1x256xf32> to vector<1x16xf32>
    %41 = vector.extract_strided_slice %30 {offsets = [0, 128], sizes = [1, 16], strides = [1, 1]} : vector<1x256xf32> to vector<1x16xf32>
    %42 = vector.extract_strided_slice %30 {offsets = [0, 144], sizes = [1, 16], strides = [1, 1]} : vector<1x256xf32> to vector<1x16xf32>
    %43 = vector.extract_strided_slice %30 {offsets = [0, 160], sizes = [1, 16], strides = [1, 1]} : vector<1x256xf32> to vector<1x16xf32>
    %44 = vector.extract_strided_slice %30 {offsets = [0, 176], sizes = [1, 16], strides = [1, 1]} : vector<1x256xf32> to vector<1x16xf32>
    %45 = vector.extract_strided_slice %30 {offsets = [0, 192], sizes = [1, 16], strides = [1, 1]} : vector<1x256xf32> to vector<1x16xf32>
    %46 = vector.extract_strided_slice %30 {offsets = [0, 208], sizes = [1, 16], strides = [1, 1]} : vector<1x256xf32> to vector<1x16xf32>
    %47 = vector.extract_strided_slice %30 {offsets = [0, 224], sizes = [1, 16], strides = [1, 1]} : vector<1x256xf32> to vector<1x16xf32>
    %48 = vector.extract_strided_slice %30 {offsets = [0, 240], sizes = [1, 16], strides = [1, 1]} : vector<1x256xf32> to vector<1x16xf32>
    %49 = tpu.concatenate %33, %34, %35, %36, %37, %38, %39, %40, %41, %42, %43, %44, %45, %46, %47, %48 in 0 : vector<1x16xf32>, vector<1x16xf32>, vector<1x16xf32>, vector<1x16xf32>, vector<1x16xf32>, vector<1x16xf32>, vector<1x16xf32>, vector<1x16xf32>, vector<1x16xf32>, vector<1x16xf32>, vector<1x16xf32>, vector<1x16xf32>, vector<1x16xf32>, vector<1x16xf32>, vector<1x16xf32>, vector<1x16xf32> -> vector<16x16xf32>
    %50 = vector.extract_strided_slice %32 {offsets = [0, 0], sizes = [1, 16], strides = [1, 1]} : vector<1x256xf32> to vector<1x16xf32>
    %51 = vector.extract_strided_slice %32 {offsets = [0, 16], sizes = [1, 16], strides = [1, 1]} : vector<1x256xf32> to vector<1x16xf32>
    %52 = vector.extract_strided_slice %32 {offsets = [0, 32], sizes = [1, 16], strides = [1, 1]} : vector<1x256xf32> to vector<1x16xf32>
    %53 = vector.extract_strided_slice %32 {offsets = [0, 48], sizes = [1, 16], strides = [1, 1]} : vector<1x256xf32> to vector<1x16xf32>
    %54 = vector.extract_strided_slice %32 {offsets = [0, 64], sizes = [1, 16], strides = [1, 1]} : vector<1x256xf32> to vector<1x16xf32>
    %55 = vector.extract_strided_slice %32 {offsets = [0, 80], sizes = [1, 16], strides = [1, 1]} : vector<1x256xf32> to vector<1x16xf32>
    %56 = vector.extract_strided_slice %32 {offsets = [0, 96], sizes = [1, 16], strides = [1, 1]} : vector<1x256xf32> to vector<1x16xf32>
    %57 = vector.extract_strided_slice %32 {offsets = [0, 112], sizes = [1, 16], strides = [1, 1]} : vector<1x256xf32> to vector<1x16xf32>
    %58 = vector.extract_strided_slice %32 {offsets = [0, 128], sizes = [1, 16], strides = [1, 1]} : vector<1x256xf32> to vector<1x16xf32>
    %59 = vector.extract_strided_slice %32 {offsets = [0, 144], sizes = [1, 16], strides = [1, 1]} : vector<1x256xf32> to vector<1x16xf32>
    %60 = vector.extract_strided_slice %32 {offsets = [0, 160], sizes = [1, 16], strides = [1, 1]} : vector<1x256xf32> to vector<1x16xf32>
    %61 = vector.extract_strided_slice %32 {offsets = [0, 176], sizes = [1, 16], strides = [1, 1]} : vector<1x256xf32> to vector<1x16xf32>
    %62 = vector.extract_strided_slice %32 {offsets = [0, 192], sizes = [1, 16], strides = [1, 1]} : vector<1x256xf32> to vector<1x16xf32>
    %63 = vector.extract_strided_slice %32 {offsets = [0, 208], sizes = [1, 16], strides = [1, 1]} : vector<1x256xf32> to vector<1x16xf32>
    %64 = vector.extract_strided_slice %32 {offsets = [0, 224], sizes = [1, 16], strides = [1, 1]} : vector<1x256xf32> to vector<1x16xf32>
    %65 = vector.extract_strided_slice %32 {offsets = [0, 240], sizes = [1, 16], strides = [1, 1]} : vector<1x256xf32> to vector<1x16xf32>
    %66 = tpu.concatenate %50, %51, %52, %53, %54, %55, %56, %57, %58, %59, %60, %61, %62, %63, %64, %65 in 0 : vector<1x16xf32>, vector<1x16xf32>, vector<1x16xf32>, vector<1x16xf32>, vector<1x16xf32>, vector<1x16xf32>, vector<1x16xf32>, vector<1x16xf32>, vector<1x16xf32>, vector<1x16xf32>, vector<1x16xf32>, vector<1x16xf32>, vector<1x16xf32>, vector<1x16xf32>, vector<1x16xf32>, vector<1x16xf32> -> vector<16x16xf32>
    %cst_15 = arith.constant 0.000000e+00 : f32
    %67 = vector.broadcast %cst_15 : f32 to vector<2x22x22xf32>
    %c0_16 = arith.constant 0 : index
    %c0_17 = arith.constant 0 : index
    %c0_18 = arith.constant 0 : index
    %68 = vector.load %arg7[%c0_16, %c0_17, %c0_18] : memref<2x22x22xf32, #tpu.memory_space<vmem>>, vector<2x22x22xf32>
    tpu.vector_store %arg7[%c0_16, %c0_17, %c0_18], %67 {strides = array<i32>} : memref<2x22x22xf32, #tpu.memory_space<vmem>>, vector<2x22x22xf32>,
    %c0_19 = arith.constant 0 : index
    %c3 = arith.constant 3 : index
    %c3_20 = arith.constant 3 : index
    %69 = vector.load %arg7[%c0_19, %c3, %c3_20] : memref<2x22x22xf32, #tpu.memory_space<vmem>>, vector<1x16x16xf32>
    %70 = vector.shape_cast %69 : vector<1x16x16xf32> to vector<16x16xf32>
    %71 = vector.shape_cast %49 : vector<16x16xf32> to vector<1x16x16xf32>
    tpu.vector_store %arg7[%c0_19, %c3, %c3_20], %71 {strides = array<i32>} : memref<2x22x22xf32, #tpu.memory_space<vmem>>, vector<1x16x16xf32>,
    %c1 = arith.constant 1 : index
    %c3_21 = arith.constant 3 : index
    %c3_22 = arith.constant 3 : index
    %72 = vector.load %arg7[%c1, %c3_21, %c3_22] : memref<2x22x22xf32, #tpu.memory_space<vmem>>, vector<1x16x16xf32>
    %73 = vector.shape_cast %72 : vector<1x16x16xf32> to vector<16x16xf32>
    %74 = vector.shape_cast %66 : vector<16x16xf32> to vector<1x16x16xf32>
    tpu.vector_store %arg7[%c1, %c3_21, %c3_22], %74 {strides = array<i32>} : memref<2x22x22xf32, #tpu.memory_space<vmem>>, vector<1x16x16xf32>,
    %cst_23 = arith.constant 0.000000e+00 : f32
    %75 = vector.broadcast %cst_23 : f32 to vector<16x16xf32>
    %cst_24 = arith.constant 0.000000e+00 : f32
    %76 = vector.broadcast %cst_24 : f32 to vector<16x16xf32>
    %c0_25 = arith.constant 0 : index
    %c0_26 = arith.constant 0 : index
    %c0_27 = arith.constant 0 : index
    %77 = vector.load %arg7[%c0_25, %c0_26, %c0_27] : memref<2x22x22xf32, #tpu.memory_space<vmem>>, vector<1x22x16xf32>
    %78 = vector.shape_cast %77 : vector<1x22x16xf32> to vector<22x16xf32>
    %c0_28 = arith.constant 0 : index
    %79 = memref.load %arg4[%c0_28] : memref<98xf32, #tpu.memory_space<smem>>
    %80 = vector.extract_strided_slice %78 {offsets = [0, 0], sizes = [16, 16], strides = [1, 1]} : vector<22x16xf32> to vector<16x16xf32>
    %81 = vector.broadcast %79 : f32 to vector<16x16xf32>
    %82 = arith.mulf %81, %80 : vector<16x16xf32>
    %83 = arith.addf %75, %82 : vector<16x16xf32>
    %c7 = arith.constant 7 : index
    %84 = memref.load %arg4[%c7] : memref<98xf32, #tpu.memory_space<smem>>
    %85 = vector.extract_strided_slice %78 {offsets = [1, 0], sizes = [16, 16], strides = [1, 1]} : vector<22x16xf32> to vector<16x16xf32>
    %86 = vector.broadcast %84 : f32 to vector<16x16xf32>
    %87 = arith.mulf %86, %85 : vector<16x16xf32>
    %88 = arith.addf %76, %87 : vector<16x16xf32>
    %c14 = arith.constant 14 : index
    %89 = memref.load %arg4[%c14] : memref<98xf32, #tpu.memory_space<smem>>
    %90 = vector.extract_strided_slice %78 {offsets = [2, 0], sizes = [16, 16], strides = [1, 1]} : vector<22x16xf32> to vector<16x16xf32>
    %91 = vector.broadcast %89 : f32 to vector<16x16xf32>
    %92 = arith.mulf %91, %90 : vector<16x16xf32>
    %93 = arith.addf %83, %92 : vector<16x16xf32>
    %c21 = arith.constant 21 : index
    %94 = memref.load %arg4[%c21] : memref<98xf32, #tpu.memory_space<smem>>
    %95 = vector.extract_strided_slice %78 {offsets = [3, 0], sizes = [16, 16], strides = [1, 1]} : vector<22x16xf32> to vector<16x16xf32>
    %96 = vector.broadcast %94 : f32 to vector<16x16xf32>
    %97 = arith.mulf %96, %95 : vector<16x16xf32>
    %98 = arith.addf %88, %97 : vector<16x16xf32>
    %c28 = arith.constant 28 : index
    %99 = memref.load %arg4[%c28] : memref<98xf32, #tpu.memory_space<smem>>
    %100 = vector.extract_strided_slice %78 {offsets = [4, 0], sizes = [16, 16], strides = [1, 1]} : vector<22x16xf32> to vector<16x16xf32>
    %101 = vector.broadcast %99 : f32 to vector<16x16xf32>
    %102 = arith.mulf %101, %100 : vector<16x16xf32>
    %103 = arith.addf %93, %102 : vector<16x16xf32>
    %c35 = arith.constant 35 : index
    %104 = memref.load %arg4[%c35] : memref<98xf32, #tpu.memory_space<smem>>
    %105 = vector.extract_strided_slice %78 {offsets = [5, 0], sizes = [16, 16], strides = [1, 1]} : vector<22x16xf32> to vector<16x16xf32>
    %106 = vector.broadcast %104 : f32 to vector<16x16xf32>
    %107 = arith.mulf %106, %105 : vector<16x16xf32>
    %108 = arith.addf %98, %107 : vector<16x16xf32>
    %c42 = arith.constant 42 : index
    %109 = memref.load %arg4[%c42] : memref<98xf32, #tpu.memory_space<smem>>
    %110 = vector.extract_strided_slice %78 {offsets = [6, 0], sizes = [16, 16], strides = [1, 1]} : vector<22x16xf32> to vector<16x16xf32>
    %111 = vector.broadcast %109 : f32 to vector<16x16xf32>
    %112 = arith.mulf %111, %110 : vector<16x16xf32>
    %113 = arith.addf %103, %112 : vector<16x16xf32>
    %c0_29 = arith.constant 0 : index
    %c0_30 = arith.constant 0 : index
    %c1_31 = arith.constant 1 : index
    %114 = vector.load %arg7[%c0_29, %c0_30, %c1_31] : memref<2x22x22xf32, #tpu.memory_space<vmem>>, vector<1x22x16xf32>
    %115 = vector.shape_cast %114 : vector<1x22x16xf32> to vector<22x16xf32>
    %c1_32 = arith.constant 1 : index
    %116 = memref.load %arg4[%c1_32] : memref<98xf32, #tpu.memory_space<smem>>
    %117 = vector.extract_strided_slice %115 {offsets = [0, 0], sizes = [16, 16], strides = [1, 1]} : vector<22x16xf32> to vector<16x16xf32>
    %118 = vector.broadcast %116 : f32 to vector<16x16xf32>
    %119 = arith.mulf %118, %117 : vector<16x16xf32>
    %120 = arith.addf %108, %119 : vector<16x16xf32>
    %c8 = arith.constant 8 : index
    %121 = memref.load %arg4[%c8] : memref<98xf32, #tpu.memory_space<smem>>
    %122 = vector.extract_strided_slice %115 {offsets = [1, 0], sizes = [16, 16], strides = [1, 1]} : vector<22x16xf32> to vector<16x16xf32>
    %123 = vector.broadcast %121 : f32 to vector<16x16xf32>
    %124 = arith.mulf %123, %122 : vector<16x16xf32>
    %125 = arith.addf %113, %124 : vector<16x16xf32>
    %c15 = arith.constant 15 : index
    %126 = memref.load %arg4[%c15] : memref<98xf32, #tpu.memory_space<smem>>
    %127 = vector.extract_strided_slice %115 {offsets = [2, 0], sizes = [16, 16], strides = [1, 1]} : vector<22x16xf32> to vector<16x16xf32>
    %128 = vector.broadcast %126 : f32 to vector<16x16xf32>
    %129 = arith.mulf %128, %127 : vector<16x16xf32>
    %130 = arith.addf %120, %129 : vector<16x16xf32>
    %c22 = arith.constant 22 : index
    %131 = memref.load %arg4[%c22] : memref<98xf32, #tpu.memory_space<smem>>
    %132 = vector.extract_strided_slice %115 {offsets = [3, 0], sizes = [16, 16], strides = [1, 1]} : vector<22x16xf32> to vector<16x16xf32>
    %133 = vector.broadcast %131 : f32 to vector<16x16xf32>
    %134 = arith.mulf %133, %132 : vector<16x16xf32>
    %135 = arith.addf %125, %134 : vector<16x16xf32>
    %c29 = arith.constant 29 : index
    %136 = memref.load %arg4[%c29] : memref<98xf32, #tpu.memory_space<smem>>
    %137 = vector.extract_strided_slice %115 {offsets = [4, 0], sizes = [16, 16], strides = [1, 1]} : vector<22x16xf32> to vector<16x16xf32>
    %138 = vector.broadcast %136 : f32 to vector<16x16xf32>
    %139 = arith.mulf %138, %137 : vector<16x16xf32>
    %140 = arith.addf %130, %139 : vector<16x16xf32>
    %c36 = arith.constant 36 : index
    %141 = memref.load %arg4[%c36] : memref<98xf32, #tpu.memory_space<smem>>
    %142 = vector.extract_strided_slice %115 {offsets = [5, 0], sizes = [16, 16], strides = [1, 1]} : vector<22x16xf32> to vector<16x16xf32>
    %143 = vector.broadcast %141 : f32 to vector<16x16xf32>
    %144 = arith.mulf %143, %142 : vector<16x16xf32>
    %145 = arith.addf %135, %144 : vector<16x16xf32>
    %c43 = arith.constant 43 : index
    %146 = memref.load %arg4[%c43] : memref<98xf32, #tpu.memory_space<smem>>
    %147 = vector.extract_strided_slice %115 {offsets = [6, 0], sizes = [16, 16], strides = [1, 1]} : vector<22x16xf32> to vector<16x16xf32>
    %148 = vector.broadcast %146 : f32 to vector<16x16xf32>
    %149 = arith.mulf %148, %147 : vector<16x16xf32>
    %150 = arith.addf %140, %149 : vector<16x16xf32>
    %c0_33 = arith.constant 0 : index
    %c0_34 = arith.constant 0 : index
    %c2 = arith.constant 2 : index
    %151 = vector.load %arg7[%c0_33, %c0_34, %c2] : memref<2x22x22xf32, #tpu.memory_space<vmem>>, vector<1x22x16xf32>
    %152 = vector.shape_cast %151 : vector<1x22x16xf32> to vector<22x16xf32>
    %c2_35 = arith.constant 2 : index
    %153 = memref.load %arg4[%c2_35] : memref<98xf32, #tpu.memory_space<smem>>
    %154 = vector.extract_strided_slice %152 {offsets = [0, 0], sizes = [16, 16], strides = [1, 1]} : vector<22x16xf32> to vector<16x16xf32>
    %155 = vector.broadcast %153 : f32 to vector<16x16xf32>
    %156 = arith.mulf %155, %154 : vector<16x16xf32>
    %157 = arith.addf %145, %156 : vector<16x16xf32>
    %c9 = arith.constant 9 : index
    %158 = memref.load %arg4[%c9] : memref<98xf32, #tpu.memory_space<smem>>
    %159 = vector.extract_strided_slice %152 {offsets = [1, 0], sizes = [16, 16], strides = [1, 1]} : vector<22x16xf32> to vector<16x16xf32>
    %160 = vector.broadcast %158 : f32 to vector<16x16xf32>
    %161 = arith.mulf %160, %159 : vector<16x16xf32>
    %162 = arith.addf %150, %161 : vector<16x16xf32>
    %c16 = arith.constant 16 : index
    %163 = memref.load %arg4[%c16] : memref<98xf32, #tpu.memory_space<smem>>
    %164 = vector.extract_strided_slice %152 {offsets = [2, 0], sizes = [16, 16], strides = [1, 1]} : vector<22x16xf32> to vector<16x16xf32>
    %165 = vector.broadcast %163 : f32 to vector<16x16xf32>
    %166 = arith.mulf %165, %164 : vector<16x16xf32>
    %167 = arith.addf %157, %166 : vector<16x16xf32>
    %c23 = arith.constant 23 : index
    %168 = memref.load %arg4[%c23] : memref<98xf32, #tpu.memory_space<smem>>
    %169 = vector.extract_strided_slice %152 {offsets = [3, 0], sizes = [16, 16], strides = [1, 1]} : vector<22x16xf32> to vector<16x16xf32>
    %170 = vector.broadcast %168 : f32 to vector<16x16xf32>
    %171 = arith.mulf %170, %169 : vector<16x16xf32>
    %172 = arith.addf %162, %171 : vector<16x16xf32>
    %c30 = arith.constant 30 : index
    %173 = memref.load %arg4[%c30] : memref<98xf32, #tpu.memory_space<smem>>
    %174 = vector.extract_strided_slice %152 {offsets = [4, 0], sizes = [16, 16], strides = [1, 1]} : vector<22x16xf32> to vector<16x16xf32>
    %175 = vector.broadcast %173 : f32 to vector<16x16xf32>
    %176 = arith.mulf %175, %174 : vector<16x16xf32>
    %177 = arith.addf %167, %176 : vector<16x16xf32>
    %c37 = arith.constant 37 : index
    %178 = memref.load %arg4[%c37] : memref<98xf32, #tpu.memory_space<smem>>
    %179 = vector.extract_strided_slice %152 {offsets = [5, 0], sizes = [16, 16], strides = [1, 1]} : vector<22x16xf32> to vector<16x16xf32>
    %180 = vector.broadcast %178 : f32 to vector<16x16xf32>
    %181 = arith.mulf %180, %179 : vector<16x16xf32>
    %182 = arith.addf %172, %181 : vector<16x16xf32>
    %c44 = arith.constant 44 : index
    %183 = memref.load %arg4[%c44] : memref<98xf32, #tpu.memory_space<smem>>
    %184 = vector.extract_strided_slice %152 {offsets = [6, 0], sizes = [16, 16], strides = [1, 1]} : vector<22x16xf32> to vector<16x16xf32>
    %185 = vector.broadcast %183 : f32 to vector<16x16xf32>
    %186 = arith.mulf %185, %184 : vector<16x16xf32>
    %187 = arith.addf %177, %186 : vector<16x16xf32>
    %c0_36 = arith.constant 0 : index
    %c0_37 = arith.constant 0 : index
    %c3_38 = arith.constant 3 : index
    %188 = vector.load %arg7[%c0_36, %c0_37, %c3_38] : memref<2x22x22xf32, #tpu.memory_space<vmem>>, vector<1x22x16xf32>
    %189 = vector.shape_cast %188 : vector<1x22x16xf32> to vector<22x16xf32>
    %c3_39 = arith.constant 3 : index
    %190 = memref.load %arg4[%c3_39] : memref<98xf32, #tpu.memory_space<smem>>
    %191 = vector.extract_strided_slice %189 {offsets = [0, 0], sizes = [16, 16], strides = [1, 1]} : vector<22x16xf32> to vector<16x16xf32>
    %192 = vector.broadcast %190 : f32 to vector<16x16xf32>
    %193 = arith.mulf %192, %191 : vector<16x16xf32>
    %194 = arith.addf %182, %193 : vector<16x16xf32>
    %c10 = arith.constant 10 : index
    %195 = memref.load %arg4[%c10] : memref<98xf32, #tpu.memory_space<smem>>
    %196 = vector.extract_strided_slice %189 {offsets = [1, 0], sizes = [16, 16], strides = [1, 1]} : vector<22x16xf32> to vector<16x16xf32>
    %197 = vector.broadcast %195 : f32 to vector<16x16xf32>
    %198 = arith.mulf %197, %196 : vector<16x16xf32>
    %199 = arith.addf %187, %198 : vector<16x16xf32>
    %c17 = arith.constant 17 : index
    %200 = memref.load %arg4[%c17] : memref<98xf32, #tpu.memory_space<smem>>
    %201 = vector.extract_strided_slice %189 {offsets = [2, 0], sizes = [16, 16], strides = [1, 1]} : vector<22x16xf32> to vector<16x16xf32>
    %202 = vector.broadcast %200 : f32 to vector<16x16xf32>
    %203 = arith.mulf %202, %201 : vector<16x16xf32>
    %204 = arith.addf %194, %203 : vector<16x16xf32>
    %c24 = arith.constant 24 : index
    %205 = memref.load %arg4[%c24] : memref<98xf32, #tpu.memory_space<smem>>
    %206 = vector.extract_strided_slice %189 {offsets = [3, 0], sizes = [16, 16], strides = [1, 1]} : vector<22x16xf32> to vector<16x16xf32>
    %207 = vector.broadcast %205 : f32 to vector<16x16xf32>
    %208 = arith.mulf %207, %206 : vector<16x16xf32>
    %209 = arith.addf %199, %208 : vector<16x16xf32>
    %c31 = arith.constant 31 : index
    %210 = memref.load %arg4[%c31] : memref<98xf32, #tpu.memory_space<smem>>
    %211 = vector.extract_strided_slice %189 {offsets = [4, 0], sizes = [16, 16], strides = [1, 1]} : vector<22x16xf32> to vector<16x16xf32>
    %212 = vector.broadcast %210 : f32 to vector<16x16xf32>
    %213 = arith.mulf %212, %211 : vector<16x16xf32>
    %214 = arith.addf %204, %213 : vector<16x16xf32>
    %c38 = arith.constant 38 : index
    %215 = memref.load %arg4[%c38] : memref<98xf32, #tpu.memory_space<smem>>
    %216 = vector.extract_strided_slice %189 {offsets = [5, 0], sizes = [16, 16], strides = [1, 1]} : vector<22x16xf32> to vector<16x16xf32>
    %217 = vector.broadcast %215 : f32 to vector<16x16xf32>
    %218 = arith.mulf %217, %216 : vector<16x16xf32>
    %219 = arith.addf %209, %218 : vector<16x16xf32>
    %c45 = arith.constant 45 : index
    %220 = memref.load %arg4[%c45] : memref<98xf32, #tpu.memory_space<smem>>
    %221 = vector.extract_strided_slice %189 {offsets = [6, 0], sizes = [16, 16], strides = [1, 1]} : vector<22x16xf32> to vector<16x16xf32>
    %222 = vector.broadcast %220 : f32 to vector<16x16xf32>
    %223 = arith.mulf %222, %221 : vector<16x16xf32>
    %224 = arith.addf %214, %223 : vector<16x16xf32>
    %c0_40 = arith.constant 0 : index
    %c0_41 = arith.constant 0 : index
    %c4 = arith.constant 4 : index
    %225 = vector.load %arg7[%c0_40, %c0_41, %c4] : memref<2x22x22xf32, #tpu.memory_space<vmem>>, vector<1x22x16xf32>
    %226 = vector.shape_cast %225 : vector<1x22x16xf32> to vector<22x16xf32>
    %c4_42 = arith.constant 4 : index
    %227 = memref.load %arg4[%c4_42] : memref<98xf32, #tpu.memory_space<smem>>
    %228 = vector.extract_strided_slice %226 {offsets = [0, 0], sizes = [16, 16], strides = [1, 1]} : vector<22x16xf32> to vector<16x16xf32>
    %229 = vector.broadcast %227 : f32 to vector<16x16xf32>
    %230 = arith.mulf %229, %228 : vector<16x16xf32>
    %231 = arith.addf %219, %230 : vector<16x16xf32>
    %c11 = arith.constant 11 : index
    %232 = memref.load %arg4[%c11] : memref<98xf32, #tpu.memory_space<smem>>
    %233 = vector.extract_strided_slice %226 {offsets = [1, 0], sizes = [16, 16], strides = [1, 1]} : vector<22x16xf32> to vector<16x16xf32>
    %234 = vector.broadcast %232 : f32 to vector<16x16xf32>
    %235 = arith.mulf %234, %233 : vector<16x16xf32>
    %236 = arith.addf %224, %235 : vector<16x16xf32>
    %c18 = arith.constant 18 : index
    %237 = memref.load %arg4[%c18] : memref<98xf32, #tpu.memory_space<smem>>
    %238 = vector.extract_strided_slice %226 {offsets = [2, 0], sizes = [16, 16], strides = [1, 1]} : vector<22x16xf32> to vector<16x16xf32>
    %239 = vector.broadcast %237 : f32 to vector<16x16xf32>
    %240 = arith.mulf %239, %238 : vector<16x16xf32>
    %241 = arith.addf %231, %240 : vector<16x16xf32>
    %c25 = arith.constant 25 : index
    %242 = memref.load %arg4[%c25] : memref<98xf32, #tpu.memory_space<smem>>
    %243 = vector.extract_strided_slice %226 {offsets = [3, 0], sizes = [16, 16], strides = [1, 1]} : vector<22x16xf32> to vector<16x16xf32>
    %244 = vector.broadcast %242 : f32 to vector<16x16xf32>
    %245 = arith.mulf %244, %243 : vector<16x16xf32>
    %246 = arith.addf %236, %245 : vector<16x16xf32>
    %c32 = arith.constant 32 : index
    %247 = memref.load %arg4[%c32] : memref<98xf32, #tpu.memory_space<smem>>
    %248 = vector.extract_strided_slice %226 {offsets = [4, 0], sizes = [16, 16], strides = [1, 1]} : vector<22x16xf32> to vector<16x16xf32>
    %249 = vector.broadcast %247 : f32 to vector<16x16xf32>
    %250 = arith.mulf %249, %248 : vector<16x16xf32>
    %251 = arith.addf %241, %250 : vector<16x16xf32>
    %c39 = arith.constant 39 : index
    %252 = memref.load %arg4[%c39] : memref<98xf32, #tpu.memory_space<smem>>
    %253 = vector.extract_strided_slice %226 {offsets = [5, 0], sizes = [16, 16], strides = [1, 1]} : vector<22x16xf32> to vector<16x16xf32>
    %254 = vector.broadcast %252 : f32 to vector<16x16xf32>
    %255 = arith.mulf %254, %253 : vector<16x16xf32>
    %256 = arith.addf %246, %255 : vector<16x16xf32>
    %c46 = arith.constant 46 : index
    %257 = memref.load %arg4[%c46] : memref<98xf32, #tpu.memory_space<smem>>
    %258 = vector.extract_strided_slice %226 {offsets = [6, 0], sizes = [16, 16], strides = [1, 1]} : vector<22x16xf32> to vector<16x16xf32>
    %259 = vector.broadcast %257 : f32 to vector<16x16xf32>
    %260 = arith.mulf %259, %258 : vector<16x16xf32>
    %261 = arith.addf %251, %260 : vector<16x16xf32>
    %c0_43 = arith.constant 0 : index
    %c0_44 = arith.constant 0 : index
    %c5 = arith.constant 5 : index
    %262 = vector.load %arg7[%c0_43, %c0_44, %c5] : memref<2x22x22xf32, #tpu.memory_space<vmem>>, vector<1x22x16xf32>
    %263 = vector.shape_cast %262 : vector<1x22x16xf32> to vector<22x16xf32>
    %c5_45 = arith.constant 5 : index
    %264 = memref.load %arg4[%c5_45] : memref<98xf32, #tpu.memory_space<smem>>
    %265 = vector.extract_strided_slice %263 {offsets = [0, 0], sizes = [16, 16], strides = [1, 1]} : vector<22x16xf32> to vector<16x16xf32>
    %266 = vector.broadcast %264 : f32 to vector<16x16xf32>
    %267 = arith.mulf %266, %265 : vector<16x16xf32>
    %268 = arith.addf %256, %267 : vector<16x16xf32>
    %c12 = arith.constant 12 : index
    %269 = memref.load %arg4[%c12] : memref<98xf32, #tpu.memory_space<smem>>
    %270 = vector.extract_strided_slice %263 {offsets = [1, 0], sizes = [16, 16], strides = [1, 1]} : vector<22x16xf32> to vector<16x16xf32>
    %271 = vector.broadcast %269 : f32 to vector<16x16xf32>
    %272 = arith.mulf %271, %270 : vector<16x16xf32>
    %273 = arith.addf %261, %272 : vector<16x16xf32>
    %c19 = arith.constant 19 : index
    %274 = memref.load %arg4[%c19] : memref<98xf32, #tpu.memory_space<smem>>
    %275 = vector.extract_strided_slice %263 {offsets = [2, 0], sizes = [16, 16], strides = [1, 1]} : vector<22x16xf32> to vector<16x16xf32>
    %276 = vector.broadcast %274 : f32 to vector<16x16xf32>
    %277 = arith.mulf %276, %275 : vector<16x16xf32>
    %278 = arith.addf %268, %277 : vector<16x16xf32>
    %c26 = arith.constant 26 : index
    %279 = memref.load %arg4[%c26] : memref<98xf32, #tpu.memory_space<smem>>
    %280 = vector.extract_strided_slice %263 {offsets = [3, 0], sizes = [16, 16], strides = [1, 1]} : vector<22x16xf32> to vector<16x16xf32>
    %281 = vector.broadcast %279 : f32 to vector<16x16xf32>
    %282 = arith.mulf %281, %280 : vector<16x16xf32>
    %283 = arith.addf %273, %282 : vector<16x16xf32>
    %c33 = arith.constant 33 : index
    %284 = memref.load %arg4[%c33] : memref<98xf32, #tpu.memory_space<smem>>
    %285 = vector.extract_strided_slice %263 {offsets = [4, 0], sizes = [16, 16], strides = [1, 1]} : vector<22x16xf32> to vector<16x16xf32>
    %286 = vector.broadcast %284 : f32 to vector<16x16xf32>
    %287 = arith.mulf %286, %285 : vector<16x16xf32>
    %288 = arith.addf %278, %287 : vector<16x16xf32>
    %c40 = arith.constant 40 : index
    %289 = memref.load %arg4[%c40] : memref<98xf32, #tpu.memory_space<smem>>
    %290 = vector.extract_strided_slice %263 {offsets = [5, 0], sizes = [16, 16], strides = [1, 1]} : vector<22x16xf32> to vector<16x16xf32>
    %291 = vector.broadcast %289 : f32 to vector<16x16xf32>
    %292 = arith.mulf %291, %290 : vector<16x16xf32>
    %293 = arith.addf %283, %292 : vector<16x16xf32>
    %c47 = arith.constant 47 : index
    %294 = memref.load %arg4[%c47] : memref<98xf32, #tpu.memory_space<smem>>
    %295 = vector.extract_strided_slice %263 {offsets = [6, 0], sizes = [16, 16], strides = [1, 1]} : vector<22x16xf32> to vector<16x16xf32>
    %296 = vector.broadcast %294 : f32 to vector<16x16xf32>
    %297 = arith.mulf %296, %295 : vector<16x16xf32>
    %298 = arith.addf %288, %297 : vector<16x16xf32>
    %c0_46 = arith.constant 0 : index
    %c0_47 = arith.constant 0 : index
    %c6 = arith.constant 6 : index
    %299 = vector.load %arg7[%c0_46, %c0_47, %c6] : memref<2x22x22xf32, #tpu.memory_space<vmem>>, vector<1x22x16xf32>
    %300 = vector.shape_cast %299 : vector<1x22x16xf32> to vector<22x16xf32>
    %c6_48 = arith.constant 6 : index
    %301 = memref.load %arg4[%c6_48] : memref<98xf32, #tpu.memory_space<smem>>
    %302 = vector.extract_strided_slice %300 {offsets = [0, 0], sizes = [16, 16], strides = [1, 1]} : vector<22x16xf32> to vector<16x16xf32>
    %303 = vector.broadcast %301 : f32 to vector<16x16xf32>
    %304 = arith.mulf %303, %302 : vector<16x16xf32>
    %305 = arith.addf %293, %304 : vector<16x16xf32>
    %c13 = arith.constant 13 : index
    %306 = memref.load %arg4[%c13] : memref<98xf32, #tpu.memory_space<smem>>
    %307 = vector.extract_strided_slice %300 {offsets = [1, 0], sizes = [16, 16], strides = [1, 1]} : vector<22x16xf32> to vector<16x16xf32>
    %308 = vector.broadcast %306 : f32 to vector<16x16xf32>
    %309 = arith.mulf %308, %307 : vector<16x16xf32>
    %310 = arith.addf %298, %309 : vector<16x16xf32>
    %c20 = arith.constant 20 : index
    %311 = memref.load %arg4[%c20] : memref<98xf32, #tpu.memory_space<smem>>
    %312 = vector.extract_strided_slice %300 {offsets = [2, 0], sizes = [16, 16], strides = [1, 1]} : vector<22x16xf32> to vector<16x16xf32>
    %313 = vector.broadcast %311 : f32 to vector<16x16xf32>
    %314 = arith.mulf %313, %312 : vector<16x16xf32>
    %315 = arith.addf %305, %314 : vector<16x16xf32>
    %c27 = arith.constant 27 : index
    %316 = memref.load %arg4[%c27] : memref<98xf32, #tpu.memory_space<smem>>
    %317 = vector.extract_strided_slice %300 {offsets = [3, 0], sizes = [16, 16], strides = [1, 1]} : vector<22x16xf32> to vector<16x16xf32>
    %318 = vector.broadcast %316 : f32 to vector<16x16xf32>
    %319 = arith.mulf %318, %317 : vector<16x16xf32>
    %320 = arith.addf %310, %319 : vector<16x16xf32>
    %c34 = arith.constant 34 : index
    %321 = memref.load %arg4[%c34] : memref<98xf32, #tpu.memory_space<smem>>
    %322 = vector.extract_strided_slice %300 {offsets = [4, 0], sizes = [16, 16], strides = [1, 1]} : vector<22x16xf32> to vector<16x16xf32>
    %323 = vector.broadcast %321 : f32 to vector<16x16xf32>
    %324 = arith.mulf %323, %322 : vector<16x16xf32>
    %325 = arith.addf %315, %324 : vector<16x16xf32>
    %c41 = arith.constant 41 : index
    %326 = memref.load %arg4[%c41] : memref<98xf32, #tpu.memory_space<smem>>
    %327 = vector.extract_strided_slice %300 {offsets = [5, 0], sizes = [16, 16], strides = [1, 1]} : vector<22x16xf32> to vector<16x16xf32>
    %328 = vector.broadcast %326 : f32 to vector<16x16xf32>
    %329 = arith.mulf %328, %327 : vector<16x16xf32>
    %330 = arith.addf %320, %329 : vector<16x16xf32>
    %c48 = arith.constant 48 : index
    %331 = memref.load %arg4[%c48] : memref<98xf32, #tpu.memory_space<smem>>
    %332 = vector.extract_strided_slice %300 {offsets = [6, 0], sizes = [16, 16], strides = [1, 1]} : vector<22x16xf32> to vector<16x16xf32>
    %333 = vector.broadcast %331 : f32 to vector<16x16xf32>
    %334 = arith.mulf %333, %332 : vector<16x16xf32>
    %335 = arith.addf %325, %334 : vector<16x16xf32>
    %c1_49 = arith.constant 1 : index
    %c0_50 = arith.constant 0 : index
    %c0_51 = arith.constant 0 : index
    %336 = vector.load %arg7[%c1_49, %c0_50, %c0_51] : memref<2x22x22xf32, #tpu.memory_space<vmem>>, vector<1x22x16xf32>
    %337 = vector.shape_cast %336 : vector<1x22x16xf32> to vector<22x16xf32>
    %c49 = arith.constant 49 : index
    %338 = memref.load %arg4[%c49] : memref<98xf32, #tpu.memory_space<smem>>
    %339 = vector.extract_strided_slice %337 {offsets = [0, 0], sizes = [16, 16], strides = [1, 1]} : vector<22x16xf32> to vector<16x16xf32>
    %340 = vector.broadcast %338 : f32 to vector<16x16xf32>
    %341 = arith.mulf %340, %339 : vector<16x16xf32>
    %342 = arith.addf %330, %341 : vector<16x16xf32>
    %c56 = arith.constant 56 : index
    %343 = memref.load %arg4[%c56] : memref<98xf32, #tpu.memory_space<smem>>
    %344 = vector.extract_strided_slice %337 {offsets = [1, 0], sizes = [16, 16], strides = [1, 1]} : vector<22x16xf32> to vector<16x16xf32>
    %345 = vector.broadcast %343 : f32 to vector<16x16xf32>
    %346 = arith.mulf %345, %344 : vector<16x16xf32>
    %347 = arith.addf %335, %346 : vector<16x16xf32>
    %c63 = arith.constant 63 : index
    %348 = memref.load %arg4[%c63] : memref<98xf32, #tpu.memory_space<smem>>
    %349 = vector.extract_strided_slice %337 {offsets = [2, 0], sizes = [16, 16], strides = [1, 1]} : vector<22x16xf32> to vector<16x16xf32>
    %350 = vector.broadcast %348 : f32 to vector<16x16xf32>
    %351 = arith.mulf %350, %349 : vector<16x16xf32>
    %352 = arith.addf %342, %351 : vector<16x16xf32>
    %c70 = arith.constant 70 : index
    %353 = memref.load %arg4[%c70] : memref<98xf32, #tpu.memory_space<smem>>
    %354 = vector.extract_strided_slice %337 {offsets = [3, 0], sizes = [16, 16], strides = [1, 1]} : vector<22x16xf32> to vector<16x16xf32>
    %355 = vector.broadcast %353 : f32 to vector<16x16xf32>
    %356 = arith.mulf %355, %354 : vector<16x16xf32>
    %357 = arith.addf %347, %356 : vector<16x16xf32>
    %c77 = arith.constant 77 : index
    %358 = memref.load %arg4[%c77] : memref<98xf32, #tpu.memory_space<smem>>
    %359 = vector.extract_strided_slice %337 {offsets = [4, 0], sizes = [16, 16], strides = [1, 1]} : vector<22x16xf32> to vector<16x16xf32>
    %360 = vector.broadcast %358 : f32 to vector<16x16xf32>
    %361 = arith.mulf %360, %359 : vector<16x16xf32>
    %362 = arith.addf %352, %361 : vector<16x16xf32>
    %c84 = arith.constant 84 : index
    %363 = memref.load %arg4[%c84] : memref<98xf32, #tpu.memory_space<smem>>
    %364 = vector.extract_strided_slice %337 {offsets = [5, 0], sizes = [16, 16], strides = [1, 1]} : vector<22x16xf32> to vector<16x16xf32>
    %365 = vector.broadcast %363 : f32 to vector<16x16xf32>
    %366 = arith.mulf %365, %364 : vector<16x16xf32>
    %367 = arith.addf %357, %366 : vector<16x16xf32>
    %c91 = arith.constant 91 : index
    %368 = memref.load %arg4[%c91] : memref<98xf32, #tpu.memory_space<smem>>
    %369 = vector.extract_strided_slice %337 {offsets = [6, 0], sizes = [16, 16], strides = [1, 1]} : vector<22x16xf32> to vector<16x16xf32>
    %370 = vector.broadcast %368 : f32 to vector<16x16xf32>
    %371 = arith.mulf %370, %369 : vector<16x16xf32>
    %372 = arith.addf %362, %371 : vector<16x16xf32>
    %c1_52 = arith.constant 1 : index
    %c0_53 = arith.constant 0 : index
    %c1_54 = arith.constant 1 : index
    %373 = vector.load %arg7[%c1_52, %c0_53, %c1_54] : memref<2x22x22xf32, #tpu.memory_space<vmem>>, vector<1x22x16xf32>
    %374 = vector.shape_cast %373 : vector<1x22x16xf32> to vector<22x16xf32>
    %c50 = arith.constant 50 : index
    %375 = memref.load %arg4[%c50] : memref<98xf32, #tpu.memory_space<smem>>
    %376 = vector.extract_strided_slice %374 {offsets = [0, 0], sizes = [16, 16], strides = [1, 1]} : vector<22x16xf32> to vector<16x16xf32>
    %377 = vector.broadcast %375 : f32 to vector<16x16xf32>
    %378 = arith.mulf %377, %376 : vector<16x16xf32>
    %379 = arith.addf %367, %378 : vector<16x16xf32>
    %c57 = arith.constant 57 : index
    %380 = memref.load %arg4[%c57] : memref<98xf32, #tpu.memory_space<smem>>
    %381 = vector.extract_strided_slice %374 {offsets = [1, 0], sizes = [16, 16], strides = [1, 1]} : vector<22x16xf32> to vector<16x16xf32>
    %382 = vector.broadcast %380 : f32 to vector<16x16xf32>
    %383 = arith.mulf %382, %381 : vector<16x16xf32>
    %384 = arith.addf %372, %383 : vector<16x16xf32>
    %c64 = arith.constant 64 : index
    %385 = memref.load %arg4[%c64] : memref<98xf32, #tpu.memory_space<smem>>
    %386 = vector.extract_strided_slice %374 {offsets = [2, 0], sizes = [16, 16], strides = [1, 1]} : vector<22x16xf32> to vector<16x16xf32>
    %387 = vector.broadcast %385 : f32 to vector<16x16xf32>
    %388 = arith.mulf %387, %386 : vector<16x16xf32>
    %389 = arith.addf %379, %388 : vector<16x16xf32>
    %c71 = arith.constant 71 : index
    %390 = memref.load %arg4[%c71] : memref<98xf32, #tpu.memory_space<smem>>
    %391 = vector.extract_strided_slice %374 {offsets = [3, 0], sizes = [16, 16], strides = [1, 1]} : vector<22x16xf32> to vector<16x16xf32>
    %392 = vector.broadcast %390 : f32 to vector<16x16xf32>
    %393 = arith.mulf %392, %391 : vector<16x16xf32>
    %394 = arith.addf %384, %393 : vector<16x16xf32>
    %c78 = arith.constant 78 : index
    %395 = memref.load %arg4[%c78] : memref<98xf32, #tpu.memory_space<smem>>
    %396 = vector.extract_strided_slice %374 {offsets = [4, 0], sizes = [16, 16], strides = [1, 1]} : vector<22x16xf32> to vector<16x16xf32>
    %397 = vector.broadcast %395 : f32 to vector<16x16xf32>
    %398 = arith.mulf %397, %396 : vector<16x16xf32>
    %399 = arith.addf %389, %398 : vector<16x16xf32>
    %c85 = arith.constant 85 : index
    %400 = memref.load %arg4[%c85] : memref<98xf32, #tpu.memory_space<smem>>
    %401 = vector.extract_strided_slice %374 {offsets = [5, 0], sizes = [16, 16], strides = [1, 1]} : vector<22x16xf32> to vector<16x16xf32>
    %402 = vector.broadcast %400 : f32 to vector<16x16xf32>
    %403 = arith.mulf %402, %401 : vector<16x16xf32>
    %404 = arith.addf %394, %403 : vector<16x16xf32>
    %c92 = arith.constant 92 : index
    %405 = memref.load %arg4[%c92] : memref<98xf32, #tpu.memory_space<smem>>
    %406 = vector.extract_strided_slice %374 {offsets = [6, 0], sizes = [16, 16], strides = [1, 1]} : vector<22x16xf32> to vector<16x16xf32>
    %407 = vector.broadcast %405 : f32 to vector<16x16xf32>
    %408 = arith.mulf %407, %406 : vector<16x16xf32>
    %409 = arith.addf %399, %408 : vector<16x16xf32>
    %c1_55 = arith.constant 1 : index
    %c0_56 = arith.constant 0 : index
    %c2_57 = arith.constant 2 : index
    %410 = vector.load %arg7[%c1_55, %c0_56, %c2_57] : memref<2x22x22xf32, #tpu.memory_space<vmem>>, vector<1x22x16xf32>
    %411 = vector.shape_cast %410 : vector<1x22x16xf32> to vector<22x16xf32>
    %c51 = arith.constant 51 : index
    %412 = memref.load %arg4[%c51] : memref<98xf32, #tpu.memory_space<smem>>
    %413 = vector.extract_strided_slice %411 {offsets = [0, 0], sizes = [16, 16], strides = [1, 1]} : vector<22x16xf32> to vector<16x16xf32>
    %414 = vector.broadcast %412 : f32 to vector<16x16xf32>
    %415 = arith.mulf %414, %413 : vector<16x16xf32>
    %416 = arith.addf %404, %415 : vector<16x16xf32>
    %c58 = arith.constant 58 : index
    %417 = memref.load %arg4[%c58] : memref<98xf32, #tpu.memory_space<smem>>
    %418 = vector.extract_strided_slice %411 {offsets = [1, 0], sizes = [16, 16], strides = [1, 1]} : vector<22x16xf32> to vector<16x16xf32>
    %419 = vector.broadcast %417 : f32 to vector<16x16xf32>
    %420 = arith.mulf %419, %418 : vector<16x16xf32>
    %421 = arith.addf %409, %420 : vector<16x16xf32>
    %c65 = arith.constant 65 : index
    %422 = memref.load %arg4[%c65] : memref<98xf32, #tpu.memory_space<smem>>
    %423 = vector.extract_strided_slice %411 {offsets = [2, 0], sizes = [16, 16], strides = [1, 1]} : vector<22x16xf32> to vector<16x16xf32>
    %424 = vector.broadcast %422 : f32 to vector<16x16xf32>
    %425 = arith.mulf %424, %423 : vector<16x16xf32>
    %426 = arith.addf %416, %425 : vector<16x16xf32>
    %c72 = arith.constant 72 : index
    %427 = memref.load %arg4[%c72] : memref<98xf32, #tpu.memory_space<smem>>
    %428 = vector.extract_strided_slice %411 {offsets = [3, 0], sizes = [16, 16], strides = [1, 1]} : vector<22x16xf32> to vector<16x16xf32>
    %429 = vector.broadcast %427 : f32 to vector<16x16xf32>
    %430 = arith.mulf %429, %428 : vector<16x16xf32>
    %431 = arith.addf %421, %430 : vector<16x16xf32>
    %c79 = arith.constant 79 : index
    %432 = memref.load %arg4[%c79] : memref<98xf32, #tpu.memory_space<smem>>
    %433 = vector.extract_strided_slice %411 {offsets = [4, 0], sizes = [16, 16], strides = [1, 1]} : vector<22x16xf32> to vector<16x16xf32>
    %434 = vector.broadcast %432 : f32 to vector<16x16xf32>
    %435 = arith.mulf %434, %433 : vector<16x16xf32>
    %436 = arith.addf %426, %435 : vector<16x16xf32>
    %c86 = arith.constant 86 : index
    %437 = memref.load %arg4[%c86] : memref<98xf32, #tpu.memory_space<smem>>
    %438 = vector.extract_strided_slice %411 {offsets = [5, 0], sizes = [16, 16], strides = [1, 1]} : vector<22x16xf32> to vector<16x16xf32>
    %439 = vector.broadcast %437 : f32 to vector<16x16xf32>
    %440 = arith.mulf %439, %438 : vector<16x16xf32>
    %441 = arith.addf %431, %440 : vector<16x16xf32>
    %c93 = arith.constant 93 : index
    %442 = memref.load %arg4[%c93] : memref<98xf32, #tpu.memory_space<smem>>
    %443 = vector.extract_strided_slice %411 {offsets = [6, 0], sizes = [16, 16], strides = [1, 1]} : vector<22x16xf32> to vector<16x16xf32>
    %444 = vector.broadcast %442 : f32 to vector<16x16xf32>
    %445 = arith.mulf %444, %443 : vector<16x16xf32>
    %446 = arith.addf %436, %445 : vector<16x16xf32>
    %c1_58 = arith.constant 1 : index
    %c0_59 = arith.constant 0 : index
    %c3_60 = arith.constant 3 : index
    %447 = vector.load %arg7[%c1_58, %c0_59, %c3_60] : memref<2x22x22xf32, #tpu.memory_space<vmem>>, vector<1x22x16xf32>
    %448 = vector.shape_cast %447 : vector<1x22x16xf32> to vector<22x16xf32>
    %c52 = arith.constant 52 : index
    %449 = memref.load %arg4[%c52] : memref<98xf32, #tpu.memory_space<smem>>
    %450 = vector.extract_strided_slice %448 {offsets = [0, 0], sizes = [16, 16], strides = [1, 1]} : vector<22x16xf32> to vector<16x16xf32>
    %451 = vector.broadcast %449 : f32 to vector<16x16xf32>
    %452 = arith.mulf %451, %450 : vector<16x16xf32>
    %453 = arith.addf %441, %452 : vector<16x16xf32>
    %c59 = arith.constant 59 : index
    %454 = memref.load %arg4[%c59] : memref<98xf32, #tpu.memory_space<smem>>
    %455 = vector.extract_strided_slice %448 {offsets = [1, 0], sizes = [16, 16], strides = [1, 1]} : vector<22x16xf32> to vector<16x16xf32>
    %456 = vector.broadcast %454 : f32 to vector<16x16xf32>
    %457 = arith.mulf %456, %455 : vector<16x16xf32>
    %458 = arith.addf %446, %457 : vector<16x16xf32>
    %c66 = arith.constant 66 : index
    %459 = memref.load %arg4[%c66] : memref<98xf32, #tpu.memory_space<smem>>
    %460 = vector.extract_strided_slice %448 {offsets = [2, 0], sizes = [16, 16], strides = [1, 1]} : vector<22x16xf32> to vector<16x16xf32>
    %461 = vector.broadcast %459 : f32 to vector<16x16xf32>
    %462 = arith.mulf %461, %460 : vector<16x16xf32>
    %463 = arith.addf %453, %462 : vector<16x16xf32>
    %c73 = arith.constant 73 : index
    %464 = memref.load %arg4[%c73] : memref<98xf32, #tpu.memory_space<smem>>
    %465 = vector.extract_strided_slice %448 {offsets = [3, 0], sizes = [16, 16], strides = [1, 1]} : vector<22x16xf32> to vector<16x16xf32>
    %466 = vector.broadcast %464 : f32 to vector<16x16xf32>
    %467 = arith.mulf %466, %465 : vector<16x16xf32>
    %468 = arith.addf %458, %467 : vector<16x16xf32>
    %c80 = arith.constant 80 : index
    %469 = memref.load %arg4[%c80] : memref<98xf32, #tpu.memory_space<smem>>
    %470 = vector.extract_strided_slice %448 {offsets = [4, 0], sizes = [16, 16], strides = [1, 1]} : vector<22x16xf32> to vector<16x16xf32>
    %471 = vector.broadcast %469 : f32 to vector<16x16xf32>
    %472 = arith.mulf %471, %470 : vector<16x16xf32>
    %473 = arith.addf %463, %472 : vector<16x16xf32>
    %c87 = arith.constant 87 : index
    %474 = memref.load %arg4[%c87] : memref<98xf32, #tpu.memory_space<smem>>
    %475 = vector.extract_strided_slice %448 {offsets = [5, 0], sizes = [16, 16], strides = [1, 1]} : vector<22x16xf32> to vector<16x16xf32>
    %476 = vector.broadcast %474 : f32 to vector<16x16xf32>
    %477 = arith.mulf %476, %475 : vector<16x16xf32>
    %478 = arith.addf %468, %477 : vector<16x16xf32>
    %c94 = arith.constant 94 : index
    %479 = memref.load %arg4[%c94] : memref<98xf32, #tpu.memory_space<smem>>
    %480 = vector.extract_strided_slice %448 {offsets = [6, 0], sizes = [16, 16], strides = [1, 1]} : vector<22x16xf32> to vector<16x16xf32>
    %481 = vector.broadcast %479 : f32 to vector<16x16xf32>
    %482 = arith.mulf %481, %480 : vector<16x16xf32>
    %483 = arith.addf %473, %482 : vector<16x16xf32>
    %c1_61 = arith.constant 1 : index
    %c0_62 = arith.constant 0 : index
    %c4_63 = arith.constant 4 : index
    %484 = vector.load %arg7[%c1_61, %c0_62, %c4_63] : memref<2x22x22xf32, #tpu.memory_space<vmem>>, vector<1x22x16xf32>
    %485 = vector.shape_cast %484 : vector<1x22x16xf32> to vector<22x16xf32>
    %c53 = arith.constant 53 : index
    %486 = memref.load %arg4[%c53] : memref<98xf32, #tpu.memory_space<smem>>
    %487 = vector.extract_strided_slice %485 {offsets = [0, 0], sizes = [16, 16], strides = [1, 1]} : vector<22x16xf32> to vector<16x16xf32>
    %488 = vector.broadcast %486 : f32 to vector<16x16xf32>
    %489 = arith.mulf %488, %487 : vector<16x16xf32>
    %490 = arith.addf %478, %489 : vector<16x16xf32>
    %c60 = arith.constant 60 : index
    %491 = memref.load %arg4[%c60] : memref<98xf32, #tpu.memory_space<smem>>
    %492 = vector.extract_strided_slice %485 {offsets = [1, 0], sizes = [16, 16], strides = [1, 1]} : vector<22x16xf32> to vector<16x16xf32>
    %493 = vector.broadcast %491 : f32 to vector<16x16xf32>
    %494 = arith.mulf %493, %492 : vector<16x16xf32>
    %495 = arith.addf %483, %494 : vector<16x16xf32>
    %c67 = arith.constant 67 : index
    %496 = memref.load %arg4[%c67] : memref<98xf32, #tpu.memory_space<smem>>
    %497 = vector.extract_strided_slice %485 {offsets = [2, 0], sizes = [16, 16], strides = [1, 1]} : vector<22x16xf32> to vector<16x16xf32>
    %498 = vector.broadcast %496 : f32 to vector<16x16xf32>
    %499 = arith.mulf %498, %497 : vector<16x16xf32>
    %500 = arith.addf %490, %499 : vector<16x16xf32>
    %c74 = arith.constant 74 : index
    %501 = memref.load %arg4[%c74] : memref<98xf32, #tpu.memory_space<smem>>
    %502 = vector.extract_strided_slice %485 {offsets = [3, 0], sizes = [16, 16], strides = [1, 1]} : vector<22x16xf32> to vector<16x16xf32>
    %503 = vector.broadcast %501 : f32 to vector<16x16xf32>
    %504 = arith.mulf %503, %502 : vector<16x16xf32>
    %505 = arith.addf %495, %504 : vector<16x16xf32>
    %c81 = arith.constant 81 : index
    %506 = memref.load %arg4[%c81] : memref<98xf32, #tpu.memory_space<smem>>
    %507 = vector.extract_strided_slice %485 {offsets = [4, 0], sizes = [16, 16], strides = [1, 1]} : vector<22x16xf32> to vector<16x16xf32>
    %508 = vector.broadcast %506 : f32 to vector<16x16xf32>
    %509 = arith.mulf %508, %507 : vector<16x16xf32>
    %510 = arith.addf %500, %509 : vector<16x16xf32>
    %c88 = arith.constant 88 : index
    %511 = memref.load %arg4[%c88] : memref<98xf32, #tpu.memory_space<smem>>
    %512 = vector.extract_strided_slice %485 {offsets = [5, 0], sizes = [16, 16], strides = [1, 1]} : vector<22x16xf32> to vector<16x16xf32>
    %513 = vector.broadcast %511 : f32 to vector<16x16xf32>
    %514 = arith.mulf %513, %512 : vector<16x16xf32>
    %515 = arith.addf %505, %514 : vector<16x16xf32>
    %c95 = arith.constant 95 : index
    %516 = memref.load %arg4[%c95] : memref<98xf32, #tpu.memory_space<smem>>
    %517 = vector.extract_strided_slice %485 {offsets = [6, 0], sizes = [16, 16], strides = [1, 1]} : vector<22x16xf32> to vector<16x16xf32>
    %518 = vector.broadcast %516 : f32 to vector<16x16xf32>
    %519 = arith.mulf %518, %517 : vector<16x16xf32>
    %520 = arith.addf %510, %519 : vector<16x16xf32>
    %c1_64 = arith.constant 1 : index
    %c0_65 = arith.constant 0 : index
    %c5_66 = arith.constant 5 : index
    %521 = vector.load %arg7[%c1_64, %c0_65, %c5_66] : memref<2x22x22xf32, #tpu.memory_space<vmem>>, vector<1x22x16xf32>
    %522 = vector.shape_cast %521 : vector<1x22x16xf32> to vector<22x16xf32>
    %c54 = arith.constant 54 : index
    %523 = memref.load %arg4[%c54] : memref<98xf32, #tpu.memory_space<smem>>
    %524 = vector.extract_strided_slice %522 {offsets = [0, 0], sizes = [16, 16], strides = [1, 1]} : vector<22x16xf32> to vector<16x16xf32>
    %525 = vector.broadcast %523 : f32 to vector<16x16xf32>
    %526 = arith.mulf %525, %524 : vector<16x16xf32>
    %527 = arith.addf %515, %526 : vector<16x16xf32>
    %c61 = arith.constant 61 : index
    %528 = memref.load %arg4[%c61] : memref<98xf32, #tpu.memory_space<smem>>
    %529 = vector.extract_strided_slice %522 {offsets = [1, 0], sizes = [16, 16], strides = [1, 1]} : vector<22x16xf32> to vector<16x16xf32>
    %530 = vector.broadcast %528 : f32 to vector<16x16xf32>
    %531 = arith.mulf %530, %529 : vector<16x16xf32>
    %532 = arith.addf %520, %531 : vector<16x16xf32>
    %c68 = arith.constant 68 : index
    %533 = memref.load %arg4[%c68] : memref<98xf32, #tpu.memory_space<smem>>
    %534 = vector.extract_strided_slice %522 {offsets = [2, 0], sizes = [16, 16], strides = [1, 1]} : vector<22x16xf32> to vector<16x16xf32>
    %535 = vector.broadcast %533 : f32 to vector<16x16xf32>
    %536 = arith.mulf %535, %534 : vector<16x16xf32>
    %537 = arith.addf %527, %536 : vector<16x16xf32>
    %c75 = arith.constant 75 : index
    %538 = memref.load %arg4[%c75] : memref<98xf32, #tpu.memory_space<smem>>
    %539 = vector.extract_strided_slice %522 {offsets = [3, 0], sizes = [16, 16], strides = [1, 1]} : vector<22x16xf32> to vector<16x16xf32>
    %540 = vector.broadcast %538 : f32 to vector<16x16xf32>
    %541 = arith.mulf %540, %539 : vector<16x16xf32>
    %542 = arith.addf %532, %541 : vector<16x16xf32>
    %c82 = arith.constant 82 : index
    %543 = memref.load %arg4[%c82] : memref<98xf32, #tpu.memory_space<smem>>
    %544 = vector.extract_strided_slice %522 {offsets = [4, 0], sizes = [16, 16], strides = [1, 1]} : vector<22x16xf32> to vector<16x16xf32>
    %545 = vector.broadcast %543 : f32 to vector<16x16xf32>
    %546 = arith.mulf %545, %544 : vector<16x16xf32>
    %547 = arith.addf %537, %546 : vector<16x16xf32>
    %c89 = arith.constant 89 : index
    %548 = memref.load %arg4[%c89] : memref<98xf32, #tpu.memory_space<smem>>
    %549 = vector.extract_strided_slice %522 {offsets = [5, 0], sizes = [16, 16], strides = [1, 1]} : vector<22x16xf32> to vector<16x16xf32>
    %550 = vector.broadcast %548 : f32 to vector<16x16xf32>
    %551 = arith.mulf %550, %549 : vector<16x16xf32>
    %552 = arith.addf %542, %551 : vector<16x16xf32>
    %c96 = arith.constant 96 : index
    %553 = memref.load %arg4[%c96] : memref<98xf32, #tpu.memory_space<smem>>
    %554 = vector.extract_strided_slice %522 {offsets = [6, 0], sizes = [16, 16], strides = [1, 1]} : vector<22x16xf32> to vector<16x16xf32>
    %555 = vector.broadcast %553 : f32 to vector<16x16xf32>
    %556 = arith.mulf %555, %554 : vector<16x16xf32>
    %557 = arith.addf %547, %556 : vector<16x16xf32>
    %c1_67 = arith.constant 1 : index
    %c0_68 = arith.constant 0 : index
    %c6_69 = arith.constant 6 : index
    %558 = vector.load %arg7[%c1_67, %c0_68, %c6_69] : memref<2x22x22xf32, #tpu.memory_space<vmem>>, vector<1x22x16xf32>
    %559 = vector.shape_cast %558 : vector<1x22x16xf32> to vector<22x16xf32>
    %c55 = arith.constant 55 : index
    %560 = memref.load %arg4[%c55] : memref<98xf32, #tpu.memory_space<smem>>
    %561 = vector.extract_strided_slice %559 {offsets = [0, 0], sizes = [16, 16], strides = [1, 1]} : vector<22x16xf32> to vector<16x16xf32>
    %562 = vector.broadcast %560 : f32 to vector<16x16xf32>
    %563 = arith.mulf %562, %561 : vector<16x16xf32>
    %564 = arith.addf %552, %563 : vector<16x16xf32>
    %c62 = arith.constant 62 : index
    %565 = memref.load %arg4[%c62] : memref<98xf32, #tpu.memory_space<smem>>
    %566 = vector.extract_strided_slice %559 {offsets = [1, 0], sizes = [16, 16], strides = [1, 1]} : vector<22x16xf32> to vector<16x16xf32>
    %567 = vector.broadcast %565 : f32 to vector<16x16xf32>
    %568 = arith.mulf %567, %566 : vector<16x16xf32>
    %569 = arith.addf %557, %568 : vector<16x16xf32>
    %c69 = arith.constant 69 : index
    %570 = memref.load %arg4[%c69] : memref<98xf32, #tpu.memory_space<smem>>
    %571 = vector.extract_strided_slice %559 {offsets = [2, 0], sizes = [16, 16], strides = [1, 1]} : vector<22x16xf32> to vector<16x16xf32>
    %572 = vector.broadcast %570 : f32 to vector<16x16xf32>
    %573 = arith.mulf %572, %571 : vector<16x16xf32>
    %574 = arith.addf %564, %573 : vector<16x16xf32>
    %c76 = arith.constant 76 : index
    %575 = memref.load %arg4[%c76] : memref<98xf32, #tpu.memory_space<smem>>
    %576 = vector.extract_strided_slice %559 {offsets = [3, 0], sizes = [16, 16], strides = [1, 1]} : vector<22x16xf32> to vector<16x16xf32>
    %577 = vector.broadcast %575 : f32 to vector<16x16xf32>
    %578 = arith.mulf %577, %576 : vector<16x16xf32>
    %579 = arith.addf %569, %578 : vector<16x16xf32>
    %c83 = arith.constant 83 : index
    %580 = memref.load %arg4[%c83] : memref<98xf32, #tpu.memory_space<smem>>
    %581 = vector.extract_strided_slice %559 {offsets = [4, 0], sizes = [16, 16], strides = [1, 1]} : vector<22x16xf32> to vector<16x16xf32>
    %582 = vector.broadcast %580 : f32 to vector<16x16xf32>
    %583 = arith.mulf %582, %581 : vector<16x16xf32>
    %584 = arith.addf %574, %583 : vector<16x16xf32>
    %c90 = arith.constant 90 : index
    %585 = memref.load %arg4[%c90] : memref<98xf32, #tpu.memory_space<smem>>
    %586 = vector.extract_strided_slice %559 {offsets = [5, 0], sizes = [16, 16], strides = [1, 1]} : vector<22x16xf32> to vector<16x16xf32>
    %587 = vector.broadcast %585 : f32 to vector<16x16xf32>
    %588 = arith.mulf %587, %586 : vector<16x16xf32>
    %589 = arith.addf %579, %588 : vector<16x16xf32>
    %c97 = arith.constant 97 : index
    %590 = memref.load %arg4[%c97] : memref<98xf32, #tpu.memory_space<smem>>
    %591 = vector.extract_strided_slice %559 {offsets = [6, 0], sizes = [16, 16], strides = [1, 1]} : vector<22x16xf32> to vector<16x16xf32>
    %592 = vector.broadcast %590 : f32 to vector<16x16xf32>
    %593 = arith.mulf %592, %591 : vector<16x16xf32>
    %594 = arith.addf %584, %593 : vector<16x16xf32>
    %595 = arith.addf %589, %594 : vector<16x16xf32>
    %c0_70 = arith.constant 0 : index
    %596 = memref.load %arg5[%c0_70] : memref<1xf32, #tpu.memory_space<smem>>
    %597 = vector.broadcast %596 : f32 to vector<16x16xf32>
    %598 = arith.addf %595, %597 : vector<16x16xf32>
    %599 = arith.negf %598 : vector<16x16xf32>
    %600 = math.exp %599 : vector<16x16xf32>
    %cst_71 = arith.constant 1.000000e+00 : f32
    %601 = vector.broadcast %cst_71 : f32 to vector<16x16xf32>
    %602 = arith.addf %601, %600 : vector<16x16xf32>
    %603 = arith.divf %601, %602 : vector<16x16xf32>
    %604 = vector.extract_strided_slice %603 {offsets = [0, 0], sizes = [1, 16], strides = [1, 1]} : vector<16x16xf32> to vector<1x16xf32>
    %605 = vector.extract_strided_slice %603 {offsets = [1, 0], sizes = [1, 16], strides = [1, 1]} : vector<16x16xf32> to vector<1x16xf32>
    %606 = vector.extract_strided_slice %603 {offsets = [2, 0], sizes = [1, 16], strides = [1, 1]} : vector<16x16xf32> to vector<1x16xf32>
    %607 = vector.extract_strided_slice %603 {offsets = [3, 0], sizes = [1, 16], strides = [1, 1]} : vector<16x16xf32> to vector<1x16xf32>
    %608 = vector.extract_strided_slice %603 {offsets = [4, 0], sizes = [1, 16], strides = [1, 1]} : vector<16x16xf32> to vector<1x16xf32>
    %609 = vector.extract_strided_slice %603 {offsets = [5, 0], sizes = [1, 16], strides = [1, 1]} : vector<16x16xf32> to vector<1x16xf32>
    %610 = vector.extract_strided_slice %603 {offsets = [6, 0], sizes = [1, 16], strides = [1, 1]} : vector<16x16xf32> to vector<1x16xf32>
    %611 = vector.extract_strided_slice %603 {offsets = [7, 0], sizes = [1, 16], strides = [1, 1]} : vector<16x16xf32> to vector<1x16xf32>
    %612 = vector.extract_strided_slice %603 {offsets = [8, 0], sizes = [1, 16], strides = [1, 1]} : vector<16x16xf32> to vector<1x16xf32>
    %613 = vector.extract_strided_slice %603 {offsets = [9, 0], sizes = [1, 16], strides = [1, 1]} : vector<16x16xf32> to vector<1x16xf32>
    %614 = vector.extract_strided_slice %603 {offsets = [10, 0], sizes = [1, 16], strides = [1, 1]} : vector<16x16xf32> to vector<1x16xf32>
    %615 = vector.extract_strided_slice %603 {offsets = [11, 0], sizes = [1, 16], strides = [1, 1]} : vector<16x16xf32> to vector<1x16xf32>
    %616 = vector.extract_strided_slice %603 {offsets = [12, 0], sizes = [1, 16], strides = [1, 1]} : vector<16x16xf32> to vector<1x16xf32>
    %617 = vector.extract_strided_slice %603 {offsets = [13, 0], sizes = [1, 16], strides = [1, 1]} : vector<16x16xf32> to vector<1x16xf32>
    %618 = vector.extract_strided_slice %603 {offsets = [14, 0], sizes = [1, 16], strides = [1, 1]} : vector<16x16xf32> to vector<1x16xf32>
    %619 = vector.extract_strided_slice %603 {offsets = [15, 0], sizes = [1, 16], strides = [1, 1]} : vector<16x16xf32> to vector<1x16xf32>
    %620 = tpu.concatenate %604, %605, %606, %607, %608, %609, %610, %611, %612, %613, %614, %615, %616, %617, %618, %619 in 1 : vector<1x16xf32>, vector<1x16xf32>, vector<1x16xf32>, vector<1x16xf32>, vector<1x16xf32>, vector<1x16xf32>, vector<1x16xf32>, vector<1x16xf32>, vector<1x16xf32>, vector<1x16xf32>, vector<1x16xf32>, vector<1x16xf32>, vector<1x16xf32>, vector<1x16xf32>, vector<1x16xf32>, vector<1x16xf32> -> vector<1x256xf32>
    %621 = vector.broadcast %620 : vector<1x256xf32> to vector<16x256xf32>
    %622 = arith.mulf %26, %621 : vector<16x256xf32>
    %c0_72 = arith.constant 0 : index
    %c0_73 = arith.constant 0 : index
    %c0_74 = arith.constant 0 : index
    %623 = vector.load %arg6[%c0_72, %c0_73, %c0_74] : memref<1x16x256xf32, #tpu.memory_space<vmem>>, vector<1x16x256xf32>
    %624 = vector.shape_cast %623 : vector<1x16x256xf32> to vector<16x256xf32>
    %625 = vector.shape_cast %622 : vector<16x256xf32> to vector<1x16x256xf32>
    tpu.vector_store %arg6[%c0_72, %c0_73, %c0_74], %625 {strides = array<i32>} : memref<1x16x256xf32, #tpu.memory_space<vmem>>, vector<1x16x256xf32>,
    return
  }
  func.func @transform_0(%arg0: i32) -> (i32, i32, i32) {
    %c0_i32 = arith.constant 0 : i32
    %c0_i32_0 = arith.constant 0 : i32
    %c0_i32_1 = arith.constant 0 : i32
    return %arg0, %c0_i32, %c0_i32_0 : i32, i32, i32
  }
  func.func @transform_1(%arg0: i32) -> (i32, i32) {
    %c0_i32 = arith.constant 0 : i32
    %c0_i32_0 = arith.constant 0 : i32
    %c0_i32_1 = arith.constant 0 : i32
    return %c0_i32, %c0_i32_0 : i32, i32
  }
  func.func @transform_2(%arg0: i32) -> (i32, i32) {
    %c0_i32 = arith.constant 0 : i32
    %c0_i32_0 = arith.constant 0 : i32
    %c0_i32_1 = arith.constant 0 : i32
    return %c0_i32, %c0_i32_0 : i32, i32
  }
  func.func @transform_3(%arg0: i32) -> i32 {
    %c0_i32 = arith.constant 0 : i32
    %c0_i32_0 = arith.constant 0 : i32
    return %c0_i32 : i32
  }
  func.func @transform_4(%arg0: i32) -> i32 {
    %c0_i32 = arith.constant 0 : i32
    %c0_i32_0 = arith.constant 0 : i32
    return %c0_i32 : i32
  }
  func.func @transform_5(%arg0: i32) -> (i32, i32, i32) {
    %c0_i32 = arith.constant 0 : i32
    %c0_i32_0 = arith.constant 0 : i32
    %c0_i32_1 = arith.constant 0 : i32
    return %arg0, %c0_i32, %c0_i32_0 : i32, i32, i32
  }
}

</mosaic_0001>

<bundles_post_ra>
// kernel: tpu_custom_call.1
= control target key start
LH: loop header
LB: loop body
LE: loop exit
PB: predicated region body
PF: predicated region fallthrough
CT: control target
= control target key end

     0   :  { %s5245_s0 = inlined_call_operand.hbm [shape: f32[2,16,256], index: 0, kind: input, shape index: {}]   ;;  %s5246_s1 = inlined_call_operand.vmem [shape: f32[16,4], index: 1, kind: input, shape index: {}]   ;;  %s5247_s2 = inlined_call_operand.vmem [shape: f32[16,4], index: 2, kind: input, shape index: {}]   ;;  %s5248_s3 = inlined_call_operand.vmem [shape: f32[98], index: 3, kind: input, shape index: {}]   ;;  %s5249_s4 = inlined_call_operand.<no memory space> [shape: f32[1], index: 4, kind: input, shape index: {}]   ;;  %s5250_s5 = inlined_call_operand.hbm [shape: f32[2,16,256], index: 5, kind: output, shape index: {}]  }
   0x1   :  { %10 = sst [smem:[#allocation3]] %s5249_s4 }
   0x2   :  { %11 = vsyncpa [#allocation5], 0 }
   0x3   :  { %13 = vsyncpa [#allocation5 + $0x1], 0 }
   0x4   :  { %14 = vsyncpa [#allocation7], 0 }
   0x5   :  { %15 = vsyncpa [#allocation6], 0 }
   0x6   :  { %17 = vsyncpa [#allocation6 + $0x1], 0  ;;  %s3169_s20 = smov 0   ;;  %s3171_s21 = smov 0  }
   0x7   :  { %s3173_s22 = smov 0   ;;  %s3175_s23 = smov 0  }
   0x8 LB: > { %s3190_s4 = sadd.s32 4294967295, %s3113_s23   ;;  %s2786_s24 = sadd.s32 4294967294, %s3113_s23   ;;  %s3113_s23 = sphi %s3175_s23, %s5547_s23   ;;  %s3109_s22 = sphi %s3173_s22, %s5546_s22   ;;  %s3105_s21 = sphi %s3171_s21, %s5545_s21   ;;  %s3101_s20 = sphi %s3169_s20, %s5544_s20  }
   0x9   : > { %s3194_s25 = sadd.s32 1, %s3113_s23   ;;  %s30_s26 = sadd.s32 1, %s3109_s22 }
   0xa   : > { %s27_s27 = ssub.s32 %s3113_s23, %s3194_s25  ;;  %p37_p0 = scmp.ne.s32.totalorder %s3109_s22, %s3105_s21 }
   0xb   : > { %p28_p1 = scmp.eq.s32.totalorder %s27_s27, 0  ;;  %p38_p2 = scmp.eq.s32.totalorder %s3113_s23, 0 }
   0xc   : > { %p43_p3 = scmp.ne.s32.totalorder %s3105_s21, %s3101_s20  ;;  %p5252_p4 = scmp.eq.s32.totalorder %s3190_s4, 0 }
   0xd   : > { %s3206_s28 = scalar_select %p28_p1, %s3109_s22, %s30_s26  }
   0xe   : > { %p3208_p5 = por %p38_p2, %p37_p0  ;;  %p3214_p6 = por %p5252_p4, %p43_p3 }
   0xf   : > { %p151_p7 = scmp.eq.s32.totalorder %s3190_s4, 1  ;;  %p157_p8 = scmp.eq.s32.totalorder %s2786_s24, 1 }
  0x10   : > { %s5293_s30 = scalar_select %p3214_p6, 1, 0 }
  0x11   : > { %p2787_p9 = scmp.ge.s32.totalorder %s3113_s23, 1  ;;  %p164_p10 = scmp.lt.s32.totalorder %s3113_s23, 3 }
  0x12   : > { %p3221_p11 = por %p151_p7, %p37_p0  ;;  %p3225_p12 = por %p157_p8, %p43_p3 }
  0x13   : > { %p3229_p13 = pnand %p2787_p9, %p164_p10  ;;  %s183_s11 = sshll.u32 %s5248_s3, 4  ;;  %s184_s11 = int_to_ptr.vmem [resolvable:$true] %s183_s11 }
  0x14   : > { %s5294_s6 = scalar_select %p3221_p11, 1, 0 }
  0x15   : > { %s5295_s7 = scalar_select %p3225_p12, 1, 0 }
  0x16   : > { %s5296_s8 = scalar_select %p3229_p13, 1, 0 }
  0x17   : > { %p2913_p1 = pneg %p3229_p13  ;;  %p2926_p2 = scmp.lt.s32.totalorder %s3113_s23, 2 }
  0x18   : > { %s197_s13 = sand.u32 1, %s3109_s22   ;;  %s3002_s16 = scalar_lea.vmem %s184_s11, 16 }
  0x19   : > { %p3242_p7 = pnand %p2913_p1, %p5252_p4  ;;  %p3249_p3 = pnand %p2926_p2, %p3208_p5 }
  0x1a   : > { %s2790_s15 = sshll.u32 %s197_s13, 5  ;;  %p3003_p8 = scmp.ne.s32.totalorder %s184_s11, %s3002_s16 }
  0x1b   : > { %p3004_p9 = pneg %p3242_p7  ;;  %p3010_p12 = scmp.lt.s32.totalorder %s184_s11, %s184_s11 }
  0x1c   : > { %p3011_p11 = scmp.lt.s32.totalorder %s3002_s16, %s3002_s16 }
  0x1d   : > { %p3005_p10 = pnand %p3004_p9, %p3003_p8 }
  0x1e   : > { %p3012_p1 = por %p3011_p11, %p3010_p12 }
  0x1f   : > { %p3006_p0 = pneg %p3005_p10 }
  0x21   : > { %p3013_p4 = pnand %p3012_p1, %p3006_p0 }
  0x23   : > { %3016 = shalt.err (!%p3013_p4)
}
  0x24   : > { %s3115_s17 = smov [#allocation8]   ;;  %s2903_s18 = sshll.u32 %s3113_s23, 9 }
  0x25   : > { %2916 = dma.vmem_to_smem (!%p3242_p7), %s184_s11, 16, %s3115_s17, [#allocation7]  }
  0x26   : > { %s201_s19 = scalar_lea.vmem [#allocation4], %s2790_s15  ;;  %s3261_s29 = scalar_lea.hbm %s5245_s0, %s2903_s18 }
  0x27   : > { %s208_s24 = sshll.u32 %s201_s19, 4  ;;  %s3265_s9 = scalar_lea.sflag [#allocation5], %s197_s13  ;;  %s3263_s24 = int_to_ptr.vmem [resolvable:$true] %s208_s24 }
  0x28   : > { %s3017_s10 = scalar_lea.hbm %s3261_s29, 512  ;;  %p3019_p5 = pneg %p3249_p3 }
  0x29   : > { %p3018_p4 = scmp.ne.s32.totalorder %s3261_s29, %s3017_s10  ;;  %s3022_s15 = scalar_lea.hbm %s5245_s0, 1024 }
  0x2a   : > { %p3023_p0 = scmp.lt.s32.totalorder %s3261_s29, %s5245_s0  ;;  %p3024_p2 = scmp.lt.s32.totalorder %s3022_s15, %s3017_s10 }
  0x2b   : > { %p3020_p11 = pnand %p3019_p5, %p3018_p4 }
  0x2c   : > { %p3025_p7 = por %p3024_p2, %p3023_p0 }
  0x2d   : > { %p3021_p12 = pneg %p3020_p11 }
  0x2f   : > { %p3026_p8 = pnand %p3025_p7, %p3021_p12 }
  0x31   : > { %3029 = shalt.err (!%p3026_p8)
}
  0x32   : > { %s3030_s13 = scalar_lea.vmem %s3263_s24, 512  ;;  %s3116_s18 = smov [#allocation4]  }
  0x33   : > { %p3031_p9 = scmp.ne.s32.totalorder %s3263_s24, %s3030_s13  ;;  %s3035_s19 = sshll.u32 %s3116_s18, 4  ;;  %s3036_s19 = int_to_ptr.vmem [resolvable:$false] %s3035_s19 }
  0x34   : > { %s3037_s26 = scalar_lea.vmem %s3036_s19, 1024  ;;  %p3038_p4 = scmp.lt.s32.totalorder %s3263_s24, %s3036_s19 }
  0x35   : > { %p3033_p10 = pnand %p3031_p9, %p3019_p5  ;;  %p3039_p11 = scmp.lt.s32.totalorder %s3037_s26, %s3030_s13 }
  0x37   : > { %p3034_p1 = pneg %p3033_p10  ;;  %p3040_p6 = por %p3039_p11, %p3038_p4 }
  0x39   : > { %p3041_p13 = pnand %p3040_p6, %p3034_p1 }
  0x3b   : > { %3044 = shalt.err (!%p3041_p13)
}
  0x3c   : > { %s3117_s27 = smov 256   ;;  %s3118_s10 = smov 16  }
  0x3d   : > { %2920 = dma.hbm_to_vmem [thread:$0]  (!%p3249_p3), %s3261_s29, 512, %s3263_s24, %s3265_s9, %s3117_s27, %s3117_s27, %s3118_s10  }
  0x3e   : > { %p5299_p5 = scmp.ne.s32.totalorder %s5296_s8, 0 }
  0x40   : > { %220 = sbr.rel (%p5299_p5) target bundleno = 1436 (0x59c), region = 40 }
  0x45   : > { %s3289_s11 = sand.u32 1, %s3105_s21   ;;  %p5300_p6 = scmp.ne.s32.totalorder %s5293_s30, 0 }
  0x46   : > { %s5255_s12 = sshll.u32 %s3289_s11, 5  ;;  %s223_s15 = scalar_lea.sflag [#allocation5], %s3289_s11 }
  0x47   : > { %s226_s16 = scalar_lea.vmem [#allocation4], %s5255_s12 }
  0x48   : > { %3088 = dma.done.wait (%p5300_p6), %s223_s15, 512  }
  0x49   : > { %3090 = vsyncadd (%p5300_p6), %s223_s15, 4294966784  ;;  %p5301_p13 = scmp.eq.s32.totalorder %s3190_s4, 0 }
  0x4b   : > { %3092 = dma.done.wait (%p5301_p13), [#allocation7], 16   ;;  %p5302_p3 = pmov %p5301_p13 }
  0x4d   : > { %3094 = vsyncadd (%p5302_p3), [#allocation7], 4294967280 }
  0x4e   : > { %235 = sfence }
  0x4f   : > { %v258_v0 = vld [vmem:[%s226_s16] sm:$0xff]  ;;  %v259_v1 = vld [vmem:[%s226_s16 + $0x8] sm:$0xff]  ;;  %v260_v2 = vld [vmem:[%s226_s16 + $0x10] sm:$0xff]  ;;  %vm274_vm0 = vcmask 31744   ;;  %s5258_s18 = smov 96   ;;  %s5256_s19 = smov 112  }
  0x50   : > { %v262_v3 = vadd.f32 %v259_v1, %v258_v0  ;;  %v261_v4 = vld [vmem:[%s226_s16 + $0x18] sm:$0xff]  ;;  %v270_v8 = vld [vmem:[%s5246_s1] sm:$0xff]  ;;  %s3121_s26 = smov 64   ;;  %s5260_s27 = smov 80   ;;  %vm466_vm1 = vcmask 179200   ;;  %vm387_vm2 = vcmask 1040384  }
  0x51   : > { %v265_v5 = vadd.f32 %v261_v4, %v260_v2  ;;  %v271_v9 = vld [vmem:[%s5246_s1 + $0x8] sm:$0xff]  ;;  %v285_v23 = vld [vmem:[%s5247_s2] sm:$0xff]  ;;  %s3123_s10 = smov 32   ;;  %s3124_s15 = smov 48   ;;  %vm389_vm3 = vcmask 1041408   ;;  %vm391_vm4 = vcmask 1042432  }
  0x52   : > { %263 = vadd.xlane.f32.xlu0 %v262_v3  ;;  %v286_v25 = vld [vmem:[%s5247_s2 + $0x8] sm:$0xff]  ;;  %s3125_s16 = smov 16   ;;  %vm393_vm5 = vcmask 1043456   ;;  %vm395_vm6 = vcmask 1044480   ;;  %vm397_vm7 = vcmask 1045504   ;;  %vm399_vm8 = vcmask 1046528  }
  0x53   : > { %vm469_vm9 = vcmask 177152   ;;  %s3127_s8 = smov 3   ;;  %vm482_vm10 = vcmask 154648   ;;  %s2854_s30 = sld [smem:[#allocation8 + $0x32]]  ;;  %vm2650_vm11 = vcmask 130048   ;;  %vm2652_vm12 = vcmask 261120  }
  0x54   : > { %s2855_s14 = sld [smem:[#allocation8 + $0x39]]  ;;  %s3128_s24 = smov 127   ;;  %vm2654_vm13 = vcmask 392192   ;;  %vm2656_vm14 = vcmask 523264   ;;  %vm2658_vm15 = vcmask 654336  }
  0x55   : > { %s2869_s29 = sld [smem:[#allocation8 + $0x3b]]  ;;  %s3129_s13 = smov 125  }
  0x56   : > { %266 = vadd.xlane.f32.xlu0 %v265_v5  ;;  %s2868_s9 = sld [smem:[#allocation8 + $0x34]]  ;;  %p5541_p0 = scmp.ne.s32.totalorder %s5294_s6, 0 }
  0x57   : > { %s2883_s17 = sld [smem:[#allocation8 + $0x3d]] }
  0x58   : > { %s2881_s12 = sld [smem:[#allocation8 + $0x5f]] }
  0xdb   : > { %v264_v6 = vpop.xlane.xlu0 %263 }
  0xdc   : > { %v268_v7 = vmul.f32 0.00390625, %v264_v6 }
  0xde   : > { %v272_v11 = vmul.f32 %v270_v8, %v268_v7 }
  0xdf   : > { %v267_v10 = vpop.xlane.xlu0 %266 }
  0xe0   : > { %v269_v12 = vmul.f32 0.00390625, %v267_v10  ;;  %v275_v14 = vsel %vm274_vm0, %v272_v11, 0.0 }
  0xe2   : > { %v273_v13 = vmul.f32 %v271_v9, %v269_v12  ;;  %v3126_v12 = vmov 0.0  }
  0xe3   : > { %471 = vst.msk [vmem:[#allocation2 + $0x18] sm:$0xff] %vm466_vm1, %v3126_v12  ;;  %472 = vst.msk [vmem:[#allocation2 + $0x20] sm:$0xff] %vm466_vm1, %v3126_v12 }
  0xe4   : > { %v276_v15 = vsel %vm274_vm0, %v273_v13, 0.0  ;;  %467 = vst.msk [vmem:[#allocation2] sm:$0xff] %vm466_vm1, %v3126_v12  ;;  %468 = vst.msk [vmem:[#allocation2 + $0x8] sm:$0xff] %vm466_vm1, %v3126_v12  ;;  %vm2662_vm1 = vcmask 916480  }
  0xe5   : > { %v277_v16 = vadd.f32 %v276_v15, %v275_v14  ;;  %473 = vst.msk [vmem:[#allocation2 + $0x28] sm:$0x3f] %vm469_vm9, %v3126_v12  ;;  %470 = vst.msk [vmem:[#allocation2 + $0x10] sm:$0x3f] %vm469_vm9, %v3126_v12 }
  0xe7   : > { %v278_v17 = vrot.slane %v277_v16, 4 }
  0xe9   : > { %v279_v18 = vadd.f32 %v278_v17, %v277_v16 }
  0xeb   : > { %v280_v19 = vrot.slane %v279_v18, 2 }
  0xed   : > { %v281_v20 = vadd.f32 %v280_v19, %v279_v18 }
  0xef   : > { %v282_v21 = vrot.slane %v281_v20, 1 }
  0xf1   : > { %v283_v22 = vadd.f32 %v282_v21, %v281_v20 }
  0xf3   : > { %v284_v24 = vmax.f32 %v283_v22, 0.0 }
  0xf5   : > { %v287_v26 = vmul.f32 %v285_v23, %v284_v24  ;;  %v288_v28 = vmul.f32 %v286_v25, %v284_v24 }
  0xf7   : > { %v289_v27 = vsel %vm274_vm0, %v287_v26, 0.0  ;;  %v292_v29 = vsel %vm274_vm0, %v288_v28, 0.0  ;;  %vm2660_vm0 = vcmask 785408  }
  0xf8   : > { %290 = vadd.xlane.f32.xlu1 %v289_v27 }
  0xfc   : > { %293 = vadd.xlane.f32.xlu1 %v292_v29 }
 0x181   : > { %v291_v30 = vpop.xlane.xlu1 %290 }
 0x182   : > { %v2797_v31 = vmul.f32 -2.0, %v291_v30 }
 0x184   : > { %v299_v32 = vmul.f32 1.442695, %v2797_v31 }
 0x185   : > { %v294_v33 = vpop.xlane.xlu1 %293 }
 0x186   : > { %2980 = vpow2.f32 %v299_v32  ;;  %v2798_v34 = vmul.f32 -2.0, %v294_v33 }
 0x188   : > { %v301_v35 = vmul.f32 1.442695, %v2798_v34 }
 0x18a   : > { %2982 = vpow2.f32 %v301_v35 }
 0x193   : > { %v2981_v36 = vpop.eup %2980 }
 0x194   : > { %v303_v37 = vadd.f32 1.0, %v2981_v36 }
 0x196   : > { %2984 = vrcp.f32 %v303_v37 }
 0x197   : > { %v2983_v38 = vpop.eup %2982 }
 0x198   : > { %v304_v39 = vadd.f32 1.0, %v2983_v38 }
 0x19a   : > { %2986 = vrcp.f32 %v304_v39 }
 0x1a3   : > { %v2985_v40 = vpop.eup %2984 }
 0x1a4   : > { %v3319_v42 = vmul.f32 %v2985_v40, %v258_v0  ;;  %v3321_v43 = vmul.f32 %v2985_v40, %v259_v1 }
 0x1a6   : > { %5303 = vst [vmem:[#allocation13_spill] sm:$0xff] %v3319_v42  ;;  %5304 = vst [vmem:[#allocation14_spill] sm:$0xff] %v3321_v43 }
 0x1a7   : > { %v2987_v41 = vpop.eup %2986 }
 0x1a8   : > { %v3323_v44 = vmul.f32 %v2987_v41, %v260_v2  ;;  %v3325_v45 = vmul.f32 %v2987_v41, %v261_v4 }
 0x1aa   : > { %5305 = vst [vmem:[#allocation15_spill] sm:$0xff] %v3323_v44  ;;  %5306 = vst [vmem:[#allocation16_spill] sm:$0xff] %v3325_v45  ;;  %v329_v46 = vmax.f32 %v3319_v42, %v3323_v44  ;;  %v336_v47 = vmax.f32 %v3321_v43, %v3325_v45  ;;  %v313_v55 = vadd.f32 %v3323_v44, %v3319_v42 }
 0x1ab   : > { %v320_v63 = vadd.f32 %v3325_v45, %v3321_v43 }
 0x1ac   : > { %v330_v48 = vrot.slane %v329_v46, 4  ;;  %v337_v50 = vrot.slane %v336_v47, 4  ;;  %v314_v58 = vrot.slane %v313_v55, 4 }
 0x1ad   : > { %v321_v2 = vrot.slane %v320_v63, 4 }
 0x1ae   : > { %v331_v49 = vmax.f32 %v329_v46, %v330_v48  ;;  %v338_v53 = vmax.f32 %v336_v47, %v337_v50  ;;  %v315_v60 = vadd.f32 %v314_v58, %v313_v55 }
 0x1af   : > { %v322_v4 = vadd.f32 %v321_v2, %v320_v63 }
 0x1b0   : > { %v332_v51 = vrot.slane %v331_v49, 2  ;;  %v339_v57 = vrot.slane %v338_v53, 2  ;;  %v316_v62 = vrot.slane %v315_v60, 2 }
 0x1b1   : > { %v323_v6 = vrot.slane %v322_v4, 2 }
 0x1b2   : > { %v333_v52 = vmax.f32 %v331_v49, %v332_v51  ;;  %v340_v59 = vmax.f32 %v338_v53, %v339_v57  ;;  %v317_v1 = vadd.f32 %v316_v62, %v315_v60 }
 0x1b3   : > { %v324_v7 = vadd.f32 %v323_v6, %v322_v4 }
 0x1b4   : > { %v334_v54 = vrot.slane %v333_v52, 1  ;;  %v341_v61 = vrot.slane %v340_v59, 1  ;;  %v318_v3 = vrot.slane %v317_v1, 1 }
 0x1b5   : > { %v325_v9 = vrot.slane %v324_v7, 1 }
 0x1b6   : > { %v3333_v56 = vmax.f32 %v333_v52, %v334_v54  ;;  %v3349_v0 = vmax.f32 %v340_v59, %v341_v61  ;;  %v319_v5 = vadd.f32 %v318_v3, %v317_v1 }
 0x1b7   : > { %v326_v10 = vadd.f32 %v325_v9, %v324_v7 }
 0x1b8   : > { %412 = vrot.lane.b32.xlu1 %v3333_v56, %s5258_s18  ;;  %409 = vrot.lane.b32.xlu0 %v3333_v56, %s5256_s19  ;;  %v3367_v8 = vmul.f32 0.0625, %v319_v5 }
 0x1b9   : > { %v3381_v11 = vmul.f32 0.0625, %v326_v10  ;;  %v1647_v10 = vstv %s2854_s30  ;;  %s2875_s30 = sld [smem:[#allocation8 + $0x35]] }
 0x1bc   : > { %418 = vrot.lane.b32.xlu1 %v3333_v56, %s3121_s26  ;;  %415 = vrot.lane.b32.xlu0 %v3333_v56, %s5260_s27 }
 0x1c0   : > { %424 = vrot.lane.b32.xlu1 %v3333_v56, %s3123_s10  ;;  %421 = vrot.lane.b32.xlu0 %v3333_v56, %s3124_s15 }
 0x1c4   : > { %431 = vrot.lane.b32.xlu1 %v3349_v0, %s5256_s19  ;;  %427 = vrot.lane.b32.xlu0 %v3333_v56, %s3125_s16 }
 0x1c8   : > { %437 = vrot.lane.b32.xlu1 %v3349_v0, %s5260_s27  ;;  %434 = vrot.lane.b32.xlu0 %v3349_v0, %s5258_s18 }
 0x1cc   : > { %443 = vrot.lane.b32.xlu1 %v3349_v0, %s3124_s15  ;;  %440 = vrot.lane.b32.xlu0 %v3349_v0, %s3121_s26 }
 0x1d0   : > { %449 = vrot.lane.b32.xlu1 %v3349_v0, %s3125_s16  ;;  %446 = vrot.lane.b32.xlu0 %v3349_v0, %s3123_s10 }
 0x1d4   : > { %347 = vrot.lane.b32.xlu1 %v3367_v8, %s5258_s18  ;;  %344 = vrot.lane.b32.xlu0 %v3367_v8, %s5256_s19 }
 0x1d8   : > { %350 = vrot.lane.b32.xlu1 %v3367_v8, %s5260_s27  ;;  %356 = vrot.lane.b32.xlu0 %v3367_v8, %s3124_s15 }
 0x1dc   : > { %353 = vrot.lane.b32.xlu1 %v3367_v8, %s3121_s26  ;;  %362 = vrot.lane.b32.xlu0 %v3367_v8, %s3125_s16 }
 0x1e0   : > { %359 = vrot.lane.b32.xlu1 %v3367_v8, %s3123_s10  ;;  %369 = vrot.lane.b32.xlu0 %v3381_v11, %s5258_s18  ;;  %s3133_s18 = smov 122  }
 0x1e4   : > { %366 = vrot.lane.b32.xlu1 %v3381_v11, %s5256_s19  ;;  %375 = vrot.lane.b32.xlu0 %v3381_v11, %s3121_s26  ;;  %s2813_s19 = sld [smem:[#allocation8 + $0x9]] }
 0x1e8   : > { %372 = vrot.lane.b32.xlu1 %v3381_v11, %s5260_s27  ;;  %381 = vrot.lane.b32.xlu0 %v3381_v11, %s3123_s10  ;;  %s2863_s27 = sld [smem:[#allocation8 + $0x41]] }
 0x1ec   : > { %378 = vrot.lane.b32.xlu1 %v3381_v11, %s3124_s15 }
 0x1f0   : > { %384 = vrot.lane.b32.xlu1 %v3381_v11, %s3125_s16 }
 0x22a   : > { %v413_v13 = vpop.permute.xlu1 %412  ;;  %v410_v14 = vpop.permute.xlu0 %409 }
 0x22b   : > { %v452_v15 = vsel %vm387_vm2, %v3333_v56, %v410_v14 }
 0x22c   : > { %v453_v17 = vsel %vm389_vm3, %v452_v15, %v413_v13  ;;  %v1661_v13 = vstv %s2855_s14  ;;  %s3130_s14 = smov 123  }
 0x22e   : > { %v419_v16 = vpop.permute.xlu1 %418  ;;  %v416_v18 = vpop.permute.xlu0 %415 }
 0x22f   : > { %v454_v19 = vsel %vm391_vm4, %v453_v17, %v416_v18 }
 0x230   : > { %v455_v21 = vsel %vm393_vm5, %v454_v19, %v419_v16 }
 0x232   : > { %v425_v20 = vpop.permute.xlu1 %424  ;;  %v422_v22 = vpop.permute.xlu0 %421 }
 0x233   : > { %v456_v23 = vsel %vm395_vm6, %v455_v21, %v422_v22 }
 0x234   : > { %v457_v26 = vsel %vm397_vm7, %v456_v23, %v425_v20  ;;  %v1967_v20 = vstv %s2869_s29  ;;  %s3466_s29 = sld [smem:[#allocation8 + $0x2]] }
 0x236   : > { %v432_v24 = vpop.permute.xlu1 %431  ;;  %v428_v25 = vpop.permute.xlu0 %427 }
 0x237   : > { %v458_v27 = vsel %vm399_vm8, %v457_v26, %v428_v25  ;;  %v459_v28 = vsel %vm387_vm2, %v3349_v0, %v432_v24  ;;  %v1953_v24 = vstv %s2868_s9  ;;  %s2877_s9 = sld [smem:[#allocation8 + $0x43]] }
 0x238   : > { %487 = vrot.lane.b32.xlu0 %v458_v27, %s3127_s8  ;;  %v2273_v27 = vstv %s2883_s17  ;;  %s2879_s17 = sld [smem:[#allocation8 + $0x51]] }
 0x23a   : > { %v438_v29 = vpop.permute.xlu1 %437  ;;  %v435_v30 = vpop.permute.xlu0 %434 }
 0x23b   : > { %v460_v31 = vsel %vm389_vm3, %v459_v28, %v435_v30 }
 0x23c   : > { %v461_v33 = vsel %vm391_vm4, %v460_v31, %v438_v29 }
 0x23e   : > { %v444_v32 = vpop.permute.xlu1 %443  ;;  %v441_v34 = vpop.permute.xlu0 %440 }
 0x23f   : > { %v462_v35 = vsel %vm393_vm5, %v461_v33, %v441_v34  ;;  %v2100_v33 = vstv %s2875_s30  ;;  %s3495_s30 = sld [smem:[#allocation8 + $0x4]] }
 0x240   : > { %v463_v37 = vsel %vm395_vm6, %v462_v35, %v444_v32 }
 0x242   : > { %v450_v36 = vpop.permute.xlu1 %449  ;;  %v447_v38 = vpop.permute.xlu0 %446 }
 0x243   : > { %v464_v39 = vsel %vm397_vm7, %v463_v37, %v447_v38 }
 0x244   : > { %v465_v40 = vsel %vm399_vm8, %v464_v39, %v450_v36 }
 0x245   : > { %489 = vrot.lane.b32.xlu1 %v465_v40, %s3127_s8 }
 0x246   : > { %v348_v41 = vpop.permute.xlu1 %347  ;;  %v345_v46 = vpop.permute.xlu0 %344 }
 0x247   : > { %v388_v47 = vsel %vm387_vm2, %v3367_v8, %v345_v46  ;;  %v762_v46 = vstv %s3466_s29  ;;  %s3131_s29 = smov 126  }
 0x248   : > { %v390_v50 = vsel %vm389_vm3, %v388_v47, %v348_v41 }
 0x24a   : > { %v351_v48 = vpop.permute.xlu1 %350  ;;  %v357_v49 = vpop.permute.xlu0 %356 }
 0x24b   : > { %v392_v51 = vsel %vm391_vm4, %v390_v50, %v351_v48  ;;  %v3488_v48 = vstv %s2877_s9  ;;  %s3132_s9 = smov 124  }
 0x24e   : > { %v354_v52 = vpop.permute.xlu1 %353  ;;  %v363_v54 = vpop.permute.xlu0 %362 }
 0x24f   : > { %v394_v53 = vsel %vm393_vm5, %v392_v51, %v354_v52  ;;  %v3497_v51 = vstv %s2879_s17  ;;  %s2841_s17 = sld [smem:[#allocation8 + $0xd]] }
 0x250   : > { %v396_v56 = vsel %vm395_vm6, %v394_v53, %v357_v49  ;;  %v776_v53 = vstv %s2813_s19  ;;  %s2840_s19 = sld [smem:[#allocation8 + $0x6]] }
 0x252   : > { %v360_v55 = vpop.permute.xlu1 %359  ;;  %v370_v59 = vpop.permute.xlu0 %369 }
 0x253   : > { %v398_v57 = vsel %vm397_vm7, %v396_v56, %v360_v55  ;;  %v3510_v55 = vstv %s2881_s12  ;;  %s2827_s12 = sld [smem:[#allocation8 + $0xb]] }
 0x254   : > { %v400_v58 = vsel %vm399_vm8, %v398_v57, %v363_v54 }
 0x255   : > { %476 = vrot.lane.b32.xlu0 %v400_v58, %s3127_s8 }
 0x256   : > { %v367_v60 = vpop.permute.xlu1 %366  ;;  %v376_v0 = vpop.permute.xlu0 %375 }
 0x257   : > { %v401_v61 = vsel %vm387_vm2, %v3381_v11, %v367_v60 }
 0x258   : > { %v402_v63 = vsel %vm389_vm3, %v401_v61, %v370_v59 }
 0x25a   : > { %v373_v62 = vpop.permute.xlu1 %372  ;;  %v382_v5 = vpop.permute.xlu0 %381 }
 0x25b   : > { %v403_v1 = vsel %vm391_vm4, %v402_v63, %v373_v62 }
 0x25c   : > { %v404_v3 = vsel %vm393_vm5, %v403_v1, %v376_v0 }
 0x25e   : > { %v379_v2 = vpop.permute.xlu1 %378 }
 0x25f   : > { %v405_v4 = vsel %vm395_vm6, %v404_v3, %v379_v2 }
 0x260   : > { %v406_v7 = vsel %vm397_vm7, %v405_v4, %v382_v5 }
 0x262   : > { %v385_v6 = vpop.permute.xlu1 %384 }
 0x263   : > { %v407_v8 = vsel %vm399_vm8, %v406_v7, %v385_v6 }
 0x264   : > { %478 = vrot.lane.b32.xlu1 %v407_v8, %s3127_s8  ;;  %s2882_s8 = sld [smem:[#allocation8 + $0x36]] }
 0x26a   : > { %v2259_v32 = vstv %s2882_s8  ;;  %s2885_s8 = sld [smem:[#allocation8 + $0x4b]] }
 0x270   : > { %v3542_v5 = vstv %s2885_s8  ;;  %s2859_s8 = sld [smem:[#allocation8 + $0x55]] }
 0x2aa   : > { %v488_v9 = vpop.permute.xlu0 %487 }
 0x2ab   : > { %494 = vst.msk [vmem:[#allocation2 + $0x1b] sm:$0xff] %vm482_vm10, %v488_v9  ;;  %v1068_v9 = vstv %s3495_s30  ;;  %s2857_s30 = sld [smem:[#allocation8 + $0x47]] }
 0x2b2   : > { %v3436_v11 = vld [vmem:[#allocation2 + $0x18] sm:$0xff] }
 0x2b3   : > { %v1648_v12 = vmul.f32 %v1647_v10, %v3436_v11  ;;  %v1662_v15 = vmul.f32 %v1661_v13, %v3436_v11  ;;  %v1968_v25 = vmul.f32 %v1967_v20, %v3436_v11  ;;  %v2274_v29 = vmul.f32 %v2273_v27, %v3436_v11 }
 0x2b4   : > { %v1954_v30 = vmul.f32 %v1953_v24, %v3436_v11  ;;  %v2260_v35 = vmul.f32 %v2259_v32, %v3436_v11  ;;  %v3478_v38 = vmul.f32 %v2100_v33, %v3436_v11 }
 0x2b5   : > { %1652 = vrot.lane.b32.xlu1 %v1648_v12, %s3128_s24 }
 0x2b6   : > { %v2105_v47 = vrot.slane %v3478_v38, 7 }
 0x2b7   : > { %v490_v14 = vpop.permute.xlu1 %489 }
 0x2b8   : > { %495 = vst.msk [vmem:[#allocation2 + $0x23] sm:$0xff] %vm482_vm10, %v490_v14 }
 0x2b9   : > { %1668 = vrot.lane.b32.xlu1 %v1662_v15, %s3128_s24 }
 0x2bf   : > { %v3443_v16 = vld [vmem:[#allocation2 + $0x20] sm:$0xff]  ;;  %v3445_v17 = vld [vmem:[#allocation2 + $0x28] sm:$0x3f] }
 0x2c0   : > { %v1649_v18 = vmul.f32 %v1647_v10, %v3443_v16  ;;  %v1664_v19 = vmul.f32 %v1661_v13, %v3445_v17  ;;  %v1663_v21 = vmul.f32 %v1661_v13, %v3443_v16  ;;  %v1969_v22 = vmul.f32 %v1967_v20, %v3443_v16 }
 0x2c1   : > { %v1955_v26 = vmul.f32 %v1953_v24, %v3443_v16  ;;  %v1970_v28 = vmul.f32 %v1967_v20, %v3445_v17  ;;  %v2276_v31 = vmul.f32 %v2273_v27, %v3445_v17  ;;  %v2275_v34 = vmul.f32 %v2273_v27, %v3443_v16 }
 0x2c2   : > { %1654 = vrot.lane.b32.xlu0 %v1649_v18, %s3128_s24  ;;  %1672 = vrot.lane.b32.xlu1 %v1664_v19, %s3128_s24  ;;  %v3473_v36 = vmul.f32 %v2100_v33, %v3443_v16  ;;  %v2261_v39 = vmul.f32 %v2259_v32, %v3443_v16  ;;  %v3492_v49 = vmul.f32 %v3488_v48, %v3445_v17  ;;  %v1082_v19 = vstv %s2827_s12  ;;  %s3599_s12 = sld [smem:[#allocation8 + $0x33]] }
 0x2c3   : > { %v3508_v54 = vmul.f32 %v3497_v51, %v3445_v17  ;;  %v3517_v57 = vmul.f32 %v3510_v55, %v3445_v17  ;;  %v3521_v58 = vmul.f32 %v3488_v48, %v3443_v16  ;;  %v3533_v1 = vmul.f32 %v3497_v51, %v3443_v16 }
 0x2c4   : > { %v2106_v40 = vrot.slane %v3473_v36, 7  ;;  %v2152_v60 = vrot.slane %v3492_v49, 1  ;;  %v3539_v3 = vmul.f32 %v3510_v55, %v3443_v16  ;;  %v3556_v10 = vmul.f32 %v3542_v5, %v3445_v17 }
 0x2c5   : > { %v2198_v63 = vrot.slane %v3508_v54, 3  ;;  %v5265_v0 = vrot.slane %v3521_v58, 1  ;;  %v2244_v2 = vrot.slane %v3517_v57, 5  ;;  %v5264_v7 = vrot.slane %v3533_v1, 3 }
 0x2c6   : > { %1670 = vrot.lane.b32.xlu0 %v1663_v21, %s3128_s24  ;;  %1976 = vrot.lane.b32.xlu1 %v1969_v22, %s3129_s13  ;;  %v3504_v52 = vsel %vm387_vm2, %v2105_v47, %v2106_v40  ;;  %v5263_v12 = vrot.slane %v3539_v3, 5  ;;  %v2324_v20 = vrot.slane %v3556_v10, 2  ;;  %v3580_v21 = vmul.f32 %v3542_v5, %v3443_v16 }
 0x2c7   : > { %v477_v23 = vpop.permute.xlu0 %476  ;;  %v3549_v6 = vsel %vm399_vm8, %v5265_v0, %v2152_v60  ;;  %v3565_v13 = vsel %vm395_vm6, %v5264_v7, %v2198_v63  ;;  %v3606_v32 = vstv %s2859_s8  ;;  %s2865_s8 = sld [smem:[#allocation8 + $0x4f]] }
 0x2c8   : > { %483 = vst.msk [vmem:[#allocation2 + $0x3] sm:$0xff] %vm482_vm10, %v477_v23  ;;  %v3573_v14 = vsel %vm391_vm4, %v5263_v12, %v2244_v2  ;;  %v5262_v22 = vrot.slane %v3580_v21, 2 }
 0x2ca   : > { %1974 = vrot.lane.b32.xlu0 %v1968_v25, %s3129_s13  ;;  %1960 = vrot.lane.b32.xlu1 %v1955_v26, %s3129_s13  ;;  %v3592_v25 = vsel %vm397_vm7, %v5262_v22, %v2324_v20  ;;  %v1374_v26 = vstv %s2840_s19  ;;  %s2867_s19 = sld [smem:[#allocation8 + $0x5d]] }
 0x2ce   : > { %1978 = vrot.lane.b32.xlu0 %v1970_v28, %s3129_s13  ;;  %2280 = vrot.lane.b32.xlu1 %v2274_v29, %s3130_s14  ;;  %v1388_v29 = vstv %s2841_s17  ;;  %s2871_s17 = sld [smem:[#allocation8 + $0x49]] }
 0x2cf   : > { %v3483_v41 = vld [vmem:[#allocation2] sm:$0xff] }
 0x2d0   : > { %v763_v50 = vmul.f32 %v762_v46, %v3483_v41  ;;  %v777_v61 = vmul.f32 %v776_v53, %v3483_v41  ;;  %v1069_v15 = vmul.f32 %v1068_v9, %v3483_v41  ;;  %v1083_v23 = vmul.f32 %v1082_v19, %v3483_v41 }
 0x2d1   : > { %v1375_v28 = vmul.f32 %v1374_v26, %v3483_v41 }
 0x2d2   : > { %1958 = vrot.lane.b32.xlu0 %v1954_v30, %s3129_s13  ;;  %2284 = vrot.lane.b32.xlu1 %v2276_v31, %s3130_s14  ;;  %v1389_v31 = vmul.f32 %v1388_v29, %v3483_v41 }
 0x2d6   : > { %v479_v37 = vpop.permute.xlu1 %478  ;;  %2282 = vrot.lane.b32.xlu0 %v2275_v34, %s3130_s14  ;;  %2264 = vrot.lane.b32.xlu1 %v2260_v35, %s3130_s14  ;;  %v3611_v34 = vmul.f32 %v3606_v32, %v3445_v17  ;;  %v1702_v35 = vstv %s2857_s30  ;;  %s2856_s30 = sld [smem:[#allocation8 + $0x40]] }
 0x2d7   : > { %484 = vst.msk [vmem:[#allocation2 + $0xb] sm:$0xff] %vm482_vm10, %v479_v37  ;;  %v1704_v7 = vmul.f32 %v1702_v35, %v3443_v16  ;;  %v1703_v57 = vmul.f32 %v1702_v35, %v3436_v11 }
 0x2d9   : > { %v1710_v49 = vrot.slane %v1704_v7, 2 }
 0x2da   : > { %2266 = vrot.lane.b32.xlu0 %v2261_v39, %s3130_s14  ;;  %v3615_v39 = vmul.f32 %v1702_v35, %v3445_v17 }
 0x2de   : > { %v3512_v56 = vld [vmem:[#allocation2 + $0x8] sm:$0xff]  ;;  %767 = vrot.lane.b32.xlu0 %v763_v50, %s3131_s29  ;;  %v3526_v62 = vld [vmem:[#allocation2 + $0x10] sm:$0x3f]  ;;  %v3620_v50 = vstv %s2863_s27  ;;  %s2873_s27 = sld [smem:[#allocation8 + $0x57]] }
 0x2df   : > { %v764_v59 = vmul.f32 %v762_v46, %v3512_v56  ;;  %v778_v4 = vmul.f32 %v776_v53, %v3512_v56  ;;  %v779_v8 = vmul.f32 %v776_v53, %v3526_v62  ;;  %v1070_v18 = vmul.f32 %v1068_v9, %v3512_v56 }
 0x2e0   : > { %v1084_v24 = vmul.f32 %v1082_v19, %v3512_v56  ;;  %v1085_v27 = vmul.f32 %v1082_v19, %v3526_v62  ;;  %v1376_v30 = vmul.f32 %v1374_v26, %v3512_v56  ;;  %v1390_v33 = vmul.f32 %v1388_v29, %v3512_v56 }
 0x2e1   : > { %769 = vrot.lane.b32.xlu1 %v764_v59, %s3131_s29  ;;  %v1391_v37 = vmul.f32 %v1388_v29, %v3526_v62  ;;  %v1794_v46 = vstv %s3599_s12  ;;  %v1758_v53 = vrot.slane %v3611_v34, 4  ;;  %v3625_v59 = vmul.f32 %v3620_v50, %v3445_v17  ;;  %s2858_s12 = sld [smem:[#allocation8 + $0x4e]] }
 0x2e2   : > { %783 = vrot.lane.b32.xlu0 %v777_v61, %s3131_s29  ;;  %v1712_v61 = vrot.slane %v3615_v39, 2  ;;  %v3644_v19 = vmul.f32 %v1794_v46, %v3443_v16 }
 0x2e3   : > { %v1846_v9 = vrot.slane %v3625_v59, 1 }
 0x2e5   : > { %785 = vrot.lane.b32.xlu1 %v778_v4, %s3131_s29  ;;  %v3629_v4 = vmul.f32 %v1794_v46, %v3436_v11  ;;  %v1681_v46 = vstv %s2856_s30  ;;  %s2870_s30 = sld [smem:[#allocation8 + $0x42]] }
 0x2e6   : > { %787 = vrot.lane.b32.xlu0 %v779_v8, %s3131_s29  ;;  %v3635_v8 = vstv %s2867_s19  ;;  %v1683_v22 = vmul.f32 %v1681_v46, %v3443_v16  ;;  %v1684_v12 = vmul.f32 %v1681_v46, %v3445_v17  ;;  %v1682_v0 = vmul.f32 %v1681_v46, %v3436_v11  ;;  %s2860_s19 = sld [smem:[#allocation8 + $0x5c]] }
 0x2e7   : > { %v1727_v36 = vstv %s2858_s12  ;;  %v1930_v59 = vmul.f32 %v3635_v8, %v3443_v16  ;;  %s2872_s12 = sld [smem:[#allocation8 + $0x50]] }
 0x2e8   : > { %v1689_v38 = vrot.slane %v1683_v22, 2  ;;  %v1728_v54 = vmul.f32 %v1727_v36, %v3436_v11  ;;  %v1750_v22 = vmul.f32 %v3606_v32, %v3443_v16  ;;  %v1730_v46 = vmul.f32 %v1727_v36, %v3445_v17 }
 0x2e9   : > { %1073 = vrot.lane.b32.xlu1 %v1069_v15, %s3132_s9  ;;  %v3640_v15 = vmul.f32 %v3635_v8, %v3445_v17 }
 0x2ea   : > { %1075 = vrot.lane.b32.xlu0 %v1070_v18, %s3132_s9  ;;  %v1799_v18 = vrot.slane %v3629_v4, 7  ;;  %v1734_v10 = vrot.slane %v1728_v54, 4 }
 0x2ec   : > { %v1773_v35 = vstv %s2860_s19  ;;  %s2874_s19 = sld [smem:[#allocation8 + $0x5e]] }
 0x2ed   : > { %1089 = vrot.lane.b32.xlu1 %v1083_v23, %s3132_s9  ;;  %v3652_v23 = vstv %s2871_s17  ;;  %s2862_s17 = sld [smem:[#allocation8 + $0x3a]] }
 0x2ee   : > { %1091 = vrot.lane.b32.xlu0 %v1084_v24, %s3132_s9  ;;  %v1938_v24 = vrot.slane %v3640_v15, 5  ;;  %v3657_v26 = vmul.f32 %v3652_v23, %v3445_v17 }
 0x2f1   : > { %1093 = vrot.lane.b32.xlu1 %v1085_v27, %s3132_s9  ;;  %v3659_v27 = vstv %s2865_s8  ;;  %s2864_s8 = sld [smem:[#allocation8 + $0x48]] }
 0x2f2   : > { %1379 = vrot.lane.b32.xlu0 %v1375_v28, %s3133_s18  ;;  %v1800_v28 = vrot.slane %v3644_v19, 7  ;;  %v3664_v29 = vmul.f32 %v3659_v27, %v3445_v17  ;;  %v1884_v34 = vmul.f32 %v3659_v27, %v3443_v16 }
 0x2f5   : > { %1381 = vrot.lane.b32.xlu1 %v1376_v30, %s3133_s18  ;;  %v2018_v30 = vrot.slane %v3657_v26, 2 }
 0x2f6   : > { %1395 = vrot.lane.b32.xlu0 %v1389_v31, %s3133_s18  ;;  %v3673_v31 = vstv %s2873_s27  ;;  %s2866_s27 = sld [smem:[#allocation8 + $0x56]] }
 0x2f9   : > { %1397 = vrot.lane.b32.xlu1 %v1390_v33, %s3133_s18  ;;  %v1892_v33 = vrot.slane %v3664_v29, 3 }
 0x2fa   : > { %1399 = vrot.lane.b32.xlu0 %v1391_v37, %s3133_s18  ;;  %v3678_v37 = vmul.f32 %v3673_v31, %v3445_v17 }
 0x2fc   : > { %v2064_v39 = vrot.slane %v3678_v37, 4 }
 0x2fd   : > { %1764 = vrot.lane.b32.xlu1 %v1758_v53, %s3128_s24 }
 0x2fe   : > { %1718 = vrot.lane.b32.xlu0 %v1712_v61, %s3128_s24 }
 0x301   : > { %1852 = vrot.lane.b32.xlu1 %v1846_v9, %s3131_s29 }
 0x302   : > { %1802 = vrot.lane.b32.xlu0 %v1799_v18, %s3131_s29 }
 0x305   : > { %1944 = vrot.lane.b32.xlu1 %v1938_v24, %s3131_s29 }
 0x306   : > { %1806 = vrot.lane.b32.xlu0 %v1800_v28, %s3131_s29 }
 0x309   : > { %2024 = vrot.lane.b32.xlu1 %v2018_v30, %s3129_s13 }
 0x30a   : > { %1898 = vrot.lane.b32.xlu0 %v1892_v33, %s3131_s29 }
 0x30d   : > { %2108 = vrot.lane.b32.xlu1 %v2105_v47, %s3132_s9  ;;  %v1691_v47 = vrot.slane %v1684_v12, 2 }
 0x30e   : > { %2070 = vrot.lane.b32.xlu0 %v2064_v39, %s3129_s13 }
 0x311   : > { %2112 = vrot.lane.b32.xlu1 %v2106_v40, %s3132_s9  ;;  %v1692_v40 = vsel %vm397_vm7, %v1689_v38, %v1691_v47  ;;  %v1756_v47 = vrot.slane %v1750_v22, 4  ;;  %v1774_v22 = vmul.f32 %v1773_v35, %v3436_v11 }
 0x312   : > { %2158 = vrot.lane.b32.xlu0 %v2152_v60, %s3132_s9  ;;  %v1729_v60 = vmul.f32 %v1727_v36, %v3443_v16  ;;  %v1737_v36 = vrot.slane %v1730_v46, 4 }
 0x313   : > { %v1759_v46 = vsel %vm393_vm5, %v1756_v47, %v1758_v53 }
 0x314   : > { %v1735_v12 = vrot.slane %v1729_v60, 4  ;;  %v1776_v60 = vmul.f32 %v1773_v35, %v3445_v17 }
 0x315   : > { %2204 = vrot.lane.b32.xlu1 %v2198_v63, %s3132_s9  ;;  %v1688_v63 = vrot.slane %v1682_v0, 2  ;;  %v1749_v0 = vmul.f32 %v3606_v32, %v3436_v11 }
 0x316   : > { %2250 = vrot.lane.b32.xlu0 %v2244_v2, %s3132_s9  ;;  %v1713_v2 = vsel %vm397_vm7, %v1710_v49, %v1712_v61  ;;  %v1736_v61 = vsel %vm393_vm5, %v1734_v10, %v1735_v12 }
 0x317   : > { %v1690_v7 = vsel %vm397_vm7, %v1688_v63, %v1689_v38  ;;  %v1755_v54 = vrot.slane %v1749_v0, 4  ;;  %v1780_v0 = vrot.slane %v1774_v22, 6  ;;  %v1929_v22 = vmul.f32 %v3635_v8, %v3436_v11 }
 0x319   : > { %1695 = vrot.lane.b32.xlu1 %v1692_v40, %s3128_s24  ;;  %v1775_v40 = vmul.f32 %v1773_v35, %v3443_v16  ;;  %v1757_v63 = vsel %vm393_vm5, %v1755_v54, %v1756_v47  ;;  %v1815_v47 = vstv %s2862_s17  ;;  %s2876_s17 = sld [smem:[#allocation8 + $0x3c]] }
 0x31a   : > { %2330 = vrot.lane.b32.xlu0 %v2324_v20, %s3130_s14  ;;  %v1709_v20 = vrot.slane %v1703_v57, 2  ;;  %v1783_v57 = vrot.slane %v1776_v60, 6  ;;  %v1818_v60 = vmul.f32 %v1815_v47, %v3445_v17 }
 0x31b   : > { %v1781_v32 = vrot.slane %v1775_v40, 6 }
 0x31c   : > { %v1711_v38 = vsel %vm397_vm7, %v1709_v20, %v1710_v49  ;;  %v1838_v49 = vmul.f32 %v3620_v50, %v3443_v16  ;;  %v1801_v20 = vsel %vm387_vm2, %v1799_v18, %v1800_v28  ;;  %v1890_v18 = vrot.slane %v1884_v34, 3 }
 0x31d   : > { %1716 = vrot.lane.b32.xlu1 %v1713_v2, %s3128_s24  ;;  %v1738_v2 = vsel %vm393_vm5, %v1735_v12, %v1737_v36  ;;  %v1837_v12 = vmul.f32 %v3620_v50, %v3436_v11  ;;  %v1782_v53 = vsel %vm389_vm3, %v1780_v0, %v1781_v32  ;;  %v1883_v50 = vmul.f32 %v3659_v27, %v3436_v11 }
 0x31e   : > { %1693 = vrot.lane.b32.xlu0 %v1690_v7, %s3128_s24  ;;  %v1784_v7 = vsel %vm389_vm3, %v1781_v32, %v1783_v57  ;;  %v1844_v35 = vrot.slane %v1838_v49, 1  ;;  %v1817_v28 = vmul.f32 %v1815_v47, %v3443_v16  ;;  %v1816_v27 = vmul.f32 %v1815_v47, %v3436_v11 }
 0x31f   : > { %v1825_v57 = vrot.slane %v1818_v60, 1  ;;  %v1907_v34 = vstv %s2866_s27  ;;  %s2880_s27 = sld [smem:[#allocation8 + $0x58]] }
 0x320   : > { %v1847_v40 = vsel %vm399_vm8, %v1844_v35, %v1846_v9  ;;  %v1823_v32 = vrot.slane %v1817_v28, 1  ;;  %v1908_v60 = vmul.f32 %v1907_v34, %v3436_v11 }
 0x321   : > { %1739 = vrot.lane.b32.xlu1 %v1736_v61, %s3128_s24  ;;  %v1843_v61 = vrot.slane %v1837_v12, 1 }
 0x322   : > { %1714 = vrot.lane.b32.xlu0 %v1711_v38, %s3128_s24  ;;  %v1889_v38 = vrot.slane %v1883_v50, 3 }
 0x323   : > { %v1845_v4 = vsel %vm399_vm8, %v1843_v61, %v1844_v35  ;;  %v1935_v35 = vrot.slane %v1929_v22, 5 }
 0x324   : > { %v1891_v9 = vsel %vm395_vm6, %v1889_v38, %v1890_v18 }
 0x325   : > { %1760 = vrot.lane.b32.xlu1 %v1757_v63, %s3128_s24  ;;  %v1893_v63 = vsel %vm395_vm6, %v1890_v18, %v1892_v33 }
 0x326   : > { %1741 = vrot.lane.b32.xlu0 %v1738_v2, %s3128_s24  ;;  %v1822_v2 = vrot.slane %v1816_v27, 1 }
 0x327   : > { %v3744_v10 = vpop.permute.xlu1 %1652 }
 0x328   : > { %5307 = vst [vmem:[#allocation17_spill] sm:$0xff] %v3744_v10  ;;  %v1824_v33 = vsel %vm399_vm8, %v1822_v2, %v1823_v32 }
 0x329   : > { %1787 = vrot.lane.b32.xlu1 %v1784_v7, %s3128_s24  ;;  %v1861_v7 = vstv %s2864_s8  ;;  %s2878_s8 = sld [smem:[#allocation8 + $0x4a]] }
 0x32a   : > { %1762 = vrot.lane.b32.xlu0 %v1759_v46, %s3128_s24  ;;  %v1936_v46 = vrot.slane %v1930_v59, 5  ;;  %v1863_v12 = vmul.f32 %v1861_v7, %v3443_v16  ;;  %v1864_v0 = vmul.f32 %v1861_v7, %v3445_v17  ;;  %v1862_v8 = vmul.f32 %v1861_v7, %v3436_v11 }
 0x32b   : > { %v3761_v19 = vpop.permute.xlu1 %1668  ;;  %v2010_v59 = vmul.f32 %v3652_v23, %v3443_v16 }
 0x32c   : > { %5308 = vst [vmem:[#allocation18_spill] sm:$0xff] %v3761_v19  ;;  %v1937_v61 = vsel %vm391_vm4, %v1935_v35, %v1936_v46  ;;  %v1869_v50 = vrot.slane %v1863_v12, 3  ;;  %v1871_v47 = vrot.slane %v1864_v0, 3  ;;  %v1939_v28 = vsel %vm391_vm4, %v1936_v46, %v1938_v24 }
 0x32d   : > { %1804 = vrot.lane.b32.xlu1 %v1801_v20, %s3131_s29  ;;  %v1826_v20 = vsel %vm399_vm8, %v1823_v32, %v1825_v57  ;;  %v1868_v27 = vrot.slane %v1862_v8, 3  ;;  %v2009_v57 = vmul.f32 %v3652_v23, %v3436_v11  ;;  %v2056_v46 = vmul.f32 %v3673_v31, %v3443_v16 }
 0x32e   : > { %1785 = vrot.lane.b32.xlu0 %v1782_v53, %s3128_s24  ;;  %v2055_v23 = vmul.f32 %v3673_v31, %v3436_v11 }
 0x32f   : > { %v1870_v15 = vsel %vm395_vm6, %v1868_v27, %v1869_v50  ;;  %v2015_v0 = vrot.slane %v2009_v57, 2 }
 0x331   : > { %1848 = vrot.lane.b32.xlu1 %v1845_v4, %s3131_s29  ;;  %v1909_v4 = vmul.f32 %v1907_v34, %v3443_v16 }
 0x332   : > { %1850 = vrot.lane.b32.xlu0 %v1847_v40, %s3131_s29  ;;  %v1910_v40 = vmul.f32 %v1907_v34, %v3445_v17  ;;  %v2062_v34 = vrot.slane %v2056_v46, 4 }
 0x333   : > { %v1915_v32 = vrot.slane %v1909_v4, 5 }
 0x334   : > { %v3772_v36 = vpop.permute.xlu1 %1672  ;;  %v3774_v54 = vpop.permute.xlu0 %1654  ;;  %v1917_v24 = vrot.slane %v1910_v40, 5  ;;  %v2033_v40 = vstv %s2872_s12  ;;  %v2065_v27 = vsel %vm393_vm5, %v2062_v34, %v2064_v39  ;;  %s3942_s12 = sld [smem:[#allocation8 + $0x1]] }
 0x335   : > { %5309 = vst [vmem:[#allocation19_spill] sm:$0xff] %v3772_v36  ;;  %5310 = vst [vmem:[#allocation20_spill] sm:$0xff] %v3774_v54  ;;  %1896 = vrot.lane.b32.xlu1 %v1893_v63, %s3131_s29  ;;  %v1872_v63 = vsel %vm395_vm6, %v1869_v50, %v1871_v47  ;;  %v2035_v26 = vmul.f32 %v2033_v40, %v3443_v16  ;;  %v2034_v46 = vmul.f32 %v2033_v40, %v3436_v11 }
 0x336   : > { %1894 = vrot.lane.b32.xlu0 %v1891_v9, %s3131_s29  ;;  %v1914_v9 = vrot.slane %v1908_v60, 5  ;;  %v1918_v12 = vsel %vm391_vm4, %v1915_v32, %v1917_v24 }
 0x337   : > { %v2041_v39 = vrot.slane %v2035_v26, 4 }
 0x338   : > { %v3786_v49 = vpop.permute.xlu1 %1976  ;;  %v3788_v29 = vpop.permute.xlu0 %1670  ;;  %v1916_v7 = vsel %vm391_vm4, %v1914_v9, %v1915_v32 }
 0x339   : > { %5311 = vst [vmem:[#allocation21_spill] sm:$0xff] %v3786_v49  ;;  %5312 = vst [vmem:[#allocation22_spill] sm:$0xff] %v3788_v29  ;;  %1827 = vrot.lane.b32.xlu1 %v1824_v33, %s3131_s29  ;;  %v2016_v33 = vrot.slane %v2010_v59, 2 }
 0x33a   : > { %1829 = vrot.lane.b32.xlu0 %v1826_v20, %s3131_s29  ;;  %v1987_v20 = vstv %s2870_s30  ;;  %s2887_s30 = sld [smem:[#allocation8 + $0x59]] }
 0x33b   : > { %v2017_v8 = vsel %vm397_vm7, %v2015_v0, %v2016_v33  ;;  %v2019_v47 = vsel %vm397_vm7, %v2016_v33, %v2018_v30  ;;  %v1990_v4 = vmul.f32 %v1987_v20, %v3445_v17  ;;  %v1988_v31 = vmul.f32 %v1987_v20, %v3436_v11 }
 0x33c   : > { %v3797_v53 = vpop.permute.xlu0 %1974  ;;  %v3801_v18 = vpop.permute.xlu1 %1960  ;;  %v2036_v30 = vmul.f32 %v2033_v40, %v3445_v17 }
 0x33d   : > { %5313 = vst [vmem:[#allocation23_spill] sm:$0xff] %v3797_v53  ;;  %5314 = vst [vmem:[#allocation24_spill] sm:$0xff] %v3801_v18  ;;  %1940 = vrot.lane.b32.xlu1 %v1937_v61, %s3131_s29  ;;  %v1989_v61 = vmul.f32 %v1987_v20, %v3443_v16  ;;  %v1997_v59 = vrot.slane %v1990_v4, 2 }
 0x33e   : > { %1942 = vrot.lane.b32.xlu0 %v1939_v28, %s3131_s29  ;;  %v2061_v28 = vrot.slane %v2055_v23, 4  ;;  %v2043_v57 = vrot.slane %v2036_v30, 4 }
 0x340   : > { %v3810_v38 = vpop.permute.xlu0 %1978  ;;  %v3820_v2 = vpop.permute.xlu1 %2280  ;;  %v2063_v32 = vsel %vm393_vm5, %v2061_v28, %v2062_v34  ;;  %v2044_v23 = vsel %vm393_vm5, %v2041_v39, %v2043_v57 }
 0x341   : > { %5315 = vst [vmem:[#allocation25_spill] sm:$0xff] %v3810_v38  ;;  %1875 = vrot.lane.b32.xlu1 %v1872_v63, %s3131_s29  ;;  %5316 = vst [vmem:[#allocation26_spill] sm:$0xff] %v3820_v2  ;;  %v1995_v63 = vrot.slane %v1989_v61, 2  ;;  %v2040_v61 = vrot.slane %v2034_v46, 4  ;;  %v5327_v46 = vrot.slane %v3533_v1, 3 }
 0x342   : > { %1873 = vrot.lane.b32.xlu0 %v1870_v15, %s3131_s29  ;;  %v1994_v15 = vrot.slane %v1988_v31, 2 }
 0x343   : > { %v2042_v28 = vsel %vm393_vm5, %v2040_v61, %v2041_v39 }
 0x344   : > { %v3822_v22 = vpop.permute.xlu0 %1958  ;;  %v3836_v50 = vpop.permute.xlu1 %2284  ;;  %v1996_v37 = vsel %vm397_vm7, %v1994_v15, %v1995_v63  ;;  %v5324_v15 = vrot.slane %v3521_v58, 1 }
 0x345   : > { %5317 = vst [vmem:[#allocation27_spill] sm:$0xff] %v3822_v22  ;;  %1919 = vrot.lane.b32.xlu1 %v1916_v7, %s3131_s29  ;;  %5319 = vst [vmem:[#allocation29_spill] sm:$0xff] %v3836_v50  ;;  %v1998_v7 = vsel %vm397_vm7, %v1995_v63, %v1997_v59 }
 0x346   : > { %1921 = vrot.lane.b32.xlu0 %v1918_v12, %s3131_s29  ;;  %v2079_v12 = vstv %s2874_s19  ;;  %s2807_s19 = sld [smem:[#allocation8 + $0xf]] }
 0x347   : > { %v2081_v20 = vmul.f32 %v2079_v12, %v3443_v16  ;;  %v2082_v40 = vmul.f32 %v2079_v12, %v3445_v17 }
 0x348   : > { %v3832_v35 = vpop.permute.xlu0 %2282  ;;  %v3855_v24 = vpop.permute.xlu1 %2264 }
 0x349   : > { %5318 = vst [vmem:[#allocation28_spill] sm:$0xff] %v3832_v35  ;;  %2020 = vrot.lane.b32.xlu1 %v2017_v8, %s3129_s13  ;;  %5321 = vst [vmem:[#allocation31_spill] sm:$0xff] %v3855_v24  ;;  %v2080_v8 = vmul.f32 %v2079_v12, %v3436_v11  ;;  %v2087_v31 = vrot.slane %v2081_v20, 6 }
 0x34a   : > { %2022 = vrot.lane.b32.xlu0 %v2019_v47, %s3129_s13  ;;  %v2143_v47 = vmul.f32 %v3488_v48, %v3436_v11  ;;  %v2121_v48 = vstv %s2876_s17  ;;  %s2811_s17 = sld [smem:[#allocation8 + $0x2b]] }
 0x34b   : > { %v2124_v59 = vmul.f32 %v2121_v48, %v3445_v17  ;;  %v2122_v61 = vmul.f32 %v2121_v48, %v3436_v11 }
 0x34c   : > { %v3845_v60 = vpop.permute.xlu0 %2266  ;;  %v2149_v26 = vrot.slane %v2143_v47, 1  ;;  %v2167_v47 = vstv %s2878_s8  ;;  %s2815_s8 = sld [smem:[#allocation8 + $0x17]] }
 0x34d   : > { %5320 = vst [vmem:[#allocation30_spill] sm:$0xff] %v3845_v60  ;;  %2068 = vrot.lane.b32.xlu1 %v2065_v27, %s3129_s13  ;;  %v2189_v27 = vmul.f32 %v3497_v51, %v3436_v11  ;;  %v2089_v51 = vrot.slane %v2082_v40, 6  ;;  %v2131_v20 = vrot.slane %v2124_v59, 1  ;;  %v2169_v1 = vmul.f32 %v2167_v47, %v3443_v16 }
 0x34e   : > { %2066 = vrot.lane.b32.xlu0 %v2063_v32, %s3129_s13 }
 0x34f   : > { %v2195_v39 = vrot.slane %v2189_v27, 3  ;;  %v2090_v58 = vsel %vm389_vm3, %v2087_v31, %v2089_v51  ;;  %v2128_v27 = vrot.slane %v2122_v61, 1 }
 0x350   : > { %v3857_v9 = vpop.permute.xlu0 %767 }
 0x351   : > { %1999 = vrot.lane.b32.xlu1 %v1996_v37, %s3129_s13  ;;  %v2151_v37 = vsel %vm399_vm8, %v2149_v26, %v5324_v15  ;;  %v2197_v12 = vsel %vm395_vm6, %v2195_v39, %v5327_v46  ;;  %v2235_v26 = vmul.f32 %v3510_v55, %v3436_v11 }
 0x352   : > { %2001 = vrot.lane.b32.xlu0 %v1998_v7, %s3129_s13 }
 0x353   : > { %v3863_v33 = vpop.permute.xlu1 %769  ;;  %v2241_v39 = vrot.slane %v2235_v26, 5 }
 0x354   : > { %v3866_v0 = vpop.permute.xlu0 %783 }
 0x355   : > { %2047 = vrot.lane.b32.xlu1 %v2044_v23, %s3129_s13 }
 0x356   : > { %2110 = vrot.lane.b32.xlu0 %v3504_v52, %s3132_s9  ;;  %v2086_v52 = vrot.slane %v2080_v8, 6 }
 0x357   : > { %v3874_v34 = vpop.permute.xlu1 %785 }
 0x358   : > { %v3878_v4 = vpop.permute.xlu0 %787  ;;  %v2088_v32 = vsel %vm389_vm3, %v2086_v52, %v2087_v31  ;;  %v2168_v31 = vmul.f32 %v2167_v47, %v3436_v11 }
 0x359   : > { %2156 = vrot.lane.b32.xlu1 %v3549_v6, %s3132_s9  ;;  %v2123_v6 = vmul.f32 %v2121_v48, %v3443_v16  ;;  %v2213_v48 = vstv %s2880_s27  ;;  %s2809_s27 = sld [smem:[#allocation8 + $0x1d]] }
 0x35a   : > { %2045 = vrot.lane.b32.xlu0 %v2042_v28, %s3129_s13  ;;  %v2215_v59 = vmul.f32 %v2213_v48, %v3443_v16  ;;  %v2216_v15 = vmul.f32 %v2213_v48, %v3445_v17  ;;  %v2174_v51 = vrot.slane %v2168_v31, 3 }
 0x35b   : > { %v3887_v63 = vpop.permute.xlu1 %1073  ;;  %v2129_v23 = vrot.slane %v2123_v6, 1  ;;  %v2175_v6 = vrot.slane %v2169_v1, 3 }
 0x35c   : > { %5322 = vst [vmem:[#allocation32_spill] sm:$0xff] %v3887_v63  ;;  %v3889_v30 = vpop.permute.xlu0 %1075 }
 0x35d   : > { %5323 = vst [vmem:[#allocation33_spill] sm:$0xff] %v3889_v30  ;;  %2091 = vrot.lane.b32.xlu1 %v2088_v32, %s3129_s13  ;;  %v2132_v40 = vsel %vm399_vm8, %v2129_v23, %v2131_v20  ;;  %v2221_v20 = vrot.slane %v2215_v59, 5 }
 0x35e   : > { %2154 = vrot.lane.b32.xlu0 %v2151_v37, %s3132_s9  ;;  %v2170_v37 = vmul.f32 %v2167_v47, %v3445_v17  ;;  %v2214_v47 = vmul.f32 %v2213_v48, %v3436_v11 }
 0x35f   : > { %v3899_v57 = vpop.permute.xlu1 %1089 }
 0x360   : > { %5325 = vst [vmem:[#allocation34_spill] sm:$0xff] %v3899_v57  ;;  %v3901_v7 = vpop.permute.xlu0 %1091  ;;  %v2177_v61 = vrot.slane %v2170_v37, 3  ;;  %v2220_v59 = vrot.slane %v2214_v47, 5  ;;  %v603_v37 = vstv %s3942_s12  ;;  %s2817_s12 = sld [smem:[#allocation8 + $0x25]] }
 0x361   : > { %5326 = vst [vmem:[#allocation35_spill] sm:$0xff] %v3901_v7  ;;  %2200 = vrot.lane.b32.xlu1 %v2197_v12, %s3132_s9  ;;  %v2176_v12 = vsel %vm395_vm6, %v2174_v51, %v2175_v6 }
 0x362   : > { %2093 = vrot.lane.b32.xlu0 %v2090_v58, %s3129_s13  ;;  %v2223_v58 = vrot.slane %v2216_v15, 5  ;;  %v2315_v15 = vmul.f32 %v3542_v5, %v3436_v11 }
 0x363   : > { %v3909_v8 = vpop.permute.xlu1 %1093 }
 0x364   : > { %v3912_v28 = vpop.permute.xlu0 %1379  ;;  %v2224_v31 = vsel %vm391_vm4, %v2221_v20, %v2223_v58  ;;  %v2321_v58 = vrot.slane %v2315_v15, 2  ;;  %v4018_v15 = vstv %s2815_s8  ;;  %s2825_s8 = sld [smem:[#allocation8 + $0x2d]] }
 0x365   : > { %5328 = vst [vmem:[#allocation36_spill] sm:$0xff] %v3912_v28  ;;  %2135 = vrot.lane.b32.xlu1 %v2132_v40, %s3132_s9  ;;  %v3948_v40 = vstv %s2887_s30  ;;  %s3990_s30 = sld [smem:[#allocation8 + $0x3]] }
 0x366   : > { %2202 = vrot.lane.b32.xlu0 %v3565_v13, %s3132_s9  ;;  %v2130_v13 = vsel %vm399_vm8, %v2128_v27, %v2129_v23  ;;  %v2178_v27 = vsel %vm395_vm6, %v2175_v6, %v2177_v61  ;;  %v2361_v26 = vmul.f32 %v3948_v40, %v3436_v11  ;;  %v2222_v6 = vsel %vm391_vm4, %v2220_v59, %v2221_v20 }
 0x367   : > { %v3920_v52 = vpop.permute.xlu1 %1381  ;;  %v3988_v20 = vmul.f32 %v603_v37, %v3483_v41  ;;  %v3997_v61 = vstv %s2811_s17  ;;  %v4010_v59 = vmul.f32 %v603_v37, %v3512_v56  ;;  %v4027_v37 = vstv %s2809_s27  ;;  %s2823_s17 = sld [smem:[#allocation8 + $0x1f]] }
 0x368   : > { %5329 = vst [vmem:[#allocation37_spill] sm:$0xff] %v3920_v52  ;;  %v3924_v32 = vpop.permute.xlu0 %1395  ;;  %v2367_v51 = vrot.slane %v2361_v26, 4  ;;  %v4049_v42 = vstv %s2817_s12  ;;  %s2831_s27 = sld [smem:[#allocation8 + $0x27]] }
 0x369   : > { %5330 = vst [vmem:[#allocation38_spill] sm:$0xff] %v3924_v32  ;;  %2248 = vrot.lane.b32.xlu1 %v3573_v14, %s3132_s9  ;;  %v5333_v14 = vrot.slane %v3539_v3, 5  ;;  %v3955_v3 = vmul.f32 %v3948_v40, %v3443_v16  ;;  %s4082_s12 = sld [smem:[#allocation8 + $0x5]] }
 0x36a   : > { %2133 = vrot.lane.b32.xlu0 %v2130_v13, %s3132_s9  ;;  %v4096_v18 = vstv %s2825_s8  ;;  %s2843_s8 = sld [smem:[#allocation8 + $0x1b]] }
 0x36b   : > { %v3933_v55 = vpop.permute.xlu1 %1397  ;;  %v2243_v23 = vsel %vm391_vm4, %v2241_v39, %v5333_v14  ;;  %v5266_v16 = vrot.slane %v3955_v3, 4  ;;  %v3974_v39 = vstv %s2807_s19  ;;  %v5340_v14 = vrot.slane %v3580_v21, 2  ;;  %s2821_s19 = sld [smem:[#allocation8 + $0x11]] }
 0x36c   : > { %5331 = vst [vmem:[#allocation39_spill] sm:$0xff] %v3933_v55  ;;  %v3935_v46 = vpop.permute.xlu0 %1399  ;;  %v3980_v11 = vmul.f32 %v3974_v39, %v3526_v62  ;;  %v5268_v21 = vrot.slane %v3988_v20, 7 }
 0x36d   : > { %5332 = vst [vmem:[#allocation40_spill] sm:$0xff] %v3935_v46  ;;  %2179 = vrot.lane.b32.xlu1 %v2176_v12, %s3132_s9 }
 0x36e   : > { %2246 = vrot.lane.b32.xlu0 %v2243_v23, %s3132_s9  ;;  %v2323_v23 = vsel %vm397_vm7, %v2321_v58, %v5340_v14  ;;  %v4025_v58 = vmul.f32 %v4018_v15, %v3526_v62  ;;  %v5274_v14 = vrot.slane %v4010_v59, 7 }
 0x36f   : > { %v3945_v17 = vpop.permute.xlu1 %1764 }
 0x370   : > { %5334 = vst [vmem:[#allocation41_spill] sm:$0xff] %v3945_v17  ;;  %v3950_v1 = vpop.permute.xlu0 %1718  ;;  %v5364_v17 = vrot.slane %v3988_v20, 7 }
 0x371   : > { %5335 = vst [vmem:[#allocation42_spill] sm:$0xff] %v3950_v1  ;;  %2227 = vrot.lane.b32.xlu1 %v2224_v31, %s3132_s9  ;;  %v5267_v31 = vrot.slane %v3980_v11, 1  ;;  %v4070_v2 = vstv %s2821_s19  ;;  %s2835_s19 = sld [smem:[#allocation8 + $0x13]] }
 0x372   : > { %2181 = vrot.lane.b32.xlu0 %v2178_v27, %s3132_s9  ;;  %v4004_v27 = vmul.f32 %v3997_v61, %v3526_v62 }
 0x373   : > { %v3962_v48 = vpop.permute.xlu1 %1852 }
 0x374   : > { %5336 = vst [vmem:[#allocation43_spill] sm:$0xff] %v3962_v48  ;;  %v3966_v13 = vpop.permute.xlu0 %1802 }
 0x375   : > { %5337 = vst [vmem:[#allocation44_spill] sm:$0xff] %v3966_v13  ;;  %2328 = vrot.lane.b32.xlu1 %v3592_v25, %s3130_s14  ;;  %v2369_v25 = vsel %vm393_vm5, %v2367_v51, %v5266_v16  ;;  %v5273_v51 = vrot.slane %v4004_v27, 5  ;;  %v909_v16 = vstv %s3990_s30  ;;  %s2829_s30 = sld [smem:[#allocation8 + $0x19]] }
 0x376   : > { %2225 = vrot.lane.b32.xlu0 %v2222_v6, %s3132_s9  ;;  %v4047_v44 = vmul.f32 %v909_v16, %v3483_v41  ;;  %v4068_v24 = vmul.f32 %v909_v16, %v3512_v56  ;;  %v4087_v16 = vstv %s2823_s17  ;;  %s2839_s17 = sld [smem:[#allocation8 + $0x2f]] }
 0x377   : > { %v3976_v12 = vpop.permute.xlu1 %1944 }
 0x378   : > { %5338 = vst [vmem:[#allocation45_spill] sm:$0xff] %v3976_v12  ;;  %v3982_v5 = vpop.permute.xlu0 %1806  ;;  %v5277_v60 = vrot.slane %v4047_v44, 7 }
 0x379   : > { %5339 = vst [vmem:[#allocation46_spill] sm:$0xff] %v3982_v5  ;;  %2372 = vrot.lane.b32.xlu1 %v2369_v25, %s3130_s14  ;;  %v5363_v5 = vrot.slane %v4010_v59, 7 }
 0x37a   : > { %2326 = vrot.lane.b32.xlu0 %v2323_v23, %s3130_s14  ;;  %v4034_v23 = vmul.f32 %v4027_v37, %v3526_v62 }
 0x37b   : > { %v3999_v47 = vpop.permute.xlu1 %2024  ;;  %v4120_v49 = vstv %s2829_s30  ;;  %s2845_s30 = sld [smem:[#allocation8 + $0x29]] }
 0x37c   : > { %5341 = vst [vmem:[#allocation47_spill] sm:$0xff] %v3999_v47  ;;  %v4006_v26 = vpop.permute.xlu0 %1898  ;;  %v5276_v43 = vrot.slane %v4034_v23, 3 }
 0x37d   : > { %5342 = vst [vmem:[#allocation48_spill] sm:$0xff] %v4006_v26  ;;  %661 = vrot.lane.b32.xlu1 %v5267_v31, %s3128_s24 }
 0x37e   : > { %611 = vrot.lane.b32.xlu0 %v5268_v21, %s3128_s24  ;;  %v5275_v21 = vrot.slane %v4025_v58, 2 }
 0x37f   : > { %v4020_v6 = vpop.permute.xlu1 %2108 }
 0x380   : > { %5343 = vst [vmem:[#allocation49_spill] sm:$0xff] %v4020_v6  ;;  %v4029_v25 = vpop.permute.xlu0 %2070  ;;  %v4094_v6 = vmul.f32 %v4087_v16, %v3526_v62 }
 0x381   : > { %5344 = vst [vmem:[#allocation50_spill] sm:$0xff] %v4029_v25  ;;  %753 = vrot.lane.b32.xlu1 %v5273_v51, %s3128_s24  ;;  %v4056_v51 = vmul.f32 %v4049_v42, %v3526_v62  ;;  %v4136_v25 = vstv %s2835_s19  ;;  %v4205_v52 = vstv %s2845_s30  ;;  %s2808_s19 = sld [smem:[#allocation8 + $0x16]] }
 0x382   : > { %615 = vrot.lane.b32.xlu0 %v5274_v14, %s3128_s24  ;;  %v4143_v13 = vmul.f32 %v4136_v25, %v3526_v62  ;;  %v4212_v48 = vmul.f32 %v4205_v52, %v3526_v62  ;;  %s2818_s30 = sld [smem:[#allocation8 + $0x2c]] }
 0x383   : > { %v4043_v31 = vpop.permute.xlu1 %2112  ;;  %v5278_v50 = vrot.slane %v4056_v51, 4 }
 0x384   : > { %5345 = vst [vmem:[#allocation51_spill] sm:$0xff] %v4043_v31  ;;  %v4051_v45 = vpop.permute.xlu0 %2158  ;;  %v5291_v1 = vrot.slane %v4212_v48, 4 }
 0x385   : > { %5346 = vst [vmem:[#allocation52_spill] sm:$0xff] %v4051_v45  ;;  %833 = vrot.lane.b32.xlu1 %v5275_v21, %s3131_s29  ;;  %v4077_v21 = vmul.f32 %v4070_v2, %v3526_v62 }
 0x386   : > { %707 = vrot.lane.b32.xlu0 %v5276_v43, %s3128_s24 }
 0x387   : > { %v4064_v14 = vpop.permute.xlu1 %2204  ;;  %v5280_v22 = vrot.slane %v4077_v21, 1 }
 0x388   : > { %5347 = vst [vmem:[#allocation53_spill] sm:$0xff] %v4064_v14  ;;  %v4072_v35 = vpop.permute.xlu0 %2250  ;;  %v4111_v14 = vstv %s2831_s27  ;;  %s2837_s27 = sld [smem:[#allocation8 + $0x21]] }
 0x389   : > { %5348 = vst [vmem:[#allocation54_spill] sm:$0xff] %v4072_v35  ;;  %917 = vrot.lane.b32.xlu1 %v5277_v60, %s3129_s13  ;;  %v5279_v35 = vrot.slane %v4068_v24, 7  ;;  %v4118_v53 = vmul.f32 %v4111_v14, %v3526_v62 }
 0x38a   : > { %879 = vrot.lane.b32.xlu0 %v5278_v50, %s3131_s29  ;;  %v4103_v50 = vmul.f32 %v4096_v18, %v3526_v62 }
 0x38b   : > { %v4089_v43 = vpop.permute.xlu1 %1695 }
 0x38c   : > { %5349 = vst [vmem:[#allocation55_spill] sm:$0xff] %v4089_v43  ;;  %v4098_v60 = vpop.permute.xlu0 %2330  ;;  %v1215_v43 = vstv %s4082_s12  ;;  %s2806_s12 = sld [smem:[#allocation8 + $0x8]] }
 0x38d   : > { %5350 = vst [vmem:[#allocation56_spill] sm:$0xff] %v4098_v60  ;;  %921 = vrot.lane.b32.xlu1 %v5279_v35, %s3129_s13  ;;  %v5281_v60 = vrot.slane %v4094_v6, 3  ;;  %v5282_v35 = vrot.slane %v4103_v50, 5  ;;  %v4149_v47 = vmul.f32 %v1215_v43, %v3483_v41  ;;  %v4170_v19 = vmul.f32 %v1215_v43, %v3512_v56 }
 0x38e   : > { %967 = vrot.lane.b32.xlu0 %v5280_v22, %s3129_s13  ;;  %v4127_v22 = vmul.f32 %v4120_v49, %v3526_v62  ;;  %v4187_v43 = vstv %s2837_s27  ;;  %s2816_s27 = sld [smem:[#allocation8 + $0x1e]] }
 0x38f   : > { %v4113_v45 = vpop.permute.xlu1 %1716  ;;  %v4194_v12 = vmul.f32 %v4187_v43, %v3526_v62 }
 0x390   : > { %5351 = vst [vmem:[#allocation57_spill] sm:$0xff] %v4113_v45  ;;  %v4122_v31 = vpop.permute.xlu0 %1693 }
 0x391   : > { %5352 = vst [vmem:[#allocation58_spill] sm:$0xff] %v4122_v31  ;;  %1013 = vrot.lane.b32.xlu1 %v5281_v60, %s3129_s13  ;;  %v5283_v31 = vrot.slane %v4118_v53, 4  ;;  %v5284_v60 = vrot.slane %v4127_v22, 2  ;;  %v5290_v26 = vrot.slane %v4194_v12, 3 }
 0x392   : > { %1059 = vrot.lane.b32.xlu0 %v5282_v35, %s3129_s13  ;;  %v4157_v35 = vstv %s2839_s17  ;;  %s2810_s17 = sld [smem:[#allocation8 + $0x24]] }
 0x393   : > { %v4138_v54 = vpop.permute.xlu1 %1739  ;;  %v4164_v45 = vmul.f32 %v4157_v35, %v3526_v62 }
 0x394   : > { %5353 = vst [vmem:[#allocation59_spill] sm:$0xff] %v4138_v54  ;;  %v4145_v10 = vpop.permute.xlu0 %1714 }
 0x395   : > { %5354 = vst [vmem:[#allocation60_spill] sm:$0xff] %v4145_v10  ;;  %1185 = vrot.lane.b32.xlu1 %v5283_v31, %s3132_s9  ;;  %v5285_v10 = vrot.slane %v4143_v13, 1  ;;  %v5286_v31 = vrot.slane %v4149_v47, 7  ;;  %v5287_v38 = vrot.slane %v4164_v45, 5 }
 0x396   : > { %1139 = vrot.lane.b32.xlu0 %v5284_v60, %s3132_s9  ;;  %v4178_v60 = vstv %s2843_s8  ;;  %s2814_s8 = sld [smem:[#allocation8 + $0x10]] }
 0x397   : > { %v4159_v54 = vpop.permute.xlu1 %1760 }
 0x398   : > { %5355 = vst [vmem:[#allocation61_spill] sm:$0xff] %v4159_v54  ;;  %v4166_v41 = vpop.permute.xlu0 %1741 }
 0x399   : > { %5356 = vst [vmem:[#allocation62_spill] sm:$0xff] %v4166_v41  ;;  %1273 = vrot.lane.b32.xlu1 %v5285_v10, %s3130_s14  ;;  %v4185_v41 = vmul.f32 %v4178_v60, %v3526_v62  ;;  %v5288_v10 = vrot.slane %v4170_v19, 7 }
 0x39a   : > { %1223 = vrot.lane.b32.xlu0 %v5286_v31, %s3130_s14 }
 0x39b   : > { %v4180_v54 = vpop.permute.xlu1 %1787 }
 0x39c   : > { %5357 = vst [vmem:[#allocation63_spill] sm:$0xff] %v4180_v54  ;;  %v4189_v29 = vpop.permute.xlu0 %1762  ;;  %v5289_v54 = vrot.slane %v4185_v41, 2 }
 0x39d   : > { %5358 = vst [vmem:[#allocation64_spill] sm:$0xff] %v4189_v29  ;;  %1365 = vrot.lane.b32.xlu1 %v5287_v38, %s3130_s14  ;;  %v624_v29 = vstv %s2806_s12  ;;  %s2822_s12 = sld [smem:[#allocation8 + $0x18]] }
 0x39e   : > { %1227 = vrot.lane.b32.xlu0 %v5288_v10, %s3130_s14  ;;  %v626_v38 = vmul.f32 %v624_v29, %v3512_v56  ;;  %v627_v10 = vmul.f32 %v624_v29, %v3526_v62 }
 0x39f   : > { %v4202_v31 = vpop.permute.xlu1 %1804 }
 0x3a0   : > { %5359 = vst [vmem:[#allocation65_spill] sm:$0xff] %v4202_v31  ;;  %v4207_v28 = vpop.permute.xlu0 %1785  ;;  %v4222_v31 = vld [vmem:[#allocation2] sm:$0xff]  ;;  %v632_v30 = vrot.slane %v626_v38, 1  ;;  %v634_v63 = vrot.slane %v627_v10, 1 }
 0x3a1   : > { %5360 = vst [vmem:[#allocation66_spill] sm:$0xff] %v4207_v28  ;;  %1445 = vrot.lane.b32.xlu1 %v5289_v54, %s3133_s18  ;;  %v625_v28 = vmul.f32 %v4222_v31, %v624_v29  ;;  %v610_v54 = vsel %vm387_vm2, %v5364_v17, %v5363_v5  ;;  %v646_v59 = vmul.f32 %v4222_v31, %v3974_v39  ;;  %v670_v17 = vstv %s2808_s19  ;;  %s2824_s19 = sld [smem:[#allocation8 + $0x26]] }
 0x3a2   : > { %1319 = vrot.lane.b32.xlu0 %v5290_v26, %s3130_s14  ;;  %v647_v26 = vmul.f32 %v3974_v39, %v3512_v56 }
 0x3a3   : > { %v4225_v32 = vpop.permute.xlu1 %1848  ;;  %v631_v29 = vrot.slane %v625_v28, 1  ;;  %v635_v28 = vsel %vm399_vm8, %v632_v30, %v634_v63  ;;  %v652_v39 = vrot.slane %v646_v59, 1  ;;  %v5369_v63 = vrot.slane %v3980_v11, 1 }
 0x3a4   : > { %5361 = vst [vmem:[#allocation67_spill] sm:$0xff] %v4225_v32  ;;  %v4227_v55 = vpop.permute.xlu0 %1850  ;;  %v653_v56 = vrot.slane %v647_v26, 1  ;;  %v4248_v32 = vld [vmem:[#allocation2 + $0x8] sm:$0xff] }
 0x3a5   : > { %5362 = vst [vmem:[#allocation68_spill] sm:$0xff] %v4227_v55  ;;  %613 = vrot.lane.b32.xlu1 %v610_v54, %s3128_s24  ;;  %v633_v38 = vsel %vm399_vm8, %v631_v29, %v632_v30  ;;  %v672_v10 = vmul.f32 %v4248_v32, %v670_v17  ;;  %v673_v54 = vmul.f32 %v670_v17, %v3526_v62 }
 0x3a6   : > { %1491 = vrot.lane.b32.xlu0 %v5291_v1, %s3133_s18  ;;  %v654_v26 = vsel %vm399_vm8, %v652_v39, %v653_v56  ;;  %v693_v62 = vmul.f32 %v4248_v32, %v4027_v37  ;;  %v656_v30 = vsel %vm399_vm8, %v653_v56, %v5369_v63  ;;  %v4278_v56 = vld [vmem:[#allocation2 + $0x10] sm:$0x3f] }
 0x3a7   : > { %v4243_v20 = vpop.permute.xlu1 %1896  ;;  %v678_v29 = vrot.slane %v672_v10, 3  ;;  %v680_v55 = vrot.slane %v673_v54, 3 }
 0x3a8   : > { %5365 = vst [vmem:[#allocation69_spill] sm:$0xff] %v4243_v20  ;;  %v4245_v5 = vpop.permute.xlu0 %1894  ;;  %v699_v39 = vrot.slane %v693_v62, 3 }
 0x3a9   : > { %5366 = vst [vmem:[#allocation70_spill] sm:$0xff] %v4245_v5  ;;  %636 = vrot.lane.b32.xlu1 %v633_v38, %s3128_s24  ;;  %v671_v5 = vmul.f32 %v4222_v31, %v670_v17  ;;  %v692_v38 = vmul.f32 %v4222_v31, %v4027_v37  ;;  %v681_v54 = vsel %vm395_vm6, %v678_v29, %v680_v55  ;;  %v5374_v55 = vrot.slane %v4034_v23, 3 }
 0x3aa   : > { %638 = vrot.lane.b32.xlu0 %v635_v28, %s3128_s24  ;;  %v716_v28 = vstv %s2810_s17  ;;  %v796_v23 = vstv %s2814_s8  ;;  %s2830_s17 = sld [smem:[#allocation8 + $0x20]] }
 0x3ab   : > { %v4255_v1 = vpop.permute.xlu1 %1827  ;;  %v677_v17 = vrot.slane %v671_v5, 3  ;;  %v719_v5 = vmul.f32 %v4278_v56, %v716_v28  ;;  %v717_v37 = vmul.f32 %v4222_v31, %v716_v28  ;;  %v702_v62 = vsel %vm395_vm6, %v699_v39, %v5374_v55  ;;  %s2832_s8 = sld [smem:[#allocation8 + $0x2e]] }
 0x3ac   : > { %5367 = vst [vmem:[#allocation71_spill] sm:$0xff] %v4255_v1  ;;  %v4258_v20 = vpop.permute.xlu0 %1829 }
 0x3ad   : > { %5368 = vst [vmem:[#allocation72_spill] sm:$0xff] %v4258_v20  ;;  %657 = vrot.lane.b32.xlu1 %v654_v26, %s3128_s24  ;;  %v718_v26 = vmul.f32 %v4248_v32, %v716_v28  ;;  %v679_v11 = vsel %vm395_vm6, %v677_v17, %v678_v29  ;;  %v739_v29 = vmul.f32 %v4248_v32, %v3997_v61  ;;  %v723_v28 = vrot.slane %v717_v37, 5 }
 0x3ae   : > { %659 = vrot.lane.b32.xlu0 %v656_v30, %s3128_s24  ;;  %v698_v30 = vrot.slane %v692_v38, 3  ;;  %v738_v38 = vmul.f32 %v4222_v31, %v3997_v61  ;;  %v797_v37 = vmul.f32 %v4222_v31, %v796_v23 }
 0x3af   : > { %v4268_v59 = vpop.permute.xlu1 %1940 }
 0x3b0   : > { %5370 = vst [vmem:[#allocation73_spill] sm:$0xff] %v4268_v59  ;;  %v4272_v10 = vpop.permute.xlu0 %1942  ;;  %v700_v17 = vsel %vm395_vm6, %v698_v30, %v699_v39  ;;  %v744_v61 = vrot.slane %v738_v38, 5  ;;  %v803_v38 = vrot.slane %v797_v37, 2 }
 0x3b1   : > { %5371 = vst [vmem:[#allocation74_spill] sm:$0xff] %v4272_v10  ;;  %684 = vrot.lane.b32.xlu1 %v681_v54, %s3128_s24  ;;  %v724_v54 = vrot.slane %v718_v26, 5 }
 0x3b2   : > { %682 = vrot.lane.b32.xlu0 %v679_v11, %s3128_s24  ;;  %v726_v11 = vrot.slane %v719_v5, 5  ;;  %v799_v5 = vmul.f32 %v4278_v56, %v796_v23 }
 0x3b3   : > { %v4283_v63 = vpop.permute.xlu1 %1875  ;;  %v725_v26 = vsel %vm391_vm4, %v723_v28, %v724_v54 }
 0x3b4   : > { %5372 = vst [vmem:[#allocation75_spill] sm:$0xff] %v4283_v63  ;;  %v4285_v20 = vpop.permute.xlu0 %1873  ;;  %v727_v39 = vsel %vm391_vm4, %v724_v54, %v726_v11  ;;  %v5379_v54 = vrot.slane %v4004_v27, 5 }
 0x3b5   : > { %5373 = vst [vmem:[#allocation76_spill] sm:$0xff] %v4285_v20  ;;  %705 = vrot.lane.b32.xlu1 %v702_v62, %s3128_s24  ;;  %v745_v20 = vrot.slane %v739_v29, 5  ;;  %v798_v62 = vmul.f32 %v4248_v32, %v796_v23  ;;  %v818_v23 = vmul.f32 %v4222_v31, %v4018_v15 }
 0x3b6   : > { %703 = vrot.lane.b32.xlu0 %v700_v17, %s3128_s24 }
 0x3b7   : > { %v4297_v63 = vpop.permute.xlu1 %1919  ;;  %v746_v28 = vsel %vm391_vm4, %v744_v61, %v745_v20  ;;  %v804_v29 = vrot.slane %v798_v62, 2  ;;  %v748_v11 = vsel %vm391_vm4, %v745_v20, %v5379_v54  ;;  %v842_v61 = vstv %s2816_s27  ;;  %s2836_s27 = sld [smem:[#allocation8 + $0x1a]] }
 0x3b8   : > { %5375 = vst [vmem:[#allocation77_spill] sm:$0xff] %v4297_v63  ;;  %v4299_v55 = vpop.permute.xlu0 %1921  ;;  %v844_v27 = vmul.f32 %v4248_v32, %v842_v61  ;;  %v845_v20 = vmul.f32 %v4278_v56, %v842_v61  ;;  %v843_v54 = vmul.f32 %v4222_v31, %v842_v61  ;;  %v864_v61 = vmul.f32 %v4222_v31, %v4049_v42 }
 0x3b9   : > { %5376 = vst [vmem:[#allocation78_spill] sm:$0xff] %v4299_v55  ;;  %728 = vrot.lane.b32.xlu1 %v725_v26, %s3128_s24  ;;  %v819_v55 = vmul.f32 %v4248_v32, %v4018_v15  ;;  %v806_v26 = vrot.slane %v799_v5, 2  ;;  %v805_v63 = vsel %vm397_vm7, %v803_v38, %v804_v29  ;;  %v824_v15 = vrot.slane %v818_v23, 2 }
 0x3ba   : > { %730 = vrot.lane.b32.xlu0 %v727_v39, %s3128_s24  ;;  %v850_v38 = vrot.slane %v844_v27, 4  ;;  %v849_v23 = vrot.slane %v843_v54, 4 }
 0x3bb   : > { %v4308_v30 = vpop.permute.xlu1 %2020  ;;  %v807_v5 = vsel %vm397_vm7, %v804_v29, %v806_v26 }
 0x3bc   : > { %5377 = vst [vmem:[#allocation79_spill] sm:$0xff] %v4308_v30  ;;  %v4310_v17 = vpop.permute.xlu0 %2022 }
 0x3bd   : > { %5378 = vst [vmem:[#allocation80_spill] sm:$0xff] %v4310_v17  ;;  %749 = vrot.lane.b32.xlu1 %v746_v28, %s3128_s24  ;;  %v825_v28 = vrot.slane %v819_v55, 2 }
 0x3be   : > { %751 = vrot.lane.b32.xlu0 %v748_v11, %s3128_s24  ;;  %s2820_s24 = sld [smem:[#allocation8 + $0xa]] }
 0x3bf   : > { %v4322_v39 = vpop.permute.xlu1 %2068  ;;  %v826_v55 = vsel %vm397_vm7, %v824_v15, %v825_v28 }
 0x3c0   : > { %5380 = vst [vmem:[#allocation81_spill] sm:$0xff] %v4322_v39  ;;  %v4324_v62 = vpop.permute.xlu0 %2066  ;;  %v865_v39 = vmul.f32 %v4248_v32, %v4049_v42  ;;  %v870_v42 = vrot.slane %v864_v61, 4 }
 0x3c1   : > { %5381 = vst [vmem:[#allocation82_spill] sm:$0xff] %v4324_v62  ;;  %808 = vrot.lane.b32.xlu1 %v805_v63, %s3131_s29  ;;  %v852_v62 = vrot.slane %v845_v20, 4  ;;  %v5384_v63 = vrot.slane %v4025_v58, 2  ;;  %v851_v58 = vsel %vm393_vm5, %v849_v23, %v850_v38 }
 0x3c2   : > { %810 = vrot.lane.b32.xlu0 %v807_v5, %s3131_s29  ;;  %v888_v5 = vstv %s2818_s30  ;;  %v871_v15 = vrot.slane %v865_v39, 4  ;;  %v5389_v39 = vrot.slane %v4056_v51, 4  ;;  %s2801_s30 = sld [smem:[#allocation8 + $0x15]] }
 0x3c3   : > { %v4332_v37 = vpop.permute.xlu1 %1999  ;;  %v828_v29 = vsel %vm397_vm7, %v825_v28, %v5384_v63  ;;  %v853_v20 = vsel %vm393_vm5, %v850_v38, %v852_v62  ;;  %v891_v28 = vmul.f32 %v4278_v56, %v888_v5  ;;  %v889_v54 = vmul.f32 %v4222_v31, %v888_v5 }
 0x3c4   : > { %5382 = vst [vmem:[#allocation83_spill] sm:$0xff] %v4332_v37  ;;  %v4335_v11 = vpop.permute.xlu0 %2001  ;;  %v874_v62 = vsel %vm393_vm5, %v871_v15, %v5389_v39  ;;  %v953_v37 = vmul.f32 %v4248_v32, %v4070_v2 }
 0x3c5   : > { %5383 = vst [vmem:[#allocation84_spill] sm:$0xff] %v4335_v11  ;;  %829 = vrot.lane.b32.xlu1 %v826_v55, %s3131_s29  ;;  %v890_v55 = vmul.f32 %v4248_v32, %v888_v5  ;;  %v872_v5 = vsel %vm393_vm5, %v870_v42, %v871_v15  ;;  %v895_v61 = vrot.slane %v889_v54, 6  ;;  %v976_v54 = vstv %s2822_s12  ;;  %s2803_s12 = sld [smem:[#allocation8 + $0x23]] }
 0x3c6   : > { %831 = vrot.lane.b32.xlu0 %v828_v29, %s3131_s29  ;;  %v930_v29 = vstv %s2820_s24  ;;  %s2838_s24 = sld [smem:[#allocation8 + $0x28]] }
 0x3c7   : > { %v4345_v26 = vpop.permute.xlu1 %2047  ;;  %v932_v38 = vmul.f32 %v4248_v32, %v930_v29  ;;  %v933_v23 = vmul.f32 %v4278_v56, %v930_v29 }
 0x3c8   : > { %5385 = vst [vmem:[#allocation85_spill] sm:$0xff] %v4345_v26  ;;  %v4349_v27 = vpop.permute.xlu0 %2110 }
 0x3c9   : > { %5386 = vst [vmem:[#allocation86_spill] sm:$0xff] %v4349_v27  ;;  %856 = vrot.lane.b32.xlu1 %v853_v20, %s3131_s29  ;;  %v896_v20 = vrot.slane %v890_v55, 6  ;;  %v938_v39 = vrot.slane %v932_v38, 1  ;;  %v940_v55 = vrot.slane %v933_v23, 1  ;;  %v959_v23 = vrot.slane %v953_v37, 1 }
 0x3ca   : > { %854 = vrot.lane.b32.xlu0 %v851_v58, %s3131_s29  ;;  %v898_v58 = vrot.slane %v891_v28, 6  ;;  %v931_v28 = vmul.f32 %v4222_v31, %v930_v29  ;;  %v977_v29 = vmul.f32 %v4222_v31, %v976_v54  ;;  %v952_v37 = vmul.f32 %v4222_v31, %v4070_v2 }
 0x3cb   : > { %v4358_v63 = vpop.permute.xlu1 %2156  ;;  %v897_v51 = vsel %vm389_vm3, %v895_v61, %v896_v20  ;;  %v941_v38 = vsel %vm399_vm8, %v938_v39, %v940_v55  ;;  %v5394_v61 = vrot.slane %v4068_v24, 7  ;;  %v998_v2 = vmul.f32 %v4222_v31, %v4087_v16 }
 0x3cc   : > { %5387 = vst [vmem:[#allocation87_spill] sm:$0xff] %v4358_v63  ;;  %v4360_v26 = vpop.permute.xlu0 %2045  ;;  %v1351_v63 = vmul.f32 %v4248_v32, %v4157_v35 }
 0x3cd   : > { %5388 = vst [vmem:[#allocation88_spill] sm:$0xff] %v4360_v26  ;;  %877 = vrot.lane.b32.xlu1 %v874_v62, %s3131_s29  ;;  %v899_v62 = vsel %vm389_vm3, %v896_v20, %v898_v58  ;;  %v5395_v20 = vrot.slane %v4047_v44, 7  ;;  %v999_v44 = vmul.f32 %v4248_v32, %v4087_v16  ;;  %v1004_v16 = vrot.slane %v998_v2, 3 }
 0x3ce   : > { %875 = vrot.lane.b32.xlu0 %v872_v5, %s3131_s29  ;;  %v978_v5 = vmul.f32 %v4248_v32, %v976_v54 }
 0x3cf   : > { %v4370_v11 = vpop.permute.xlu1 %2091  ;;  %v916_v58 = vsel %vm387_vm2, %v5395_v20, %v5394_v61  ;;  %v979_v20 = vmul.f32 %v4278_v56, %v976_v54 }
 0x3d0   : > { %5390 = vst [vmem:[#allocation89_spill] sm:$0xff] %v4370_v11  ;;  %v4372_v26 = vpop.permute.xlu0 %2154  ;;  %v1045_v11 = vmul.f32 %v4248_v32, %v4096_v18 }
 0x3d1   : > { %5391 = vst [vmem:[#allocation90_spill] sm:$0xff] %v4372_v26  ;;  %900 = vrot.lane.b32.xlu1 %v897_v51, %s3131_s29 }
 0x3d2   : > { %902 = vrot.lane.b32.xlu0 %v899_v62, %s3131_s29  ;;  %v937_v62 = vrot.slane %v931_v28, 1  ;;  %v983_v28 = vrot.slane %v977_v29, 3  ;;  %s2828_s29 = sld [smem:[#allocation8 + $0x12]] }
 0x3d3   : > { %v4380_v15 = vpop.permute.xlu1 %2200 }
 0x3d4   : > { %5392 = vst [vmem:[#allocation91_spill] sm:$0xff] %v4380_v15  ;;  %v4383_v42 = vpop.permute.xlu0 %2093  ;;  %v939_v61 = vsel %vm399_vm8, %v937_v62, %v938_v39  ;;  %v986_v62 = vrot.slane %v979_v20, 3 }
 0x3d5   : > { %5393 = vst [vmem:[#allocation92_spill] sm:$0xff] %v4383_v42  ;;  %944 = vrot.lane.b32.xlu1 %v941_v38, %s3129_s13  ;;  %v5398_v38 = vrot.slane %v4077_v21, 1  ;;  %v984_v42 = vrot.slane %v978_v5, 3  ;;  %v958_v21 = vrot.slane %v952_v37, 1 }
 0x3d6   : > { %919 = vrot.lane.b32.xlu0 %v916_v58, %s3129_s13 }
 0x3d7   : > { %v4395_v51 = vpop.permute.xlu1 %2135  ;;  %v962_v24 = vsel %vm399_vm8, %v959_v23, %v5398_v38  ;;  %v1022_v38 = vstv %s2824_s19  ;;  %v960_v29 = vsel %vm399_vm8, %v958_v21, %v959_v23  ;;  %s4565_s19 = sld [smem:[#allocation8 + $0x14]] }
 0x3d8   : > { %5396 = vst [vmem:[#allocation93_spill] sm:$0xff] %v4395_v51  ;;  %v4399_v55 = vpop.permute.xlu0 %2202  ;;  %v985_v51 = vsel %vm395_vm6, %v983_v28, %v984_v42  ;;  %v1024_v39 = vmul.f32 %v4248_v32, %v1022_v38  ;;  %v1025_v54 = vmul.f32 %v4278_v56, %v1022_v38  ;;  %v1023_v20 = vmul.f32 %v4222_v31, %v1022_v38 }
 0x3d9   : > { %5397 = vst [vmem:[#allocation94_spill] sm:$0xff] %v4399_v55  ;;  %965 = vrot.lane.b32.xlu1 %v962_v24, %s3129_s13  ;;  %v1005_v24 = vrot.slane %v999_v44, 3  ;;  %v1102_v2 = vstv %s2828_s29  ;;  %s4588_s29 = sld [smem:[#allocation8 + $0x44]] }
 0x3da   : > { %942 = vrot.lane.b32.xlu0 %v939_v61, %s3129_s13  ;;  %v1030_v28 = vrot.slane %v1024_v39, 5  ;;  %v1032_v44 = vrot.slane %v1025_v54, 5  ;;  %v1051_v54 = vrot.slane %v1045_v11, 5  ;;  %v5408_v11 = vrot.slane %v4103_v50, 5 }
 0x3db   : > { %v4412_v58 = vpop.permute.xlu1 %2248 }
 0x3dc   : > { %5399 = vst [vmem:[#allocation95_spill] sm:$0xff] %v4412_v58  ;;  %v4414_v5 = vpop.permute.xlu0 %2133  ;;  %v1033_v39 = vsel %vm391_vm4, %v1030_v28, %v1032_v44 }
 0x3dd   : > { %5400 = vst [vmem:[#allocation96_spill] sm:$0xff] %v4414_v5  ;;  %988 = vrot.lane.b32.xlu1 %v985_v51, %s3129_s13  ;;  %v1006_v5 = vsel %vm395_vm6, %v1004_v16, %v1005_v24  ;;  %v987_v51 = vsel %vm395_vm6, %v984_v42, %v986_v62  ;;  %v1105_v16 = vmul.f32 %v4278_v56, %v1102_v2  ;;  %v5405_v42 = vrot.slane %v4094_v6, 3 }
 0x3de   : > { %963 = vrot.lane.b32.xlu0 %v960_v29, %s3129_s13  ;;  %v1104_v29 = vmul.f32 %v4248_v32, %v1102_v2  ;;  %v1029_v62 = vrot.slane %v1023_v20, 5  ;;  %v1125_v6 = vmul.f32 %v4248_v32, %v4120_v49 }
 0x3df   : > { %v4422_v37 = vpop.permute.xlu1 %2179 }
 0x3e0   : > { %5401 = vst [vmem:[#allocation97_spill] sm:$0xff] %v4422_v37  ;;  %v4424_v61 = vpop.permute.xlu0 %2246 }
 0x3e1   : > { %5402 = vst [vmem:[#allocation98_spill] sm:$0xff] %v4424_v61  ;;  %1009 = vrot.lane.b32.xlu1 %v1006_v5, %s3129_s13  ;;  %v1008_v5 = vsel %vm395_vm6, %v1005_v24, %v5405_v42  ;;  %v1031_v24 = vsel %vm391_vm4, %v1029_v62, %v1030_v28  ;;  %v1103_v42 = vmul.f32 %v4222_v31, %v1102_v2 }
 0x3e2   : > { %990 = vrot.lane.b32.xlu0 %v987_v51, %s3129_s13  ;;  %v1044_v51 = vmul.f32 %v4222_v31, %v4096_v18  ;;  %v1305_v61 = vmul.f32 %v4248_v32, %v4187_v43 }
 0x3e3   : > { %v4432_v23 = vpop.permute.xlu1 %2227  ;;  %v1109_v2 = vrot.slane %v1103_v42, 2 }
 0x3e4   : > { %5403 = vst [vmem:[#allocation99_spill] sm:$0xff] %v4432_v23  ;;  %v4435_v21 = vpop.permute.xlu0 %2181  ;;  %v1054_v23 = vsel %vm391_vm4, %v1051_v54, %v5408_v11  ;;  %v1050_v18 = vrot.slane %v1044_v51, 5  ;;  %v1124_v51 = vmul.f32 %v4222_v31, %v4120_v49  ;;  %v1170_v49 = vmul.f32 %v4222_v31, %v4111_v14 }
 0x3e5   : > { %5404 = vst [vmem:[#allocation100_spill] sm:$0xff] %v4435_v21  ;;  %1036 = vrot.lane.b32.xlu1 %v1033_v39, %s3129_s13  ;;  %v1110_v21 = vrot.slane %v1104_v29, 2  ;;  %v1112_v39 = vrot.slane %v1105_v16, 2  ;;  %v1131_v16 = vrot.slane %v1125_v6, 2 }
 0x3e6   : > { %1011 = vrot.lane.b32.xlu0 %v1008_v5, %s3129_s13  ;;  %v1148_v5 = vstv %s2830_s17  ;;  %v1052_v28 = vsel %vm391_vm4, %v1050_v18, %v1051_v54  ;;  %v1171_v54 = vmul.f32 %v4248_v32, %v4111_v14  ;;  %v1176_v14 = vrot.slane %v1170_v49, 4  ;;  %s4598_s17 = sld [smem:[#allocation8 + $0xe]] }
 0x3e7   : > { %v4445_v38 = vpop.permute.xlu1 %2328  ;;  %v1113_v29 = vsel %vm397_vm7, %v1110_v21, %v1112_v39  ;;  %v1150_v11 = vmul.f32 %v4248_v32, %v1148_v5  ;;  %v5411_v39 = vrot.slane %v4127_v22, 2  ;;  %v1111_v18 = vsel %vm397_vm7, %v1109_v2, %v1110_v21 }
 0x3e8   : > { %5406 = vst [vmem:[#allocation101_spill] sm:$0xff] %v4445_v38  ;;  %v4449_v44 = vpop.permute.xlu0 %2225  ;;  %v1130_v22 = vrot.slane %v1124_v51, 2 }
 0x3e9   : > { %5407 = vst [vmem:[#allocation102_spill] sm:$0xff] %v4449_v44  ;;  %1057 = vrot.lane.b32.xlu1 %v1054_v23, %s3129_s13  ;;  %v1149_v23 = vmul.f32 %v4222_v31, %v1148_v5  ;;  %v1134_v6 = vsel %vm397_vm7, %v1131_v16, %v5411_v39  ;;  %v1194_v39 = vstv %s2832_s8  ;;  %s4615_s8 = sld [smem:[#allocation8 + $0x22]] }
 0x3ea   : > { %1034 = vrot.lane.b32.xlu0 %v1031_v24, %s3129_s13  ;;  %v1196_v21 = vmul.f32 %v4248_v32, %v1194_v39 }
 0x3eb   : > { %v4459_v20 = vpop.permute.xlu1 %2372  ;;  %v1155_v42 = vrot.slane %v1149_v23, 4  ;;  %v1132_v23 = vsel %vm397_vm7, %v1130_v22, %v1131_v16  ;;  %v1195_v16 = vmul.f32 %v4222_v31, %v1194_v39 }
 0x3ec   : > { %5409 = vst [vmem:[#allocation103_spill] sm:$0xff] %v4459_v20  ;;  %v4462_v50 = vpop.permute.xlu0 %2326  ;;  %v1156_v20 = vrot.slane %v1150_v11, 4 }
 0x3ed   : > { %5410 = vst [vmem:[#allocation104_spill] sm:$0xff] %v4462_v50  ;;  %1116 = vrot.lane.b32.xlu1 %v1113_v29, %s3132_s9  ;;  %v1151_v29 = vmul.f32 %v4278_v56, %v1148_v5  ;;  %v1197_v5 = vmul.f32 %v4278_v56, %v1194_v39 }
 0x3ee   : > { %1055 = vrot.lane.b32.xlu0 %v1052_v28, %s3129_s13  ;;  %s2834_s13 = sld [smem:[#allocation8 + $0xc]]  ;;  %v1157_v44 = vsel %vm393_vm5, %v1155_v42, %v1156_v20  ;;  %v1202_v42 = vrot.slane %v1196_v21, 6 }
 0x3ef   : > { %v4470_v62 = vpop.permute.xlu1 %661  ;;  %v1158_v2 = vrot.slane %v1151_v29, 4 }
 0x3f0   : > { %v4474_v24 = vpop.permute.xlu0 %611 }
 0x3f1   : > { %1137 = vrot.lane.b32.xlu1 %v1134_v6, %s3132_s9  ;;  %v1177_v6 = vrot.slane %v1171_v54, 4  ;;  %v1204_v54 = vrot.slane %v1197_v5, 6  ;;  %v1159_v37 = vsel %vm393_vm5, %v1156_v20, %v1158_v2  ;;  %v1201_v5 = vrot.slane %v1195_v16, 6 }
 0x3f2   : > { %1114 = vrot.lane.b32.xlu0 %v1111_v18, %s3132_s9 }
 0x3f3   : > { %v4487_v28 = vpop.permute.xlu1 %753  ;;  %v1178_v50 = vsel %vm393_vm5, %v1176_v14, %v1177_v6  ;;  %v1205_v22 = vsel %vm389_vm3, %v1202_v42, %v1204_v54  ;;  %v5414_v14 = vrot.slane %v4170_v19, 7  ;;  %v5415_v54 = vrot.slane %v4149_v47, 7 }
 0x3f4   : > { %v4489_v11 = vpop.permute.xlu0 %615  ;;  %v1236_v29 = vstv %s2834_s13  ;;  %v1258_v19 = vmul.f32 %v4222_v31, %v4136_v25  ;;  %v1282_v47 = vstv %s2836_s27  ;;  %s4628_s13 = sld [smem:[#allocation8 + $0x1c]] }
 0x3f5   : > { %1160 = vrot.lane.b32.xlu1 %v1157_v44, %s3132_s9  ;;  %v1237_v39 = vmul.f32 %v4222_v31, %v1236_v29  ;;  %s4632_s27 = sld [smem:[#allocation8]] }
 0x3f6   : > { %1135 = vrot.lane.b32.xlu0 %v1132_v23, %s3132_s9  ;;  %v1238_v23 = vmul.f32 %v4248_v32, %v1236_v29 }
 0x3f7   : > { %v4497_v51 = vpop.permute.xlu1 %833  ;;  %v1243_v16 = vrot.slane %v1237_v39, 1 }
 0x3f8   : > { %v4499_v18 = vpop.permute.xlu0 %707 }
 0x3f9   : > { %1181 = vrot.lane.b32.xlu1 %v1178_v50, %s3132_s9  ;;  %v5413_v50 = vrot.slane %v4118_v53, 4  ;;  %v1244_v53 = vrot.slane %v1238_v23, 1 }
 0x3fa   : > { %1162 = vrot.lane.b32.xlu0 %v1159_v37, %s3132_s9  ;;  %v1239_v37 = vmul.f32 %v4278_v56, %v1236_v29  ;;  %v550_v57 = vstv %s4628_s13  ;;  %s2895_s13 = sld [smem:[#allocation8 + $0x61]] }
 0x3fb   : > { %v4505_v44 = vpop.permute.xlu1 %917  ;;  %v1180_v20 = vsel %vm393_vm5, %v1177_v6, %v5413_v50  ;;  %v1259_v6 = vmul.f32 %v4248_v32, %v4136_v25  ;;  %v1203_v50 = vsel %vm389_vm3, %v1201_v5, %v1202_v42  ;;  %v1285_v42 = vmul.f32 %v4278_v56, %v1282_v47 }
 0x3fc   : > { %5412 = vst [vmem:[#allocation105_spill] sm:$0xff] %v4505_v44  ;;  %v4508_v49 = vpop.permute.xlu0 %879  ;;  %v1246_v29 = vrot.slane %v1239_v37, 1  ;;  %v1264_v25 = vrot.slane %v1258_v19, 1  ;;  %v1283_v5 = vmul.f32 %v4222_v31, %v1282_v47  ;;  %v531_v19 = vstv %s2801_s30  ;;  %s4640_s30 = sld [smem:[#allocation8 + $0x2a]] }
 0x3fd   : > { %1208 = vrot.lane.b32.xlu1 %v1205_v22, %s3132_s9  ;;  %v1222_v22 = vsel %vm387_vm2, %v5415_v54, %v5414_v14  ;;  %v1245_v14 = vsel %vm399_vm8, %v1243_v16, %v1244_v53  ;;  %v1265_v54 = vrot.slane %v1259_v6, 1  ;;  %v1292_v38 = vrot.slane %v1285_v42, 3 }
 0x3fe   : > { %1183 = vrot.lane.b32.xlu0 %v1180_v20, %s3132_s9  ;;  %v1247_v37 = vsel %vm399_vm8, %v1244_v53, %v1246_v29  ;;  %v5417_v53 = vrot.slane %v4143_v13, 1  ;;  %v1328_v42 = vstv %s2838_s24  ;;  %v4584_v55 = vmul.f32 %v4278_v56, %v531_v19  ;;  %s4690_s24 = sld [smem:[#allocation8 + $0x30]] }
 0x3ff   : > { %v4519_v21 = vpop.permute.xlu1 %921  ;;  %v1266_v6 = vsel %vm399_vm8, %v1264_v25, %v1265_v54  ;;  %v1331_v58 = vmul.f32 %v4278_v56, %v1328_v42  ;;  %v1329_v15 = vmul.f32 %v4222_v31, %v1328_v42  ;;  %v500_v44 = vstv %s4632_s27  ;;  %s2892_s27 = sld [smem:[#allocation8 + $0x4c]] }
 0x400   : > { %v4521_v2 = vpop.permute.xlu0 %967  ;;  %v1268_v29 = vsel %vm399_vm8, %v1265_v54, %v5417_v53  ;;  %v1311_v54 = vrot.slane %v1305_v61, 3  ;;  %v532_v53 = vmul.f32 %v4222_v31, %v531_v19 }
 0x401   : > { %1225 = vrot.lane.b32.xlu1 %v1222_v22, %s3130_s14  ;;  %v1284_v22 = vmul.f32 %v4248_v32, %v1282_v47  ;;  %v4559_v47 = vmul.f32 %v4248_v32, %v531_v19  ;;  %v1338_v27 = vrot.slane %v1331_v58, 5  ;;  %v1408_v58 = vstv %s4565_s19  ;;  %s4762_s19 = sld [smem:[#allocation8 + $0x45]] }
 0x402   : > { %1206 = vrot.lane.b32.xlu0 %v1203_v50, %s3132_s9  ;;  %s2799_s9 = sld [smem:[#allocation8 + $0x7]]  ;;  %v538_v19 = vrot.slane %v532_v53, 2  ;;  %v1409_v53 = vmul.f32 %v4222_v31, %v1408_v58 }
 0x403   : > { %v4535_v20 = vpop.permute.xlu1 %1013  ;;  %v1290_v16 = vrot.slane %v1284_v22, 3  ;;  %v1304_v22 = vmul.f32 %v4222_v31, %v4187_v43 }
 0x404   : > { %v4537_v23 = vpop.permute.xlu0 %1059 }
 0x405   : > { %1248 = vrot.lane.b32.xlu1 %v1245_v14, %s3130_s14  ;;  %v1293_v13 = vsel %vm395_vm6, %v1290_v16, %v1292_v38 }
 0x406   : > { %1250 = vrot.lane.b32.xlu0 %v1247_v37, %s3130_s14  ;;  %v1289_v37 = vrot.slane %v1283_v5, 3 }
 0x407   : > { %v4545_v39 = vpop.permute.xlu1 %1185 }
 0x408   : > { %5416 = vst [vmem:[#allocation106_spill] sm:$0xff] %v4545_v39  ;;  %v4548_v50 = vpop.permute.xlu0 %1139  ;;  %v1291_v5 = vsel %vm395_vm6, %v1289_v37, %v1290_v16  ;;  %v4575_v43 = vstv %s2799_s9  ;;  %s4752_s9 = sld [smem:[#allocation8 + $0x52]] }
 0x409   : > { %1269 = vrot.lane.b32.xlu1 %v1266_v6, %s3130_s14  ;;  %v1330_v6 = vmul.f32 %v4248_v32, %v1328_v42  ;;  %v507_v30 = vmul.f32 %v4222_v31, %v4575_v43 }
 0x40a   : > { %1271 = vrot.lane.b32.xlu0 %v1268_v29, %s3130_s14  ;;  %v567_v29 = vstv %s2803_s12  ;;  %s4727_s12 = sld [smem:[#allocation8 + $0x37]] }
 0x40b   : > { %v4561_v14 = vpop.permute.xlu1 %1273  ;;  %v4581_v61 = vmul.f32 %v4248_v32, %v567_v29  ;;  %v568_v16 = vmul.f32 %v4222_v31, %v567_v29  ;;  %v1336_v38 = vrot.slane %v1330_v6, 5  ;;  %v1350_v6 = vmul.f32 %v4222_v31, %v4157_v35 }
 0x40c   : > { %5418 = vst [vmem:[#allocation107_spill] sm:$0xff] %v4561_v14  ;;  %v4567_v25 = vpop.permute.xlu0 %1223  ;;  %v1410_v35 = vmul.f32 %v4248_v32, %v1408_v58  ;;  %v502_v14 = vmul.f32 %v4248_v32, %v500_v44 }
 0x40d   : > { %5419 = vst [vmem:[#allocation108_spill] sm:$0xff] %v4567_v25  ;;  %1296 = vrot.lane.b32.xlu1 %v1293_v13, %s3130_s14  ;;  %v1310_v13 = vrot.slane %v1304_v22, 3 }
 0x40e   : > { %1294 = vrot.lane.b32.xlu0 %v1291_v5, %s3130_s14  ;;  %v5422_v5 = vrot.slane %v4194_v12, 3  ;;  %v1335_v12 = vrot.slane %v1329_v15, 5 }
 0x40f   : > { %v4586_v26 = vpop.permute.xlu1 %1365  ;;  %v1312_v22 = vsel %vm395_vm6, %v1310_v13, %v1311_v54 }
 0x410   : > { %5420 = vst [vmem:[#allocation109_spill] sm:$0xff] %v4586_v26  ;;  %v4591_v37 = vpop.permute.xlu0 %1227  ;;  %v1314_v42 = vsel %vm395_vm6, %v1311_v54, %v5422_v5  ;;  %v5423_v5 = vrot.slane %v4559_v47, 2  ;;  %v574_v54 = vrot.slane %v568_v16, 4  ;;  %v1337_v15 = vsel %vm391_vm4, %v1335_v12, %v1336_v38 }
 0x411   : > { %5421 = vst [vmem:[#allocation110_spill] sm:$0xff] %v4591_v37  ;;  %1317 = vrot.lane.b32.xlu1 %v1314_v42, %s3130_s14  ;;  %v541_v42 = vrot.slane %v4584_v55, 2  ;;  %v1339_v55 = vsel %vm391_vm4, %v1336_v38, %v1338_v27  ;;  %v1411_v16 = vmul.f32 %v4278_v56, %v1408_v58  ;;  %v4643_v27 = vstv %s4588_s29  ;;  %s4794_s29 = sld [smem:[#allocation8 + $0x60]] }
 0x412   : > { %1315 = vrot.lane.b32.xlu0 %v1312_v22, %s3130_s14  ;;  %v540_v17 = vsel %vm397_vm7, %v538_v19, %v5423_v5  ;;  %v1357_v22 = vrot.slane %v1351_v63, 5  ;;  %v509_v19 = vmul.f32 %v4278_v56, %v4575_v43  ;;  %v4624_v5 = vmul.f32 %v4278_v56, %v567_v29 }
 0x413   : > { %v4612_v1 = vpop.permute.xlu1 %1445  ;;  %v546_v12 = vadd.f32 %v540_v17, %v507_v30  ;;  %v1356_v63 = vrot.slane %v1350_v6, 5  ;;  %v5426_v29 = vrot.slane %v4581_v61, 4  ;;  %v514_v17 = vstv %s4598_s17  ;;  %s2893_s17 = sld [smem:[#allocation8 + $0x53]] }
 0x414   : > { %5424 = vst [vmem:[#allocation111_spill] sm:$0xff] %v4612_v1  ;;  %v4617_v13 = vpop.permute.xlu0 %1319  ;;  %v1416_v6 = vrot.slane %v1410_v35, 2  ;;  %v1431_v58 = vmul.f32 %v4248_v32, %v4178_v60  ;;  %v1418_v25 = vrot.slane %v1411_v16, 2  ;;  %v517_v35 = vmul.f32 %v4278_v56, %v514_v17 }
 0x415   : > { %5425 = vst [vmem:[#allocation112_spill] sm:$0xff] %v4617_v13  ;;  %1340 = vrot.lane.b32.xlu1 %v1337_v15, %s3130_s14  ;;  %v576_v59 = vsel %vm393_vm5, %v574_v54, %v5426_v29  ;;  %v548_v15 = vadd.f32 %v541_v42, %v509_v19  ;;  %v1358_v30 = vsel %vm391_vm4, %v1356_v63, %v1357_v22  ;;  %v5428_v54 = vrot.slane %v4164_v45, 5 }
 0x416   : > { %1342 = vrot.lane.b32.xlu0 %v1339_v55, %s3130_s14  ;;  %v516_v29 = vmul.f32 %v4248_v32, %v514_v17  ;;  %v4657_v36 = vadd.f32 %v576_v59, %v546_v12  ;;  %v1415_v63 = vrot.slane %v1409_v53, 2  ;;  %v1430_v55 = vmul.f32 %v4222_v31, %v4178_v60 }
 0x417   : > { %v4638_v10 = vpop.permute.xlu1 %613  ;;  %v1360_v19 = vsel %vm391_vm4, %v1357_v22, %v5428_v54  ;;  %v508_v22 = vmul.f32 %v4248_v32, %v4575_v43  ;;  %v515_v59 = vmul.f32 %v4222_v31, %v514_v17  ;;  %v1454_v16 = vstv %s4615_s8  ;;  %s2890_s8 = sld [smem:[#allocation8 + $0x3e]] }
 0x418   : > { %v4645_v38 = vpop.permute.xlu0 %1491  ;;  %v1417_v53 = vsel %vm397_vm7, %v1415_v63, %v1416_v6  ;;  %v1456_v60 = vmul.f32 %v4248_v32, %v1454_v16  ;;  %v1457_v7 = vmul.f32 %v4278_v56, %v1454_v16  ;;  %v522_v43 = vrot.slane %v516_v29, 2 }
 0x419   : > { %5427 = vst [vmem:[#allocation113_spill] sm:$0xff] %v4645_v38  ;;  %1361 = vrot.lane.b32.xlu1 %v1358_v30, %s3130_s14  ;;  %v5429_v30 = vrot.slane %v4624_v5, 4  ;;  %v1419_v17 = vsel %vm397_vm7, %v1416_v6, %v1418_v25  ;;  %v552_v38 = vmul.f32 %v4248_v32, %v550_v57  ;;  %v524_v1 = vrot.slane %v517_v35, 2 }
 0x41a   : > { %1363 = vrot.lane.b32.xlu0 %v1360_v19, %s3130_s14  ;;  %v1437_v19 = vrot.slane %v1431_v58, 2  ;;  %v1436_v58 = vrot.slane %v1430_v55, 2  ;;  %v586_v63 = vstv %s4640_s30  ;;  %v521_v46 = vrot.slane %v515_v59, 2  ;;  %s4910_s30 = sld [smem:[#allocation8 + $0x31]] }
 0x41b   : > { %v584_v45 = vadd.f32 %v5429_v30, %v548_v15  ;;  %v4667_v54 = vpop.permute.xlu1 %636  ;;  %v5430_v15 = vrot.slane %v4559_v47, 2  ;;  %v553_v26 = vmul.f32 %v4278_v56, %v550_v57  ;;  %v1462_v6 = vrot.slane %v1456_v60, 4 }
 0x41c   : > { %v4671_v12 = vpop.permute.xlu0 %638  ;;  %v1438_v25 = vsel %vm397_vm7, %v1436_v58, %v1437_v19  ;;  %v1477_v35 = vmul.f32 %v4248_v32, %v4205_v52  ;;  %v501_v55 = vmul.f32 %v4222_v31, %v500_v44  ;;  %v523_v59 = vsel %vm397_vm7, %v521_v46, %v522_v43 }
 0x41d   : > { %v542_v30 = vsel %vm397_vm7, %v5430_v15, %v541_v42  ;;  %1420 = vrot.lane.b32.xlu1 %v1417_v53, %s3133_s18  ;;  %v1455_v42 = vmul.f32 %v4222_v31, %v1454_v16  ;;  %v1464_v53 = vrot.slane %v1457_v7, 4  ;;  %v551_v15 = vmul.f32 %v4222_v31, %v550_v57 }
 0x41e   : > { %1422 = vrot.lane.b32.xlu0 %v1419_v17, %s3133_s18  ;;  %v5431_v16 = vrot.slane %v4185_v41, 2  ;;  %v558_v13 = vrot.slane %v552_v38, 4  ;;  %v588_v58 = vmul.f32 %v4248_v32, %v586_v63  ;;  %v587_v7 = vmul.f32 %v4222_v31, %v586_v63 }
 0x41f   : > { %v4687_v47 = vpop.permute.xlu1 %657  ;;  %v525_v60 = vsel %vm397_vm7, %v522_v43, %v524_v1  ;;  %v589_v46 = vmul.f32 %v4278_v56, %v586_v63  ;;  %v1476_v41 = vmul.f32 %v4222_v31, %v4205_v52  ;;  %v560_v38 = vrot.slane %v553_v26, 4  ;;  %v4719_v63 = vld [vmem:[#allocation2 + $0x28] sm:$0x3f] }
 0x420   : > { %v4692_v29 = vpop.permute.xlu0 %659  ;;  %v1440_v17 = vsel %vm397_vm7, %v1437_v19, %v5431_v16  ;;  %v528_v19 = vadd.f32 %v523_v59, %v501_v55  ;;  %v1465_v37 = vsel %vm393_vm5, %v1462_v6, %v1464_v53  ;;  %v1483_v39 = vrot.slane %v1477_v35, 4 }
 0x421   : > { %1441 = vrot.lane.b32.xlu1 %v1438_v25, %s3133_s18  ;;  %v1461_v25 = vrot.slane %v1455_v42, 4  ;;  %v557_v1 = vrot.slane %v551_v15, 4  ;;  %v529_v43 = vadd.f32 %v525_v60, %v502_v14  ;;  %v2363_v42 = vmul.f32 %v4719_v63, %v3948_v40 }
 0x422   : > { %1443 = vrot.lane.b32.xlu0 %v1440_v17, %s3133_s18  ;;  %v622_v52 = vadd.f32 %v4489_v11, %v584_v45  ;;  %v547_v26 = vadd.f32 %v542_v30, %v508_v22  ;;  %v594_v55 = vrot.slane %v588_v58, 6  ;;  %v593_v59 = vrot.slane %v587_v7, 6 }
 0x423   : > { %v4710_v57 = vpop.permute.xlu1 %684  ;;  %v1463_v44 = vsel %vm393_vm5, %v1461_v25, %v1462_v6  ;;  %v559_v53 = vsel %vm393_vm5, %v557_v1, %v558_v13  ;;  %v596_v35 = vrot.slane %v589_v46, 6  ;;  %v1482_v15 = vrot.slane %v1476_v41, 4  ;;  %v4745_v41 = vld [vmem:[#allocation2 + $0x20] sm:$0xff] }
 0x424   : > { %v4714_v16 = vpop.permute.xlu0 %682  ;;  %v564_v6 = vadd.f32 %v559_v53, %v528_v19  ;;  %v561_v17 = vsel %vm393_vm5, %v558_v13, %v560_v38  ;;  %v5432_v40 = vrot.slane %v4212_v48, 4  ;;  %v2370_v58 = vrot.slane %v2363_v42, 4 }
 0x425   : > { %1468 = vrot.lane.b32.xlu1 %v1465_v37, %s3133_s18  ;;  %v1500_v37 = vstv %s4690_s24  ;;  %v565_v22 = vadd.f32 %v561_v17, %v529_v43  ;;  %v1484_v30 = vsel %vm393_vm5, %v1482_v15, %v1483_v39  ;;  %v668_v46 = vadd.f32 %v4470_v62, %v622_v52  ;;  %s2851_s24 = sld [smem:[#allocation8 + $0x4d]] }
 0x426   : > { %1466 = vrot.lane.b32.xlu0 %v1463_v44, %s3133_s18  ;;  %v1486_v11 = vsel %vm393_vm5, %v1483_v39, %v5432_v40  ;;  %v1502_v45 = vmul.f32 %v4248_v32, %v1500_v37  ;;  %v1503_v7 = vmul.f32 %v4278_v56, %v1500_v37  ;;  %v5433_v25 = vrot.slane %v4624_v5, 4 }
 0x427   : > { %v706_v14 = vpop.permute.xlu1 %705  ;;  %v5434_v13 = vrot.slane %v4581_v61, 4  ;;  %v1501_v32 = vmul.f32 %v4222_v31, %v1500_v37  ;;  %v2295_v39 = vmul.f32 %v4745_v41, %v4643_v27  ;;  %v595_v56 = vsel %vm389_vm3, %v593_v59, %v594_v55  ;;  %v4768_v37 = vld [vmem:[#allocation2 + $0x18] sm:$0xff] }
 0x428   : > { %v704_v60 = vpop.permute.xlu0 %703  ;;  %v2296_v62 = vmul.f32 %v4719_v63, %v4643_v27  ;;  %v620_v61 = vadd.f32 %v4474_v24, %v4657_v36  ;;  %v600_v5 = vadd.f32 %v595_v56, %v564_v6  ;;  %v597_v31 = vsel %vm389_vm3, %v594_v55, %v596_v35 }
 0x429   : > { %1489 = vrot.lane.b32.xlu1 %v1486_v11, %s3133_s18  ;;  %v578_v48 = vsel %vm393_vm5, %v5434_v13, %v5433_v25  ;;  %v1508_v43 = vrot.slane %v1502_v45, 6  ;;  %v601_v42 = vadd.f32 %v597_v31, %v565_v22  ;;  %v5435_v52 = vrot.slane %v3955_v3, 4 }
 0x42a   : > { %1487 = vrot.lane.b32.xlu0 %v1484_v30, %s3133_s18  ;;  %v583_v19 = vadd.f32 %v578_v48, %v547_v26  ;;  %v1510_v59 = vrot.slane %v1503_v7, 6  ;;  %v714_v36 = vadd.f32 %v4499_v18, %v668_v46  ;;  %v666_v24 = vadd.f32 %v4687_v47, %v620_v61 }
 0x42b   : > { %v729_v38 = vpop.permute.xlu1 %728  ;;  %v2371_v26 = vsel %vm393_vm5, %v5435_v52, %v2370_v58  ;;  %v1507_v55 = vrot.slane %v1501_v32, 6  ;;  %v2301_v53 = vrot.slane %v2295_v39, 2  ;;  %v2303_v15 = vrot.slane %v2296_v62, 2 }
 0x42c   : > { %v731_v1 = vpop.permute.xlu0 %730  ;;  %v621_v44 = vadd.f32 %v4638_v10, %v583_v19  ;;  %v2294_v3 = vmul.f32 %v4768_v37, %v4643_v27  ;;  %v2406_v6 = vstv %s4727_s12  ;;  %v643_v17 = vadd.f32 %v4671_v12, %v601_v42  ;;  %s2853_s12 = sld [smem:[#allocation8 + $0x5b]] }
 0x42d   : > { %2376 = vrot.lane.b32.xlu1 %v2370_v58, %s3130_s14  ;;  %v712_v40 = vadd.f32 %v704_v60, %v666_v24  ;;  %v1509_v47 = vsel %vm389_vm3, %v1507_v55, %v1508_v43  ;;  %v2408_v11 = vmul.f32 %v4745_v41, %v2406_v6  ;;  %v642_v45 = vadd.f32 %v4667_v54, %v600_v5 }
 0x42e   : > { %2374 = vrot.lane.b32.xlu0 %v2371_v26, %s3130_s14  ;;  %v667_v10 = vadd.f32 %v4692_v29, %v621_v44  ;;  %v1511_v22 = vsel %vm389_vm3, %v1508_v43, %v1510_v59  ;;  %v760_v30 = vadd.f32 %v4487_v28, %v714_v36  ;;  %v689_v27 = vadd.f32 %v4710_v57, %v643_v17 }
 0x42f   : > { %v750_v35 = vpop.permute.xlu1 %749  ;;  %v2407_v12 = vmul.f32 %v4768_v37, %v2406_v6  ;;  %v688_v60 = vadd.f32 %v4714_v16, %v642_v45  ;;  %v2300_v54 = vrot.slane %v2294_v3, 2  ;;  %v2304_v48 = vsel %vm397_vm7, %v2301_v53, %v2303_v15 }
 0x430   : > { %v752_v18 = vpop.permute.xlu0 %751  ;;  %v713_v29 = vadd.f32 %v706_v14, %v667_v10  ;;  %v758_v58 = vadd.f32 %v750_v35, %v712_v40  ;;  %v2339_v14 = vstv %s4752_s9  ;;  %v735_v25 = vadd.f32 %v731_v1, %v689_v27  ;;  %s4997_s9 = sld [smem:[#allocation8 + $0x38]] }
 0x431   : > { %1512 = vrot.lane.b32.xlu1 %v1509_v47, %s3133_s18  ;;  %v2412_v32 = vrot.slane %v2408_v11, 7  ;;  %v2341_v28 = vmul.f32 %v4745_v41, %v2339_v14  ;;  %v734_v57 = vadd.f32 %v729_v38, %v688_v60  ;;  %v2302_v39 = vsel %vm397_vm7, %v2300_v54, %v2301_v53 }
 0x432   : > { %1514 = vrot.lane.b32.xlu0 %v1511_v22, %s3133_s18  ;;  %v759_v7 = vadd.f32 %v752_v18, %v713_v29  ;;  %v2448_v19 = vstv %s4762_s19  ;;  %v794_v56 = vadd.f32 %v3878_v4, %v760_v30  ;;  %v792_v16 = vadd.f32 %v3866_v0, %v758_v58  ;;  %s5008_s19 = sld [smem:[#allocation8 + $0x46]] }
 0x433   : > { %v809_v46 = vpop.permute.xlu1 %808  ;;  %v2411_v62 = vrot.slane %v2407_v12, 7  ;;  %v2340_v61 = vmul.f32 %v4768_v37, %v2339_v14  ;;  %v2450_v38 = vmul.f32 %v4745_v41, %v2448_v19  ;;  %v774_v1 = vadd.f32 %v3863_v33, %v735_v25 }
 0x434   : > { %v811_v13 = vpop.permute.xlu0 %810  ;;  %v793_v31 = vadd.f32 %v3874_v34, %v759_v7  ;;  %v2347_v42 = vrot.slane %v2341_v28, 4  ;;  %v773_v52 = vadd.f32 %v3857_v9, %v734_v57  ;;  %v2342_v26 = vmul.f32 %v4719_v63, %v2339_v14 }
 0x435   : > { %2307 = vrot.lane.b32.xlu1 %v2304_v48, %s3130_s14  ;;  %v2413_v4 = vsel %vm387_vm2, %v2411_v62, %v2412_v32  ;;  %v840_v59 = vadd.f32 %v4497_v51, %v794_v56  ;;  %v815_v36 = vadd.f32 %v811_v13, %v774_v1  ;;  %v2346_v34 = vrot.slane %v2340_v61, 4 }
 0x436   : > { %2305 = vrot.lane.b32.xlu0 %v2302_v39, %s3130_s14  ;;  %v2449_v33 = vmul.f32 %v4768_v37, %v2448_v19  ;;  %v814_v24 = vadd.f32 %v809_v46, %v773_v52  ;;  %v2456_v35 = vrot.slane %v2450_v38, 1  ;;  %v2349_v3 = vrot.slane %v2342_v26, 4 }
 0x437   : > { %v830_v5 = vpop.permute.xlu1 %829  ;;  %v2348_v9 = vsel %vm393_vm5, %v2346_v34, %v2347_v42  ;;  %v2451_v51 = vmul.f32 %v4719_v63, %v2448_v19  ;;  %v886_v6 = vadd.f32 %v4508_v49, %v840_v59  ;;  %v2385_v40 = vstv %s4794_s29  ;;  %s5033_s29 = sld [smem:[#allocation8 + $0x54]] }
 0x438   : > { %v838_v43 = vadd.f32 %v830_v5, %v792_v16  ;;  %v832_v44 = vpop.permute.xlu0 %831  ;;  %v2455_v17 = vrot.slane %v2449_v33, 1  ;;  %v2387_v47 = vmul.f32 %v4745_v41, %v2385_v40  ;;  %v2388_v11 = vmul.f32 %v4719_v63, %v2385_v40 }
 0x439   : > { %v839_v0 = vadd.f32 %v832_v44, %v793_v31  ;;  %2416 = vrot.lane.b32.xlu1 %v2413_v4, %s3133_s18  ;;  %v2350_v49 = vsel %vm393_vm5, %v2347_v42, %v2349_v3  ;;  %v2458_v27 = vrot.slane %v2451_v51, 1  ;;  %v928_v58 = vadd.f32 %v4519_v21, %v886_v6 }
 0x43a   : > { %2414 = vrot.lane.b32.xlu0 %v2411_v62, %s3133_s18  ;;  %v2457_v22 = vsel %vm399_vm8, %v2455_v17, %v2456_v35  ;;  %v2393_v60 = vrot.slane %v2387_v47, 6  ;;  %v2395_v7 = vrot.slane %v2388_v11, 6  ;;  %v2386_v46 = vmul.f32 %v4768_v37, %v2385_v40 }
 0x43b   : > { %v857_v55 = vpop.permute.xlu1 %856  ;;  %v2494_v54 = vstv %s2893_s17  ;;  %v2459_v21 = vsel %vm399_vm8, %v2456_v35, %v2458_v27  ;;  %v974_v28 = vadd.f32 %v4521_v2, %v928_v58  ;;  %v2427_v16 = vstv %s2890_s8  ;;  %s2576_s17 = sld [smem:[#allocation3]]  ;;  %s5533_s8 = smov 80  }
 0x43c   : > { %v861_v53 = vadd.f32 %v857_v55, %v815_v36  ;;  %v855_v10 = vpop.permute.xlu0 %854  ;;  %v2496_v13 = vmul.f32 %v4745_v41, %v2494_v54  ;;  %v2497_v48 = vmul.f32 %v4719_v63, %v2494_v54  ;;  %v2396_v39 = vsel %vm389_vm3, %v2393_v60, %v2395_v7 }
 0x43d   : > { %v860_v15 = vadd.f32 %v855_v10, %v814_v24  ;;  %2351 = vrot.lane.b32.xlu1 %v2348_v9, %s3130_s14  ;;  %v2392_v19 = vrot.slane %v2386_v46, 6  ;;  %v2495_v56 = vmul.f32 %v4768_v37, %v2494_v54  ;;  %v2429_v38 = vmul.f32 %v4745_v41, %v2427_v16 }
 0x43e   : > { %2418 = vrot.lane.b32.xlu0 %v2412_v32, %s3133_s18  ;;  %v2502_v5 = vrot.slane %v2496_v13, 3  ;;  %v2504_v31 = vrot.slane %v2497_v48, 3  ;;  %v1020_v1 = vadd.f32 %v4535_v20, %v974_v28  ;;  %v2540_v42 = vstv %s2895_s13 }
 0x43f   : > { %v878_v18 = vpop.permute.xlu1 %877  ;;  %v2394_v2 = vsel %vm389_vm3, %v2392_v19, %v2393_v60  ;;  %v2501_v4 = vrot.slane %v2495_v56, 3  ;;  %v2435_v26 = vrot.slane %v2429_v38, 1  ;;  %v2542_v59 = vmul.f32 %v4745_v41, %v2540_v42  ;;  %v5437_v56 = vld [vmem:[#allocation110_spill] sm:$0xff] }
 0x440   : > { %v4814_v45 = vadd.f32 %v878_v18, %v839_v0  ;;  %v876_v29 = vpop.permute.xlu0 %875  ;;  %v2505_v0 = vsel %vm395_vm6, %v2502_v5, %v2504_v31  ;;  %v2430_v36 = vmul.f32 %v4719_v63, %v2427_v16  ;;  %v1066_v34 = vadd.f32 %v4537_v23, %v1020_v1 }
 0x441   : > { %v4817_v30 = vadd.f32 %v876_v29, %v838_v43  ;;  %2460 = vrot.lane.b32.xlu1 %v2457_v22, %s3133_s18  ;;  %v2428_v43 = vmul.f32 %v4768_v37, %v2427_v16  ;;  %v2503_v20 = vsel %vm395_vm6, %v2501_v4, %v2502_v5  ;;  %v2541_v24 = vmul.f32 %v4768_v37, %v2540_v42 }
 0x442   : > { %2353 = vrot.lane.b32.xlu0 %v2350_v49, %s3130_s14  ;;  %v2548_v9 = vrot.slane %v2542_v59, 5  ;;  %v2437_v35 = vrot.slane %v2430_v36, 1  ;;  %v1100_v23 = vadd.f32 %v3909_v8, %v1066_v34  ;;  %v2473_v6 = vstv %s2892_s27  ;;  %v5440_v34 = vld [vmem:[#allocation109_spill] sm:$0xff] }
 0x443   : > { %v901_v12 = vpop.permute.xlu1 %900  ;;  %v2434_v33 = vrot.slane %v2428_v43, 1  ;;  %v2547_v3 = vrot.slane %v2541_v24, 5  ;;  %v2475_v18 = vmul.f32 %v4745_v41, %v2473_v6  ;;  %v2476_v47 = vmul.f32 %v4719_v63, %v2473_v6  ;;  %v5438_v43 = vld [vmem:[#allocation107_spill] sm:$0xff] }
 0x444   : > { %v4824_v14 = vadd.f32 %v901_v12, %v860_v15  ;;  %v903_v25 = vpop.permute.xlu0 %902  ;;  %v2543_v15 = vmul.f32 %v4719_v63, %v2540_v42  ;;  %v2438_v11 = vsel %vm399_vm8, %v2435_v26, %v2437_v35  ;;  %v1146_v8 = vadd.f32 %v4548_v50, %v1100_v23  ;;  %v5436_v50 = vld [vmem:[#allocation106_spill] sm:$0xff] }
 0x445   : > { %v907_v32 = vadd.f32 %v903_v25, %v861_v53  ;;  %2464 = vrot.lane.b32.xlu1 %v2458_v27, %s3133_s18  ;;  %v2436_v10 = vsel %vm399_vm8, %v2434_v33, %v2435_v26  ;;  %v2549_v40 = vsel %vm391_vm4, %v2547_v3, %v2548_v9  ;;  %v2474_v49 = vmul.f32 %v4768_v37, %v2473_v6  ;;  %v5439_v26 = vld [vmem:[#allocation112_spill] sm:$0xff]  ;;  %v5442_v3 = vld [vmem:[#allocation111_spill] sm:$0xff] }
 0x446   : > { %2462 = vrot.lane.b32.xlu0 %v2459_v21, %s3133_s18  ;;  %v2550_v29 = vrot.slane %v2543_v15, 5  ;;  %v2481_v12 = vrot.slane %v2475_v18, 3  ;;  %v2483_v60 = vrot.slane %v2476_v47, 3  ;;  %v1192_v25 = vadd.f32 %v5436_v50, %v1146_v8 }
 0x447   : > { %v945_v57 = vpop.permute.xlu1 %944  ;;  %v2480_v48 = vrot.slane %v2474_v49, 3 }
 0x448   : > { %v4834_v62 = vadd.f32 %v945_v57, %v907_v32  ;;  %v4836_v61 = vpop.permute.xlu0 %919  ;;  %v2551_v54 = vsel %vm391_vm4, %v2548_v9, %v2550_v29  ;;  %v2484_v28 = vsel %vm395_vm6, %v2481_v12, %v2483_v60  ;;  %v1234_v16 = vadd.f32 %v5437_v56, %v1192_v25  ;;  %v5441_v9 = vld [vmem:[#allocation40_spill] sm:$0xff] }
 0x449   : > { %2399 = vrot.lane.b32.xlu1 %v2396_v39, %s3130_s14  ;;  %v2482_v19 = vsel %vm395_vm6, %v2480_v48, %v2481_v12  ;;  %v4944_v48 = vstv %s2851_s24  ;;  %v1628_v56 = vstv %s2853_s12 }
 0x44a   : > { %2397 = vrot.lane.b32.xlu0 %v2394_v2, %s3130_s14  ;;  %s2894_s14 = sld [smem:[#allocation8 + $0x5a]]  ;;  %v1280_v4 = vadd.f32 %v5438_v43, %v1234_v16 }
 0x44b   : > { %v4844_v44 = vpop.permute.xlu1 %965 }
 0x44c   : > { %v4846_v52 = vpop.permute.xlu0 %942  ;;  %v1326_v59 = vadd.f32 %v5439_v26, %v1280_v4 }
 0x44d   : > { %2508 = vrot.lane.b32.xlu1 %v2505_v0, %s3133_s18 }
 0x44e   : > { %2506 = vrot.lane.b32.xlu0 %v2503_v20, %s3133_s18  ;;  %v1372_v33 = vadd.f32 %v5440_v34, %v1326_v59 }
 0x44f   : > { %v4856_v55 = vpop.permute.xlu1 %988 }
 0x450   : > { %v4858_v53 = vpop.permute.xlu0 %963  ;;  %v2519_v27 = vstv %s2894_s14  ;;  %v1406_v35 = vadd.f32 %v5441_v9, %v1372_v33  ;;  %v5445_v9 = vld [vmem:[#allocation34_spill] sm:$0xff]  ;;  %s2904_s14 = sshll.u32 %s3190_s4, 9  ;;  %s2688_s4 = scalar_lea.sflag [#allocation6], %s3289_s11 }
 0x451   : > { %2439 = vrot.lane.b32.xlu1 %v2436_v10, %s3133_s18  ;;  %v2521_v7 = vmul.f32 %v4745_v41, %v2519_v27  ;;  %v2522_v46 = vmul.f32 %v4719_v63, %v2519_v27  ;;  %v2520_v32 = vmul.f32 %v4768_v37, %v2519_v27  ;;  %s5201_s24 = scalar_lea.hbm %s5250_s5, %s2904_s14 }
 0x452   : > { %2510 = vrot.lane.b32.xlu0 %v2504_v31, %s3133_s18  ;;  %v1452_v6 = vadd.f32 %v5442_v3, %v1406_v35 }
 0x453   : > { %v4865_v51 = vpop.permute.xlu1 %1009  ;;  %v2527_v57 = vrot.slane %v2521_v7, 5  ;;  %v2529_v39 = vrot.slane %v2522_v46, 5  ;;  %v2526_v31 = vrot.slane %v2520_v32, 5  ;;  %v927_v7 = vadd.f32 %v4836_v61, %v4814_v45 }
 0x454   : > { %v4867_v17 = vpop.permute.xlu0 %990 }
 0x455   : > { %2552 = vrot.lane.b32.xlu1 %v2549_v40, %s3133_s18  ;;  %v2530_v2 = vsel %vm391_vm4, %v2527_v57, %v2529_v39  ;;  %v2528_v1 = vsel %vm391_vm4, %v2526_v31, %v2527_v57  ;;  %v1524_v40 = vstv %s4910_s30  ;;  %v4950_v39 = vmul.f32 %v4719_v63, %v4944_v48 }
 0x456   : > { %2441 = vrot.lane.b32.xlu0 %v2438_v11, %s3133_s18  ;;  %v4922_v47 = vmul.f32 %v4745_v41, %v1524_v40  ;;  %v973_v45 = vadd.f32 %v4844_v44, %v927_v7  ;;  %v995_v33 = vadd.f32 %v4867_v17, %v4834_v62  ;;  %v5447_v7 = vld [vmem:[#allocation19_spill] sm:$0xff]  ;;  %v5448_v62 = vld [vmem:[#allocation32_spill] sm:$0xff] }
 0x457   : > { %v4876_v22 = vpop.permute.xlu1 %1036 }
 0x458   : > { %v4879_v58 = vpop.permute.xlu0 %1011  ;;  %v1530_v12 = vrot.slane %v4922_v47, 7 }
 0x459   : > { %2556 = vrot.lane.b32.xlu1 %v2550_v29, %s3133_s18  ;;  %v5443_v29 = vld [vmem:[#allocation113_spill] sm:$0xff] }
 0x45a   : > { %2554 = vrot.lane.b32.xlu0 %v2551_v54, %s3133_s18  ;;  %v1498_v8 = vadd.f32 %v5443_v29, %v1452_v6  ;;  %v5444_v54 = vld [vmem:[#allocation105_spill] sm:$0xff] }
 0x45b   : > { %v4887_v13 = vpop.permute.xlu1 %1057  ;;  %v926_v50 = vadd.f32 %v5444_v54, %v4817_v30 }
 0x45c   : > { %v4890_v21 = vpop.permute.xlu0 %1034  ;;  %v1537_v25 = vadd.f32 %v1530_v12, %v1498_v8 }
 0x45d   : > { %2487 = vrot.lane.b32.xlu1 %v2484_v28, %s3133_s18  ;;  %v972_v32 = vadd.f32 %v4858_v53, %v926_v50  ;;  %v1602_v53 = vrot.slane %v4950_v39, 3  ;;  %v5456_v39 = vld [vmem:[#allocation43_spill] sm:$0xff] }
 0x45e   : > { %2485 = vrot.lane.b32.xlu0 %v2482_v19, %s3133_s18  ;;  %v1019_v19 = vadd.f32 %v4879_v58, %v973_v45 }
 0x45f   : > { %v4897_v5 = vpop.permute.xlu1 %1116  ;;  %v1018_v16 = vadd.f32 %v4865_v51, %v972_v32 }
 0x460   : > { %v1056_v38 = vpop.permute.xlu0 %1055  ;;  %v1065_v58 = vadd.f32 %v4887_v13, %v1019_v19  ;;  %v5450_v19 = vld [vmem:[#allocation42_spill] sm:$0xff] }
 0x461   : > { %2533 = vrot.lane.b32.xlu1 %v2530_v2, %s3133_s18  ;;  %v4961_v2 = vmul.f32 %v4719_v63, %v1628_v56  ;;  %v1064_v43 = vadd.f32 %v1056_v38, %v1018_v16  ;;  %v5446_v38 = vld [vmem:[#allocation35_spill] sm:$0xff] }
 0x462   : > { %2531 = vrot.lane.b32.xlu0 %v2528_v1, %s3133_s18  ;;  %s2849_s18 = sld [smem:[#allocation8 + $0x3f]]  ;;  %v948_v1 = vadd.f32 %v4846_v52, %v4824_v14  ;;  %v1099_v3 = vadd.f32 %v5446_v38, %v1065_v58 }
 0x463   : > { %v1138_v42 = vpop.permute.xlu1 %1137  ;;  %v1638_v51 = vrot.slane %v4961_v2, 5  ;;  %v1098_v35 = vadd.f32 %v5445_v9, %v1064_v43  ;;  %v5451_v43 = vld [vmem:[#allocation108_spill] sm:$0xff]  ;;  %v5452_v9 = vld [vmem:[#allocation41_spill] sm:$0xff] }
 0x464   : > { %v4904_v0 = vpop.permute.xlu0 %1114  ;;  %v994_v59 = vadd.f32 %v4856_v55, %v948_v1  ;;  %v1145_v29 = vadd.f32 %v1138_v42, %v1099_v3  ;;  %v1041_v55 = vadd.f32 %v4876_v22, %v995_v33 }
 0x466   : > { %v1040_v52 = vadd.f32 %v4890_v21, %v994_v59 }
 0x467   : > { %v4907_v20 = vpop.permute.xlu1 %1160 }
 0x468   : > { %v1136_v36 = vpop.permute.xlu0 %1135  ;;  %v4927_v49 = vstv %s2849_s18  ;;  %v1079_v17 = vadd.f32 %v5448_v62, %v1040_v52 }
 0x469   : > { %v4934_v60 = vmul.f32 %v4719_v63, %v4927_v49  ;;  %v1144_v6 = vadd.f32 %v1136_v36, %v1098_v35  ;;  %v1558_v1 = vmul.f32 %v4745_v41, %v4927_v49 }
 0x46a   : > { %v1120_v21 = vadd.f32 %v4904_v0, %v1079_v17  ;;  %v5002_v0 = vmul.f32 %v4768_v37, %v1524_v40 }
 0x46b   : > { %v1182_v24 = vpop.permute.xlu1 %1181  ;;  %v1566_v57 = vrot.slane %v4934_v60, 1  ;;  %v1564_v38 = vrot.slane %v1558_v1, 1 }
 0x46c   : > { %v4912_v10 = vpop.permute.xlu0 %1162 }
 0x46d   : > { %v1573_v30 = vadd.f32 %v1566_v57, %v1537_v25  ;;  %v1190_v25 = vadd.f32 %v1182_v24, %v1144_v6  ;;  %v1594_v24 = vmul.f32 %v4745_v41, %v4944_v48 }
 0x46f   : > { %v4915_v15 = vpop.permute.xlu1 %1208  ;;  %v1609_v4 = vadd.f32 %v1602_v53, %v1573_v30  ;;  %v5449_v30 = vld [vmem:[#allocation33_spill] sm:$0xff]  ;;  %v1600_v40 = vrot.slane %v1594_v24, 3 }
 0x470   : > { %v1184_v23 = vpop.permute.xlu0 %1183  ;;  %v1080_v36 = vadd.f32 %v5449_v30, %v1041_v55  ;;  %v1529_v55 = vrot.slane %v5002_v0, 7 }
 0x471   : > { %v1645_v14 = vadd.f32 %v1638_v51, %v1609_v4  ;;  %v1191_v50 = vadd.f32 %v1184_v23, %v1145_v29  ;;  %v1232_v4 = vadd.f32 %v5451_v43, %v1190_v25  ;;  %v1166_v23 = vadd.f32 %v4907_v20, %v1120_v21 }
 0x472   : > { %v1121_v22 = vadd.f32 %v4897_v5, %v1080_v36  ;;  %v1630_v29 = vmul.f32 %v4745_v41, %v1628_v56  ;;  %v1531_v17 = vsel %vm387_vm2, %v1529_v55, %v1530_v12  ;;  %v1539_v25 = vstv %s4997_s9  ;;  %s3134_s9 = smov [#allocation9]  }
 0x473   : > { %v1226_v18 = vpop.permute.xlu1 %1225  ;;  %v1679_v54 = vadd.f32 %v5447_v7, %v1645_v14  ;;  %v5453_v7 = vld [vmem:[#allocation46_spill] sm:$0xff]  ;;  %v1575_v36 = vstv %s5008_s19  ;;  %v1542_v2 = vmul.f32 %v4719_v63, %v1539_v25  ;;  %s3049_s19 = sshll.u32 %s3134_s9, 4  ;;  %s3050_s19 = int_to_ptr.vmem [resolvable:$false] %s3049_s19 }
 0x474   : > { %v4924_v11 = vpop.permute.xlu0 %1206  ;;  %v1233_v42 = vadd.f32 %v1226_v18, %v1191_v50  ;;  %v1167_v5 = vadd.f32 %v4912_v10, %v1121_v22  ;;  %v1557_v10 = vmul.f32 %v4768_v37, %v4927_v49  ;;  %v1567_v49 = vsel %vm399_vm8, %v1564_v38, %v1566_v57 }
 0x475   : > { %v1725_v16 = vadd.f32 %v5450_v19, %v1679_v54  ;;  %v1212_v14 = vadd.f32 %v4924_v11, %v1166_v23  ;;  %v1576_v23 = vmul.f32 %v4768_v37, %v1575_v36 }
 0x476   : > { %v1213_v11 = vadd.f32 %v4915_v15, %v1167_v5  ;;  %v1603_v15 = vsel %vm395_vm6, %v1600_v40, %v1602_v53  ;;  %v1563_v60 = vrot.slane %v1557_v10, 1  ;;  %v1577_v5 = vmul.f32 %v4745_v41, %v1575_v36 }
 0x477   : > { %v4929_v27 = vpop.permute.xlu1 %1248  ;;  %v1771_v35 = vadd.f32 %v5452_v9, %v1725_v16  ;;  %v5458_v9 = vld [vmem:[#allocation36_spill] sm:$0xff] }
 0x478   : > { %v4938_v46 = vpop.permute.xlu0 %1250  ;;  %v1254_v62 = vadd.f32 %v4929_v27, %v1212_v14  ;;  %v5454_v27 = vld [vmem:[#allocation39_spill] sm:$0xff]  ;;  %v1565_v24 = vsel %vm399_vm8, %v1563_v60, %v1564_v38  ;;  %v5459_v38 = vld [vmem:[#allocation37_spill] sm:$0xff] }
 0x479   : > { %v1813_v54 = vadd.f32 %v5453_v7, %v1771_v35 }
 0x47b   : > { %v1270_v28 = vpop.permute.xlu1 %1269  ;;  %v1859_v19 = vadd.f32 %v5456_v39, %v1813_v54 }
 0x47c   : > { %v1272_v61 = vpop.permute.xlu0 %1271  ;;  %v1278_v33 = vadd.f32 %v1270_v28, %v1232_v4  ;;  %v1593_v28 = vmul.f32 %v4768_v37, %v4944_v48  ;;  %v1255_v48 = vadd.f32 %v4938_v46, %v1213_v11  ;;  %v1582_v11 = vrot.slane %v1576_v23, 3 }
 0x47d   : > { %v1279_v18 = vadd.f32 %v1272_v61, %v1233_v42  ;;  %v1540_v42 = vmul.f32 %v4768_v37, %v1539_v25 }
 0x47e   : > { %v1599_v21 = vrot.slane %v1593_v28, 3 }
 0x47f   : > { %v4957_v31 = vpop.permute.xlu1 %1296 }
 0x480   : > { %v4965_v44 = vpop.permute.xlu0 %1294  ;;  %v1301_v57 = vadd.f32 %v4957_v31, %v1255_v48  ;;  %v1541_v31 = vmul.f32 %v4745_v41, %v1539_v25  ;;  %v1601_v0 = vsel %vm395_vm6, %v1599_v21, %v1600_v40  ;;  %v5460_v48 = vld [vmem:[#allocation45_spill] sm:$0xff] }
 0x481   : > { %v1300_v47 = vadd.f32 %v4965_v44, %v1254_v62  ;;  %v1549_v62 = vrot.slane %v1542_v2, 1  ;;  %v5467_v2 = vld [vmem:[#allocation47_spill] sm:$0xff] }
 0x483   : > { %v1318_v26 = vpop.permute.xlu1 %1317 }
 0x484   : > { %v1316_v34 = vpop.permute.xlu0 %1315  ;;  %v1325_v52 = vadd.f32 %v1318_v26, %v1279_v18 }
 0x485   : > { %v1324_v3 = vadd.f32 %v1316_v34, %v1278_v33  ;;  %v1629_v34 = vmul.f32 %v4768_v37, %v1628_v56  ;;  %v1636_v56 = vrot.slane %v1630_v29, 5  ;;  %v1547_v29 = vrot.slane %v1541_v31, 1 }
 0x487   : > { %v4979_v13 = vpop.permute.xlu1 %1340  ;;  %v1635_v30 = vrot.slane %v1629_v34, 5  ;;  %v1639_v22 = vsel %vm391_vm4, %v1636_v56, %v1638_v51  ;;  %v5457_v51 = vld [vmem:[#allocation48_spill] sm:$0xff] }
 0x488   : > { %v4981_v8 = vpop.permute.xlu0 %1342  ;;  %v1346_v53 = vadd.f32 %v4979_v13, %v1300_v47  ;;  %v1905_v33 = vadd.f32 %v5457_v51, %v1859_v19 }
 0x489   : > { %v1347_v44 = vadd.f32 %v4981_v8, %v1301_v57  ;;  %v1637_v18 = vsel %vm391_vm4, %v1635_v30, %v1636_v56  ;;  %v5461_v30 = vld [vmem:[#allocation22_spill] sm:$0xff] }
 0x48a   : > { %v1385_v35 = vadd.f32 %v5458_v9, %v1346_v53  ;;  %v1951_v56 = vadd.f32 %v5460_v48, %v1905_v33  ;;  %v5463_v53 = vld [vmem:[#allocation18_spill] sm:$0xff] }
 0x48b   : > { %v1362_v32 = vpop.permute.xlu1 %1361 }
 0x48c   : > { %v1364_v45 = vpop.permute.xlu0 %1363  ;;  %v1370_v26 = vadd.f32 %v1362_v32, %v1324_v3  ;;  %v1386_v3 = vadd.f32 %v5459_v38, %v1347_v44 }
 0x48d   : > { %v1371_v20 = vadd.f32 %v1364_v45, %v1325_v52  ;;  %v5455_v45 = vld [vmem:[#allocation38_spill] sm:$0xff]  ;;  %v1546_v52 = vrot.slane %v1540_v42, 1 }
 0x48e   : > { %v1404_v46 = vadd.f32 %v5455_v45, %v1370_v26  ;;  %v1578_v26 = vmul.f32 %v4719_v63, %v1575_v36 }
 0x48f   : > { %v4993_v58 = vpop.permute.xlu1 %1420  ;;  %v1405_v12 = vadd.f32 %v5454_v27, %v1371_v20  ;;  %v1611_v20 = vstv %s5033_s29  ;;  %v1548_v21 = vsel %vm399_vm8, %v1546_v52, %v1547_v29  ;;  %s3051_s29 = scalar_lea.vmem %s3050_s19, 1024 }
 0x490   : > { %v5005_v59 = vpop.permute.xlu0 %1422  ;;  %v1613_v54 = vmul.f32 %v4745_v41, %v1611_v20  ;;  %v1614_v25 = vmul.f32 %v4719_v63, %v1611_v20  ;;  %v1612_v27 = vmul.f32 %v4768_v37, %v1611_v20  ;;  %v1585_v57 = vrot.slane %v1578_v26, 3  ;;  %v5462_v63 = vld [vmem:[#allocation25_spill] sm:$0xff]  ;;  %v5472_v26 = vld [vmem:[#allocation20_spill] sm:$0xff] }
 0x491   : > { %v1427_v34 = vadd.f32 %v5005_v59, %v1386_v3  ;;  %v5469_v3 = vld [vmem:[#allocation65_spill] sm:$0xff] }
 0x492   : > { %v1621_v19 = vrot.slane %v1614_v25, 5  ;;  %v1618_v42 = vrot.slane %v1612_v27, 5  ;;  %v5478_v27 = vld [vmem:[#allocation69_spill] sm:$0xff] }
 0x493   : > { %v1442_v6 = vpop.permute.xlu1 %1441 }
 0x494   : > { %v1444_v61 = vpop.permute.xlu0 %1443  ;;  %v1450_v1 = vadd.f32 %v1442_v6, %v1404_v46  ;;  %v1619_v46 = vrot.slane %v1613_v54, 5 }
 0x495   : > { %v1451_v16 = vadd.f32 %v1444_v61, %v1405_v12  ;;  %v1426_v61 = vadd.f32 %v4993_v58, %v1385_v35  ;;  %v5468_v35 = vld [vmem:[#allocation61_spill] sm:$0xff] }
 0x496   : > { %v1620_v23 = vsel %vm391_vm4, %v1618_v42, %v1619_v46  ;;  %v1622_v9 = vsel %vm391_vm4, %v1619_v46, %v1621_v19  ;;  %v5487_v42 = vld [vmem:[#allocation21_spill] sm:$0xff] }
 0x497   : > { %v1469_v50 = vpop.permute.xlu1 %1468 }
 0x498   : > { %v1467_v32 = vpop.permute.xlu0 %1466  ;;  %v1473_v47 = vadd.f32 %v1469_v50, %v1427_v34  ;;  %v1985_v50 = vadd.f32 %v5462_v63, %v1951_v56  ;;  %v5476_v56 = vld [vmem:[#allocation67_spill] sm:$0xff]  ;;  %v5484_v63 = vld [vmem:[#allocation66_spill] sm:$0xff] }
 0x49a   : > { %v2031_v51 = vadd.f32 %v5467_v2, %v1985_v50 }
 0x49b   : > { %v1490_v43 = vpop.permute.xlu1 %1489 }
 0x49c   : > { %v1497_v4 = vadd.f32 %v1490_v43, %v1451_v16  ;;  %v1488_v13 = vpop.permute.xlu0 %1487 }
 0x49d   : > { %v1496_v8 = vadd.f32 %v1488_v13, %v1450_v1 }
 0x49e   : > { %v1536_v14 = vadd.f32 %v1531_v17, %v1497_v4  ;;  %v1472_v17 = vadd.f32 %v1467_v32, %v1426_v61 }
 0x49f   : > { %v1535_v6 = vadd.f32 %v1529_v55, %v1496_v8  ;;  %v5057_v40 = vpop.permute.xlu1 %2376  ;;  %v5466_v8 = vld [vmem:[#allocation64_spill] sm:$0xff] }
 0x4a0   : > { %v1572_v10 = vadd.f32 %v1567_v49, %v1536_v14  ;;  %v5061_v28 = vpop.permute.xlu0 %2374  ;;  %v1583_v49 = vrot.slane %v1577_v5, 3 }
 0x4a1   : > { %v1571_v7 = vadd.f32 %v1565_v24, %v1535_v6 }
 0x4a2   : > { %v1608_v55 = vadd.f32 %v1603_v15, %v1572_v10  ;;  %v1550_v15 = vsel %vm399_vm8, %v1547_v29, %v1549_v62  ;;  %v1584_v16 = vsel %vm395_vm6, %v1582_v11, %v1583_v49  ;;  %v1586_v4 = vsel %vm395_vm6, %v1583_v49, %v1585_v57  ;;  %v5470_v29 = vld [vmem:[#allocation17_spill] sm:$0xff]  ;;  %v5471_v10 = vld [vmem:[#allocation44_spill] sm:$0xff]  ;;  %v5474_v62 = vld [vmem:[#allocation50_spill] sm:$0xff] }
 0x4a3   : > { %v1607_v58 = vadd.f32 %v1601_v0, %v1571_v7  ;;  %v1513_v12 = vpop.permute.xlu1 %1512  ;;  %v5465_v0 = vld [vmem:[#allocation60_spill] sm:$0xff]  ;;  %v5480_v57 = vld [vmem:[#allocation70_spill] sm:$0xff] }
 0x4a4   : > { %v1644_v60 = vadd.f32 %v1639_v22, %v1608_v55  ;;  %v1518_v59 = vadd.f32 %v1513_v12, %v1472_v17  ;;  %v1515_v45 = vpop.permute.xlu0 %1514  ;;  %v5464_v22 = vld [vmem:[#allocation57_spill] sm:$0xff]  ;;  %v5473_v7 = vld [vmem:[#allocation68_spill] sm:$0xff]  ;;  %v2077_v17 = vadd.f32 %v5474_v62, %v2031_v51  ;;  %v5475_v55 = vld [vmem:[#allocation58_spill] sm:$0xff] }
 0x4a5   : > { %v1643_v41 = vadd.f32 %v1637_v18, %v1607_v58  ;;  %v1519_v32 = vadd.f32 %v1515_v45, %v1473_v47  ;;  %v5477_v47 = vld [vmem:[#allocation55_spill] sm:$0xff]  ;;  %v5493_v51 = vld [vmem:[#allocation76_spill] sm:$0xff]  ;;  %v5500_v62 = vld [vmem:[#allocation53_spill] sm:$0xff] }
 0x4a6   : > { %v1678_v36 = vadd.f32 %v5461_v30, %v1644_v60  ;;  %v1553_v39 = vadd.f32 %v1548_v21, %v1518_v59  ;;  %v5479_v60 = vld [vmem:[#allocation59_spill] sm:$0xff]  ;;  %v5483_v30 = vld [vmem:[#allocation74_spill] sm:$0xff] }
 0x4a7   : > { %v1677_v37 = vadd.f32 %v5463_v53, %v1643_v41  ;;  %v1554_v44 = vadd.f32 %v1550_v15, %v1519_v32  ;;  %v5075_v1 = vpop.permute.xlu1 %2307  ;;  %v5481_v41 = vld [vmem:[#allocation62_spill] sm:$0xff]  ;;  %v5482_v15 = vld [vmem:[#allocation51_spill] sm:$0xff]  ;;  %v5486_v53 = vld [vmem:[#allocation73_spill] sm:$0xff] }
 0x4a8   : > { %v1724_v43 = vadd.f32 %v5464_v22, %v1678_v36  ;;  %v1589_v31 = vadd.f32 %v1584_v16, %v1553_v39  ;;  %v5079_v24 = vpop.permute.xlu0 %2305  ;;  %v2119_v32 = vadd.f32 %v5482_v15, %v2077_v17  ;;  %v5485_v39 = vld [vmem:[#allocation63_spill] sm:$0xff]  ;;  %v5507_v15 = vld [vmem:[#allocation84_spill] sm:$0xff] }
 0x4a9   : > { %v1723_v13 = vadd.f32 %v5465_v0, %v1677_v37  ;;  %v1590_v18 = vadd.f32 %v1586_v4, %v1554_v44  ;;  %v5488_v22 = vld [vmem:[#allocation71_spill] sm:$0xff]  ;;  %v5489_v4 = vld [vmem:[#allocation72_spill] sm:$0xff] }
 0x4aa   : > { %v1770_v5 = vadd.f32 %v5466_v8, %v1724_v43  ;;  %v1625_v33 = vadd.f32 %v1620_v23, %v1589_v31 }
 0x4ab   : > { %v1769_v14 = vadd.f32 %v5468_v35, %v1723_v13  ;;  %v1626_v52 = vadd.f32 %v1622_v9, %v1590_v18  ;;  %v5087_v38 = vpop.permute.xlu1 %2416  ;;  %v5490_v13 = vld [vmem:[#allocation23_spill] sm:$0xff]  ;;  %v5491_v18 = vld [vmem:[#allocation52_spill] sm:$0xff] }
 0x4ac   : > { %v1812_v6 = vadd.f32 %v5469_v3, %v1770_v5  ;;  %v1658_v20 = vadd.f32 %v5470_v29, %v1625_v33  ;;  %v5091_v61 = vpop.permute.xlu0 %2414  ;;  %v2165_v8 = vadd.f32 %v5491_v18, %v2119_v32  ;;  %v5492_v5 = vld [vmem:[#allocation80_spill] sm:$0xff]  ;;  %v5494_v9 = vld [vmem:[#allocation75_spill] sm:$0xff] }
 0x4ad   : > { %v1811_v11 = vadd.f32 %v5471_v10, %v1769_v14  ;;  %v1659_v34 = vadd.f32 %v5472_v26, %v1626_v52  ;;  %v5495_v14 = vld [vmem:[#allocation79_spill] sm:$0xff]  ;;  %v5498_v26 = vld [vmem:[#allocation78_spill] sm:$0xff] }
 0x4ae   : > { %v1858_v54 = vadd.f32 %v5473_v7, %v1812_v6  ;;  %v1699_v48 = vadd.f32 %v5475_v55, %v1658_v20  ;;  %v5496_v6 = vld [vmem:[#allocation81_spill] sm:$0xff]  ;;  %v5499_v7 = vld [vmem:[#allocation82_spill] sm:$0xff]  ;;  %v2211_v17 = vadd.f32 %v5500_v62, %v2165_v8 }
 0x4af   : > { %v1857_v25 = vadd.f32 %v5476_v56, %v1811_v11  ;;  %v1700_v58 = vadd.f32 %v5477_v47, %v1659_v34  ;;  %v5100_v49 = vpop.permute.xlu1 %2351  ;;  %v5497_v20 = vld [vmem:[#allocation77_spill] sm:$0xff]  ;;  %v5501_v55 = vld [vmem:[#allocation86_spill] sm:$0xff]  ;;  %v5502_v56 = vld [vmem:[#allocation27_spill] sm:$0xff] }
 0x4b0   : > { %v1904_v12 = vadd.f32 %v5478_v27, %v1858_v54  ;;  %v1745_v21 = vadd.f32 %v5479_v60, %v1699_v48  ;;  %v5104_v59 = vpop.permute.xlu0 %2418  ;;  %v5503_v47 = vld [vmem:[#allocation24_spill] sm:$0xff]  ;;  %v5504_v27 = vld [vmem:[#allocation49_spill] sm:$0xff] }
 0x4b1   : > { %v1903_v45 = vadd.f32 %v5480_v57, %v1857_v25  ;;  %v1746_v46 = vadd.f32 %v5481_v41, %v1700_v58 }
 0x4b2   : > { %v1950_v36 = vadd.f32 %v5483_v30, %v1904_v12  ;;  %v1791_v50 = vadd.f32 %v5484_v63, %v1745_v21  ;;  %v5505_v21 = vld [vmem:[#allocation87_spill] sm:$0xff]  ;;  %v5508_v30 = vld [vmem:[#allocation90_spill] sm:$0xff] }
 0x4b3   : > { %v1792_v19 = vadd.f32 %v5485_v39, %v1746_v46  ;;  %v1949_v37 = vadd.f32 %v5486_v53, %v1903_v45  ;;  %v5113_v16 = vpop.permute.xlu1 %2460  ;;  %v5506_v45 = vld [vmem:[#allocation83_spill] sm:$0xff]  ;;  %v5509_v63 = vld [vmem:[#allocation54_spill] sm:$0xff]  ;;  %v5511_v53 = vld [vmem:[#allocation88_spill] sm:$0xff] }
 0x4b4   : > { %v1984_v44 = vadd.f32 %v5487_v42, %v1950_v36  ;;  %v1833_v43 = vadd.f32 %v5488_v22, %v1791_v50  ;;  %v5117_v31 = vpop.permute.xlu0 %2353  ;;  %v2257_v50 = vadd.f32 %v5509_v63, %v2211_v17  ;;  %v5510_v39 = vld [vmem:[#allocation94_spill] sm:$0xff]  ;;  %v5512_v42 = vld [vmem:[#allocation85_spill] sm:$0xff]  ;;  %v5513_v22 = vld [vmem:[#allocation91_spill] sm:$0xff] }
 0x4b5   : > { %v1834_v0 = vadd.f32 %v5489_v4, %v1792_v19  ;;  %v1983_v23 = vadd.f32 %v5490_v13, %v1949_v37  ;;  %v5524_v17 = vld [vmem:[#allocation97_spill] sm:$0xff] }
 0x4b6   : > { %v2030_v2 = vadd.f32 %v5492_v5, %v1984_v44  ;;  %v1879_v33 = vadd.f32 %v5493_v51, %v1833_v43  ;;  %v5516_v5 = vld [vmem:[#allocation92_spill] sm:$0xff]  ;;  %v5517_v51 = vld [vmem:[#allocation98_spill] sm:$0xff] }
 0x4b7   : > { %v1880_v35 = vadd.f32 %v5494_v9, %v1834_v0  ;;  %v2029_v52 = vadd.f32 %v5495_v14, %v1983_v23  ;;  %v2465_v3 = vpop.permute.xlu1 %2464  ;;  %v5514_v0 = vld [vmem:[#allocation95_spill] sm:$0xff]  ;;  %v5515_v23 = vld [vmem:[#allocation89_spill] sm:$0xff]  ;;  %v5519_v14 = vld [vmem:[#allocation28_spill] sm:$0xff] }
 0x4b8   : > { %v2076_v29 = vadd.f32 %v5496_v6, %v2030_v2  ;;  %v1925_v10 = vadd.f32 %v5497_v20, %v1879_v33  ;;  %v2463_v11 = vpop.permute.xlu0 %2462  ;;  %v5518_v9 = vld [vmem:[#allocation29_spill] sm:$0xff]  ;;  %v5520_v6 = vld [vmem:[#allocation96_spill] sm:$0xff] }
 0x4b9   : > { %v1926_v34 = vadd.f32 %v5498_v26, %v1880_v35  ;;  %v2075_v54 = vadd.f32 %v5499_v7, %v2029_v52  ;;  %v2291_v35 = vadd.f32 %v5518_v9, %v2257_v50  ;;  %v5521_v20 = vld [vmem:[#allocation93_spill] sm:$0xff]  ;;  %v5522_v26 = vld [vmem:[#allocation26_spill] sm:$0xff]  ;;  %v5531_v50 = vld [vmem:[#allocation31_spill] sm:$0xff] }
 0x4ba   : > { %v2118_v48 = vadd.f32 %v5501_v55, %v2076_v29  ;;  %v1964_v25 = vadd.f32 %v5502_v56, %v1925_v10  ;;  %v5525_v56 = vld [vmem:[#allocation100_spill] sm:$0xff] }
 0x4bb   : > { %v1965_v58 = vadd.f32 %v5503_v47, %v1926_v34  ;;  %v2117_v12 = vadd.f32 %v5504_v27, %v2075_v54  ;;  %v2400_v60 = vpop.permute.xlu1 %2399  ;;  %v5523_v54 = vld [vmem:[#allocation101_spill] sm:$0xff]  ;;  %v5526_v47 = vld [vmem:[#allocation104_spill] sm:$0xff] }
 0x4bc   : > { %v2164_v57 = vadd.f32 %v5505_v21, %v2118_v48  ;;  %v2005_v41 = vadd.f32 %v5506_v45, %v1964_v25  ;;  %v2398_v46 = vpop.permute.xlu0 %2397  ;;  %v5527_v27 = vld [vmem:[#allocation56_spill] sm:$0xff] }
 0x4bd   : > { %v2006_v32 = vadd.f32 %v5507_v15, %v1965_v58  ;;  %v2163_v36 = vadd.f32 %v5508_v30, %v2117_v12  ;;  %v2337_v12 = vadd.f32 %v5527_v27, %v2291_v35 }
 0x4be   : > { %v2210_v19 = vadd.f32 %v5510_v39, %v2164_v57  ;;  %v2051_v37 = vadd.f32 %v5511_v53, %v2005_v41  ;;  %v5528_v57 = vld [vmem:[#allocation102_spill] sm:$0xff]  ;;  %v5529_v41 = vld [vmem:[#allocation99_spill] sm:$0xff] }
 0x4bf   : > { %v2052_v44 = vadd.f32 %v5512_v42, %v2006_v32  ;;  %v2209_v43 = vadd.f32 %v5513_v22, %v2163_v36  ;;  %v2509_v4 = vpop.permute.xlu1 %2508  ;;  %v5530_v32 = vld [vmem:[#allocation103_spill] sm:$0xff]  ;;  %v2383_v63 = vadd.f32 %v5057_v40, %v2337_v12 }
 0x4c0   : > { %v2256_v13 = vadd.f32 %v5514_v0, %v2210_v19  ;;  %v2097_v18 = vadd.f32 %v5515_v23, %v2051_v37  ;;  %v2507_v8 = vpop.permute.xlu0 %2506  ;;  %v5532_v37 = vld [vmem:[#allocation30_spill] sm:$0xff] }
 0x4c1   : > { %v2098_v2 = vadd.f32 %v5516_v5, %v2052_v44  ;;  %v2255_v33 = vadd.f32 %v5517_v51, %v2209_v43  ;;  %v2425_v22 = vadd.f32 %v5104_v59, %v2383_v63 }
 0x4c2   : > { %v2290_v52 = vadd.f32 %v5519_v14, %v2256_v13  ;;  %v2139_v29 = vadd.f32 %v5520_v6, %v2097_v18 }
 0x4c3   : > { %v2140_v10 = vadd.f32 %v5521_v20, %v2098_v2  ;;  %v2289_v34 = vadd.f32 %v5522_v26, %v2255_v33  ;;  %v2440_v7 = vpop.permute.xlu1 %2439  ;;  %v2471_v18 = vadd.f32 %v2465_v3, %v2425_v22 }
 0x4c4   : > { %v2336_v62 = vadd.f32 %v5523_v54, %v2290_v52  ;;  %v2185_v55 = vadd.f32 %v5524_v17, %v2139_v29  ;;  %v2511_v48 = vpop.permute.xlu0 %2510 }
 0x4c5   : > { %v2186_v25 = vadd.f32 %v5525_v56, %v2140_v10  ;;  %v2335_v58 = vadd.f32 %v5526_v47, %v2289_v34  ;;  %v2577_v10 = vstv %s2576_s17 }
 0x4c6   : > { %v2382_v21 = vadd.f32 %v5061_v28, %v2336_v62  ;;  %v2231_v45 = vadd.f32 %v5528_v57, %v2185_v55 }
 0x4c7   : > { %v2232_v15 = vadd.f32 %v5529_v41, %v2186_v25  ;;  %v2381_v30 = vadd.f32 %v5530_v32, %v2335_v58  ;;  %v2553_v36 = vpop.permute.xlu1 %2552 }
 0x4c8   : > { %v2270_v39 = vadd.f32 %v5531_v50, %v2231_v45  ;;  %v2424_v19 = vadd.f32 %v5087_v38, %v2382_v21  ;;  %v2442_v53 = vpop.permute.xlu0 %2441 }
 0x4c9   : > { %v2271_v42 = vadd.f32 %v5532_v37, %v2232_v15  ;;  %v2423_v44 = vadd.f32 %v5091_v61, %v2381_v30  ;;  %v2517_v61 = vadd.f32 %v2511_v48, %v2471_v18 }
 0x4ca   : > { %v2311_v28 = vadd.f32 %v5079_v24, %v2270_v39  ;;  %v2470_v43 = vadd.f32 %v2463_v11, %v2424_v19 }
 0x4cb   : > { %v2312_v0 = vadd.f32 %v5075_v1, %v2271_v42  ;;  %v2469_v13 = vadd.f32 %v5113_v16, %v2423_v44  ;;  %v2557_v23 = vpop.permute.xlu1 %2556 }
 0x4cc   : > { %v2357_v40 = vadd.f32 %v5100_v49, %v2311_v28  ;;  %v2516_v5 = vadd.f32 %v2509_v4, %v2470_v43  ;;  %v2555_v38 = vpop.permute.xlu0 %2554  ;;  %v2563_v1 = vadd.f32 %v2557_v23, %v2517_v61 }
 0x4cd   : > { %v2358_v2 = vadd.f32 %v5117_v31, %v2312_v0  ;;  %v2515_v51 = vadd.f32 %v2507_v8, %v2469_v13  ;;  %v2671_v13 = vlaneseq }
 0x4ce   : > { %v2403_v33 = vadd.f32 %v2398_v46, %v2357_v40  ;;  %v2562_v9 = vadd.f32 %v2555_v38, %v2516_v5  ;;  %v2570_v31 = vrot.slane %v2563_v1, 1 }
 0x4cf   : > { %v2404_v24 = vadd.f32 %v2400_v60, %v2358_v2  ;;  %v2561_v59 = vadd.f32 %v2553_v36, %v2515_v51  ;;  %v2488_v11 = vpop.permute.xlu1 %2487  ;;  %v2672_v18 = vshrl.u32 %v2671_v13, 7 }
 0x4d0   : > { %v2445_v35 = vadd.f32 %v2440_v7, %v2403_v33  ;;  %v2568_v14 = vrot.slane %v2562_v9, 1  ;;  %v2486_v16 = vpop.permute.xlu0 %2485 }
 0x4d1   : > { %v2567_v52 = vrot.slane %v2561_v59, 1  ;;  %v2446_v6 = vadd.f32 %v2442_v53, %v2404_v24 }
 0x4d2   : > { %v2491_v49 = vadd.f32 %v2486_v16, %v2445_v35  ;;  %v2571_v60 = vsel %vm399_vm8, %v2568_v14, %v2570_v31 }
 0x4d3   : > { %v2492_v3 = vadd.f32 %v2488_v11, %v2446_v6  ;;  %v2534_v4 = vpop.permute.xlu1 %2533  ;;  %v2569_v29 = vsel %vm399_vm8, %v2567_v52, %v2568_v14  ;;  %v2673_v11 = vsub.s32 0, %v2672_v18 }
 0x4d4   : > { %v2532_v8 = vpop.permute.xlu0 %2531 }
 0x4d5   : > { %v2538_v46 = vadd.f32 %v2534_v4, %v2492_v3  ;;  %v2537_v20 = vadd.f32 %v2532_v8, %v2491_v49  ;;  %v5537_v8 = vld [vmem:[#allocation14_spill] sm:$0xff] }
 0x4d7   : > { %v2575_v26 = vadd.f32 %v2571_v60, %v2538_v46  ;;  %v2574_v34 = vadd.f32 %v2569_v29, %v2537_v20  ;;  %v5538_v20 = vld [vmem:[#allocation16_spill] sm:$0xff]  ;;  %v5539_v60 = vld [vmem:[#allocation13_spill] sm:$0xff] }
 0x4d9   : > { %v2579_v7 = vadd.f32 %v2577_v10, %v2575_v26  ;;  %v2578_v54 = vadd.f32 %v2577_v10, %v2574_v34  ;;  %v5540_v34 = vld [vmem:[#allocation15_spill] sm:$0xff] }
 0x4db   : > { %v2897_v62 = vmul.f32 -1.442695, %v2579_v7  ;;  %v2896_v17 = vmul.f32 -1.442695, %v2578_v54 }
 0x4dd   : > { %2988 = vpow2.f32 %v2897_v62 }
 0x4de   : > { %2990 = vpow2.f32 %v2896_v17 }
 0x4ea   : > { %v2989_v55 = vpop.eup %2988 }
 0x4eb   : > { %v2991_v48 = vpop.eup %2990  ;;  %v2587_v56 = vadd.f32 1.0, %v2989_v55 }
 0x4ec   : > { %v2586_v25 = vadd.f32 1.0, %v2991_v48 }
 0x4ed   : > { %2992 = vrcp.f32 %v2587_v56 }
 0x4ee   : > { %2994 = vrcp.f32 %v2586_v25 }
 0x4fa   : > { %v2993_v47 = vpop.eup %2992 }
 0x4fb   : > { %v2995_v58 = vpop.eup %2994  ;;  %v2622_v27 = vrot.slane %v2993_v47, 1  ;;  %v2626_v21 = vrot.slane %v2993_v47, 2  ;;  %v2630_v45 = vrot.slane %v2993_v47, 3  ;;  %v2634_v15 = vrot.slane %v2993_v47, 4 }
 0x4fc   : > { %v2593_v12 = vrot.slane %v2995_v58, 1  ;;  %v2597_v57 = vrot.slane %v2995_v58, 2  ;;  %v2601_v41 = vrot.slane %v2995_v58, 3  ;;  %v2605_v32 = vrot.slane %v2995_v58, 4 }
 0x4fd   : > { %2623 = vrot.lane.b32.xlu1 %v2622_v27, %s3125_s16  ;;  %v2638_v30 = vrot.slane %v2993_v47, 5  ;;  %v2609_v36 = vrot.slane %v2995_v58, 5  ;;  %v2642_v63 = vrot.slane %v2993_v47, 6  ;;  %v2613_v50 = vrot.slane %v2995_v58, 6 }
 0x4fe   : > { %2594 = vrot.lane.b32.xlu0 %v2593_v12, %s3125_s16  ;;  %v2646_v39 = vrot.slane %v2993_v47, 7  ;;  %v2617_v19 = vrot.slane %v2995_v58, 7 }
 0x501   : > { %2627 = vrot.lane.b32.xlu1 %v2626_v21, %s3123_s10 }
 0x502   : > { %2598 = vrot.lane.b32.xlu0 %v2597_v57, %s3123_s10  ;;  %s5534_s10 = smov 96  }
 0x505   : > { %2631 = vrot.lane.b32.xlu1 %v2630_v45, %s3124_s15 }
 0x506   : > { %2602 = vrot.lane.b32.xlu0 %v2601_v41, %s3124_s15  ;;  %s5535_s15 = smov 112  }
 0x509   : > { %2635 = vrot.lane.b32.xlu1 %v2634_v15, %s3121_s26 }
 0x50a   : > { %2606 = vrot.lane.b32.xlu0 %v2605_v32, %s3121_s26  ;;  %s5536_s26 = sshll.u32 %s3289_s11, 5 }
 0x50b   : > { %s257_s13 = scalar_lea.vmem [#allocation9], %s5536_s26 }
 0x50c   : > { %s2701_s27 = sshll.u32 %s257_s13, 4  ;;  %s5194_s27 = int_to_ptr.vmem [resolvable:$true] %s2701_s27 }
 0x50d   : > { %2639 = vrot.lane.b32.xlu1 %v2638_v30, %s5533_s8  ;;  %s3045_s12 = scalar_lea.vmem %s5194_s27, 512  ;;  %p3052_p8 = scmp.lt.s32.totalorder %s5194_s27, %s3050_s19 }
 0x50e   : > { %2610 = vrot.lane.b32.xlu0 %v2609_v36, %s5533_s8  ;;  %p3046_p12 = scmp.ne.s32.totalorder %s5194_s27, %s3045_s12  ;;  %p3053_p9 = scmp.lt.s32.totalorder %s3051_s29, %s3045_s12 }
 0x510   : > { %p3047_p2 = pnand %p3046_p12, %p5541_p0  ;;  %p3054_p10 = por %p3053_p9, %p3052_p8 }
 0x511   : > { %2643 = vrot.lane.b32.xlu1 %v2642_v63, %s5534_s10 }
 0x512   : > { %2614 = vrot.lane.b32.xlu0 %v2613_v50, %s5534_s10  ;;  %p3048_p7 = pneg %p3047_p2 }
 0x514   : > { %p3055_p1 = pnand %p3054_p10, %p3048_p7 }
 0x515   : > { %2647 = vrot.lane.b32.xlu1 %v2646_v39, %s5535_s15 }
 0x516   : > { %2618 = vrot.lane.b32.xlu0 %v2617_v19, %s5535_s15 }
 0x56f   : > { %v2624_v53 = vpop.permute.xlu1 %2623 }
 0x570   : > { %v2595_v37 = vpop.permute.xlu0 %2594  ;;  %v2664_v5 = vsel %vm2650_vm11, %v2993_v47, %v2624_v53 }
 0x571   : > { %v2651_v38 = vsel %vm2650_vm11, %v2995_v58, %v2595_v37 }
 0x573   : > { %v2628_v42 = vpop.permute.xlu1 %2627 }
 0x574   : > { %v2599_v44 = vpop.permute.xlu0 %2598  ;;  %v2665_v2 = vsel %vm2652_vm12, %v2664_v5, %v2628_v42 }
 0x575   : > { %v2653_v33 = vsel %vm2652_vm12, %v2651_v38, %v2599_v44 }
 0x577   : > { %v2632_v28 = vpop.permute.xlu1 %2631 }
 0x578   : > { %v2603_v22 = vpop.permute.xlu0 %2602  ;;  %v2666_v61 = vsel %vm2654_vm13, %v2665_v2, %v2632_v28 }
 0x579   : > { %v2655_v24 = vsel %vm2654_vm13, %v2653_v33, %v2603_v22 }
 0x57b   : > { %v2636_v43 = vpop.permute.xlu1 %2635 }
 0x57c   : > { %v2607_v0 = vpop.permute.xlu0 %2606  ;;  %v2667_v59 = vsel %vm2656_vm14, %v2666_v61, %v2636_v43 }
 0x57d   : > { %v2657_v35 = vsel %vm2656_vm14, %v2655_v24, %v2607_v0 }
 0x57f   : > { %v2640_v23 = vpop.permute.xlu1 %2639 }
 0x580   : > { %v2611_v40 = vpop.permute.xlu0 %2610  ;;  %v2668_v1 = vsel %vm2658_vm15, %v2667_v59, %v2640_v23 }
 0x581   : > { %v2659_v14 = vsel %vm2658_vm15, %v2657_v35, %v2611_v40 }
 0x583   : > { %v2644_v51 = vpop.permute.xlu1 %2643 }
 0x584   : > { %v2615_v9 = vpop.permute.xlu0 %2614  ;;  %v2669_v16 = vsel %vm2660_vm0, %v2668_v1, %v2644_v51 }
 0x585   : > { %v2661_v6 = vsel %vm2660_vm0, %v2659_v14, %v2615_v9 }
 0x587   : > { %v2648_v52 = vpop.permute.xlu1 %2647 }
 0x588   : > { %v2670_v49 = vsel %vm2662_vm1, %v2669_v16, %v2648_v52  ;;  %v2619_v3 = vpop.permute.xlu0 %2618 }
 0x589   : > { %v2678_v4 = vrot.slane %v2670_v49, %v2673_v11  ;;  %v2663_v29 = vsel %vm2662_vm1, %v2661_v6, %v2619_v3 }
 0x58a   : > { %v2674_v31 = vrot.slane %v2663_v29, %v2673_v11 }
 0x58b   : > { %v2680_v46 = vmul.f32 %v2678_v4, %v5537_v8  ;;  %v2682_v10 = vmul.f32 %v2678_v4, %v5538_v20 }
 0x58c   : > { %v2679_v26 = vmul.f32 %v2674_v31, %v5539_v60  ;;  %v2681_v7 = vmul.f32 %v2674_v31, %v5540_v34 }
 0x58d   : > { %2684 = vst [vmem:[%s257_s13 + $0x8] sm:$0xff] %v2680_v46  ;;  %2686 = vst [vmem:[%s257_s13 + $0x18] sm:$0xff] %v2682_v10 }
 0x58e   : > { %2683 = vst [vmem:[%s257_s13] sm:$0xff] %v2679_v26  ;;  %2685 = vst [vmem:[%s257_s13 + $0x10] sm:$0xff] %v2681_v7 }
 0x58f   : > { %3058 = shalt.err (!%p3055_p1)
}
 0x590   : > { %s3059_s17 = scalar_lea.hbm %s5201_s24, 512  ;;  %s3063_s15 = scalar_lea.hbm %s5250_s5, 1024 }
 0x591   : > { %p3060_p4 = scmp.ne.s32.totalorder %s5201_s24, %s3059_s17  ;;  %p3064_p6 = scmp.lt.s32.totalorder %s5201_s24, %s5250_s5 }
 0x592   : > { %p3065_p13 = scmp.lt.s32.totalorder %s3063_s15, %s3059_s17 }
 0x593   : > { %p3061_p11 = pnand %p3060_p4, %p5541_p0 }
 0x594   : > { %p3066_p3 = por %p3065_p13, %p3064_p6 }
 0x595   : > { %p3062_p5 = pneg %p3061_p11 }
 0x597   : > { %p3067_p12 = pnand %p3066_p3, %p3062_p5 }
 0x599   : > { %3070 = shalt.err (!%p3067_p12)
}
 0x59a   : > { %s3135_s14 = smov 256  }
 0x59b   : > { %2911 = dma.vmem_to_hbm [thread:$0]  (%p5541_p0), %s5194_s27, 512, %s5201_s24, %s2688_s4, %s3135_s14, %s3135_s14, %s3125_s16  }
 0x59c PF: > { %s2716_s30 = sand.u32 1, %s3101_s20   ;;  %p5542_p2 = scmp.ne.s32.totalorder %s5295_s7, 0 }
 0x59d   : > { %p5543_p7 = scmp.ge.s32.totalorder %s3113_s23, 2  ;;  %s2717_s18 = scalar_lea.sflag [#allocation6], %s2716_s30 }
 0x59f   : > { %p2922_p8 = pnand %p5543_p7, %p5542_p2 }
 0x5a1   : > { %p2923_p9 = pneg %p2922_p8 }
 0x5a3   : > { %3096 = dma.done.wait (%p2923_p9), %s2717_s18, 512  }
 0x5a4   : > { %3098 = vsyncadd (%p2923_p9), %s2717_s18, 4294966784  ;;  %p20_p10 = scmp.ge.s32.totalorder %s3194_s25, 4   ;;  %s5544_s20 = smov %s3105_s21 }
 0x5a5   : > { %s5545_s21 = smov %s3109_s22  ;;  %s5546_s22 = smov %s3206_s28 }
 0x5a6   : > { %s5547_s23 = smov %s3194_s25  ;;  %22 = sbr.rel (!%p20_p10) target bundleno = 8 (0x8), region = 91 }
 0x5ab   :  { %2722 = vsyncpa [#allocation5], 1 }
 0x5ac   :  { %2724 = vsyncpa [#allocation5 + $0x1], 1 }
 0x5ad   :  { %2725 = vsyncpa [#allocation6], 1 }
 0x5ae   :  { %2727 = vsyncpa [#allocation6 + $0x1], 1 }
 0x5af   :  { %2728 = vsyncpa [#allocation7], 1 }
 0x5b0   :  { %2730 = vsyncpa [#allocation7 + $0x1], 1 }

</bundles_post_ra>
